<compile_context>
chip_gen: v5e
topology: v5e:2x2
jax: 0.10.0
libtpu: 0.0.40
codegen_flags: <defaults>
</compile_context>

<pallas_src>
import jax
import jax.numpy as jnp
from jax.experimental import pallas as pl
from jax.experimental.pallas import tpu as pltpu

BS = 4                                # batch size fixed by the PyTorch module
M_PAD = 8                             # pad batch to a full (8, 128) sublane tile
LAYER_SIZES = [784, 1024, 512, 256, 128, 64, 10]
N_LAYERS = len(LAYER_SIZES) - 1
OUT_PAD = 128                         # lane-dense output width (sliced to 10 outside)

# Logical weight shapes and lane-padded shapes used inside the kernel.
W_SHAPES = [(784, 1024), (1024, 512), (512, 256), (256, 128), (128, 64), (64, 10)]
W_PAD_SHAPES = [(784, 1024), (1024, 512), (512, 256), (256, 128), (128, 128), (128, 128)]

# Packed-bias layout: every bias gets a 128-lane-aligned slot inside one f32 array.
BIAS_SLOTS = [1024, 512, 256, 128, 128, 128]
BIAS_OFFS = [0, 1024, 1536, 1792, 1920, 2048]
BIAS_PACK_LEN = 2176


def mlp_kernel(x_ref, w1_ref, w2_hbm, w3_hbm, w4_hbm, w5_hbm, w6_hbm, b_ref,
               o_ref,
               w2_v, w3_v, w4_v, w5_v, w6_v, sems):
    """Fused 6-layer MLP.  W1 is VMEM-resident; W2..W6 are manually DMA'd from HBM."""
    hbm_refs = (w2_hbm, w3_hbm, w4_hbm, w5_hbm, w6_hbm)
    vmem_refs = (w2_v, w3_v, w4_v, w5_v, w6_v)

    # Kick off all later-layer weight fetches up front; they stream behind compute.
    copies = []
    for i in range(N_LAYERS - 1):
        cp = pltpu.make_async_copy(hbm_refs[i], vmem_refs[i], sems.at[i])
        cp.start()
        copies.append(cp)

    # Layer 1: W1 already in VMEM (auto-DMA'd before the body runs).
    h = jnp.dot(x_ref[...].astype(jnp.bfloat16), w1_ref[...],
                preferred_element_type=jnp.float32)
    h = h + b_ref[:, BIAS_OFFS[0]:BIAS_OFFS[0] + BIAS_SLOTS[0]]
    h = jnp.maximum(h, 0.0).astype(jnp.bfloat16)        # ReLU in f32, carry bf16

    # Layers 2..6: wait only for the weight this layer needs.
    for li in range(1, N_LAYERS):
        copies[li - 1].wait()
        off, slot = BIAS_OFFS[li], BIAS_SLOTS[li]
        h = jnp.dot(h, vmem_refs[li - 1][...],
                    preferred_element_type=jnp.float32)
        h = h + b_ref[:, off:off + slot]                 # static, lane-aligned slice
        if li < N_LAYERS - 1:
            h = jnp.maximum(h, 0.0).astype(jnp.bfloat16)

    o_ref[...] = h                                       # (M_PAD, 128) f32, unmasked vst


def pack_biases(biases):
    """Pack per-layer f32 biases into one (1, BIAS_PACK_LEN) lane-aligned f32 array."""
    packed = jnp.zeros((1, BIAS_PACK_LEN), jnp.float32)
    for li, b in enumerate(biases):
        out_dim = LAYER_SIZES[li + 1]
        packed = packed.at[:, BIAS_OFFS[li]:BIAS_OFFS[li] + out_dim].set(
            b.reshape(1, -1).astype(jnp.float32))
    return packed


def prepare_params(params):
    """One-time layout prep (hoisted out of the per-call path).

    Casts weights to bf16, zero-pads W5/W6 to lane-dense shapes, packs biases.
    """
    ws = []
    for li, (w, _) in enumerate(params):
        w = w.astype(jnp.bfloat16)
        (kin, kout), (pin, pout) = W_SHAPES[li], W_PAD_SHAPES[li]
        if (kin, kout) != (pin, pout):
            w = jnp.zeros((pin, pout), jnp.bfloat16).at[:kin, :kout].set(w)
        ws.append(w)
    b_pack = pack_biases([b for (_, b) in params])
    return tuple(ws), b_pack


def my_model_forward(x, prepped):
    """x: (BS, 1, 28, 28) f32 NCHW.  prepped: output of prepare_params()."""
    ws, b_pack = prepped
    bs = x.shape[0]
    x_flat = x.reshape(bs, -1).astype(jnp.float32)       # x.view(bs, -1)
    # Pad batch to a full sublane tile; padded rows are independent junk rows.
    x_pad = jnp.zeros((M_PAD, LAYER_SIZES[0]), jnp.float32).at[:bs].set(x_flat)

    vmem = pl.BlockSpec(memory_space=pltpu.MemorySpace.VMEM)
    hbm = pl.BlockSpec(memory_space=pl.ANY)              # raw ref, manual DMA in-kernel
    in_specs = [vmem, vmem] + [hbm] * (N_LAYERS - 1) + [vmem]

    weight_bytes = sum(int(w.size) * w.dtype.itemsize for w in ws)
    flops = 2 * M_PAD * sum(LAYER_SIZES[i] * LAYER_SIZES[i + 1]
                            for i in range(N_LAYERS))
    bytes_accessed = (x_pad.size * 4 + weight_bytes + b_pack.size * 4
                      + M_PAD * OUT_PAD * 4)

    out_pad = pl.pallas_call(
        mlp_kernel,
        out_shape=jax.ShapeDtypeStruct((M_PAD, OUT_PAD), jnp.float32),
        in_specs=in_specs,
        out_specs=vmem,
        scratch_shapes=[pltpu.VMEM(W_PAD_SHAPES[i], jnp.bfloat16)
                        for i in range(1, N_LAYERS)]
                       + [pltpu.SemaphoreType.DMA((N_LAYERS - 1,))],
        compiler_params=pltpu.CompilerParams(vmem_limit_bytes=8 << 20),
        cost_estimate=pl.CostEstimate(flops=flops, transcendentals=0,
                                      bytes_accessed=bytes_accessed),
    )(x_pad, ws[0], ws[1], ws[2], ws[3], ws[4], ws[5], b_pack)

    return out_pad[:bs, :LAYER_SIZES[-1]]                # drop padded rows / lanes


def init_params(key):
    """Deterministic init mimicking PyTorch Linear (uniform +-1/sqrt(fan_in)).

    Weights returned transposed vs. PyTorch, shape (in, out), f32; biases (out,) f32.
    """
    params = []
    for i in range(N_LAYERS):
        fan_in, fan_out = LAYER_SIZES[i], LAYER_SIZES[i + 1]
        key, kw, kb = jax.random.split(key, 3)
        bound = 1.0 / (fan_in ** 0.5)
        w = jax.random.uniform(kw, (fan_in, fan_out), jnp.float32, -bound, bound)
        b = jax.random.uniform(kb, (fan_out,), jnp.float32, -bound, bound)
        params.append((w, b))
    return params


def reference_forward(x, params):
    """Pure-JAX reference mirroring the kernel numerics (bf16 weights & activation
    carry, f32 accumulation)."""
    h = x.reshape(x.shape[0], -1).astype(jnp.bfloat16)
    for i, (w, b) in enumerate(params):
        h = jnp.dot(h, w.astype(jnp.bfloat16),
                    preferred_element_type=jnp.float32) + b.reshape(1, -1)
        if i < len(params) - 1:
            h = jnp.maximum(h, 0.0).astype(jnp.bfloat16)
    return h


if __name__ == "__main__":
    key = jax.random.PRNGKey(0)
    key, kx = jax.random.split(key)
    x = jax.random.normal(kx, (BS, 1, 28, 28), jnp.float32)   # NCHW, like MNIST

    params = init_params(key)
    prepped = prepare_params(params)     # one-time layout prep, reused across calls

    out = my_model_forward(x, prepped)
    out = jax.block_until_ready(out)

    ref = reference_forward(x, params)
    assert out.shape == (BS, LAYER_SIZES[-1]), out.shape
    assert jnp.allclose(out, ref, atol=2e-2, rtol=2e-2), "mismatch vs JAX reference"

    print("KERNEL_OK")
</pallas_src>

<mosaic_0001>
module attributes {stable_mosaic.version = 11 : i64} {
  func.func @mlp_kernel(%arg0: memref<8x784xf32, #tpu.memory_space<vmem>>, %arg1: memref<784x1024xbf16, #tpu.memory_space<vmem>>, %arg2: memref<1024x512xbf16, #tpu.memory_space<any>>, %arg3: memref<512x256xbf16, #tpu.memory_space<any>>, %arg4: memref<256x128xbf16, #tpu.memory_space<any>>, %arg5: memref<128x128xbf16, #tpu.memory_space<any>>, %arg6: memref<128x128xbf16, #tpu.memory_space<any>>, %arg7: memref<1x2176xf32, #tpu.memory_space<vmem>>, %arg8: memref<8x128xf32, #tpu.memory_space<vmem>>, %arg9: memref<1024x512xbf16, #tpu.memory_space<vmem>>, %arg10: memref<512x256xbf16, #tpu.memory_space<vmem>>, %arg11: memref<256x128xbf16, #tpu.memory_space<vmem>>, %arg12: memref<128x128xbf16, #tpu.memory_space<vmem>>, %arg13: memref<128x128xbf16, #tpu.memory_space<vmem>>, %arg14: memref<5x!tpu.dma_semaphore, #tpu.memory_space<semaphore_mem>>) attributes {dimension_semantics = [], scalar_prefetch = 0 : i64, scratch_operands = 6 : i64, tpu.core_type = #tpu.core_type<tc>} {
    %c0_i32 = arith.constant 0 : i32
    %0 = tpu.memref_slice %arg14[%c0_i32] : memref<5x!tpu.dma_semaphore, #tpu.memory_space<semaphore_mem>> -> memref<1x!tpu.dma_semaphore, #tpu.memory_space<semaphore_mem>>
    %1 = tpu.memref_squeeze %0 : memref<1x!tpu.dma_semaphore, #tpu.memory_space<semaphore_mem>> -> memref<!tpu.dma_semaphore, #tpu.memory_space<semaphore_mem>>
    tpu.enqueue_dma source(%arg2 : memref<1024x512xbf16, #tpu.memory_space<any>>) target(%arg9 : memref<1024x512xbf16, #tpu.memory_space<vmem>>) target_semaphore(%1 : memref<!tpu.dma_semaphore, #tpu.memory_space<semaphore_mem>>)
    %c1_i32 = arith.constant 1 : i32
    %2 = tpu.memref_slice %arg14[%c1_i32] : memref<5x!tpu.dma_semaphore, #tpu.memory_space<semaphore_mem>> -> memref<1x!tpu.dma_semaphore, #tpu.memory_space<semaphore_mem>>
    %3 = tpu.memref_squeeze %2 : memref<1x!tpu.dma_semaphore, #tpu.memory_space<semaphore_mem>> -> memref<!tpu.dma_semaphore, #tpu.memory_space<semaphore_mem>>
    tpu.enqueue_dma source(%arg3 : memref<512x256xbf16, #tpu.memory_space<any>>) target(%arg10 : memref<512x256xbf16, #tpu.memory_space<vmem>>) target_semaphore(%3 : memref<!tpu.dma_semaphore, #tpu.memory_space<semaphore_mem>>)
    %c2_i32 = arith.constant 2 : i32
    %4 = tpu.memref_slice %arg14[%c2_i32] : memref<5x!tpu.dma_semaphore, #tpu.memory_space<semaphore_mem>> -> memref<1x!tpu.dma_semaphore, #tpu.memory_space<semaphore_mem>>
    %5 = tpu.memref_squeeze %4 : memref<1x!tpu.dma_semaphore, #tpu.memory_space<semaphore_mem>> -> memref<!tpu.dma_semaphore, #tpu.memory_space<semaphore_mem>>
    tpu.enqueue_dma source(%arg4 : memref<256x128xbf16, #tpu.memory_space<any>>) target(%arg11 : memref<256x128xbf16, #tpu.memory_space<vmem>>) target_semaphore(%5 : memref<!tpu.dma_semaphore, #tpu.memory_space<semaphore_mem>>)
    %c3_i32 = arith.constant 3 : i32
    %6 = tpu.memref_slice %arg14[%c3_i32] : memref<5x!tpu.dma_semaphore, #tpu.memory_space<semaphore_mem>> -> memref<1x!tpu.dma_semaphore, #tpu.memory_space<semaphore_mem>>
    %7 = tpu.memref_squeeze %6 : memref<1x!tpu.dma_semaphore, #tpu.memory_space<semaphore_mem>> -> memref<!tpu.dma_semaphore, #tpu.memory_space<semaphore_mem>>
    tpu.enqueue_dma source(%arg5 : memref<128x128xbf16, #tpu.memory_space<any>>) target(%arg12 : memref<128x128xbf16, #tpu.memory_space<vmem>>) target_semaphore(%7 : memref<!tpu.dma_semaphore, #tpu.memory_space<semaphore_mem>>)
    %c4_i32 = arith.constant 4 : i32
    %8 = tpu.memref_slice %arg14[%c4_i32] : memref<5x!tpu.dma_semaphore, #tpu.memory_space<semaphore_mem>> -> memref<1x!tpu.dma_semaphore, #tpu.memory_space<semaphore_mem>>
    %9 = tpu.memref_squeeze %8 : memref<1x!tpu.dma_semaphore, #tpu.memory_space<semaphore_mem>> -> memref<!tpu.dma_semaphore, #tpu.memory_space<semaphore_mem>>
    tpu.enqueue_dma source(%arg6 : memref<128x128xbf16, #tpu.memory_space<any>>) target(%arg13 : memref<128x128xbf16, #tpu.memory_space<vmem>>) target_semaphore(%9 : memref<!tpu.dma_semaphore, #tpu.memory_space<semaphore_mem>>)
    %c0 = arith.constant 0 : index
    %c0_0 = arith.constant 0 : index
    %10 = vector.load %arg0[%c0, %c0_0] : memref<8x784xf32, #tpu.memory_space<vmem>>, vector<8x784xf32>
    %11 = arith.truncf %10 : vector<8x784xf32> to vector<8x784xbf16>
    %c0_1 = arith.constant 0 : index
    %c0_2 = arith.constant 0 : index
    %12 = vector.load %arg1[%c0_1, %c0_2] : memref<784x1024xbf16, #tpu.memory_space<vmem>>, vector<784x1024xbf16>
    %cst = arith.constant dense<0.000000e+00> : vector<8x1024xf32>
    %13 = tpu.matmul %11, %12, %cst {dimension_numbers = #tpu.dot_dimension_numbers<[1], [0], [0], [1], [0, 0, 1, 1], [], []>} : vector<8x784xbf16>, vector<784x1024xbf16>, vector<8x1024xf32> -> vector<8x1024xf32>
    %c0_3 = arith.constant 0 : index
    %c0_4 = arith.constant 0 : index
    %14 = vector.load %arg7[%c0_3, %c0_4] : memref<1x2176xf32, #tpu.memory_space<vmem>>, vector<1x1024xf32>
    %15 = vector.broadcast %14 : vector<1x1024xf32> to vector<8x1024xf32>
    %16 = arith.addf %13, %15 : vector<8x1024xf32>
    %cst_5 = arith.constant 0.000000e+00 : f32
    %17 = vector.broadcast %cst_5 : f32 to vector<8x1024xf32>
    %18 = arith.maximumf %16, %17 : vector<8x1024xf32>
    %19 = arith.truncf %18 : vector<8x1024xf32> to vector<8x1024xbf16>
    %c0_i32_6 = arith.constant 0 : i32
    %20 = tpu.memref_slice %arg14[%c0_i32_6] : memref<5x!tpu.dma_semaphore, #tpu.memory_space<semaphore_mem>> -> memref<1x!tpu.dma_semaphore, #tpu.memory_space<semaphore_mem>>
    %21 = tpu.memref_squeeze %20 : memref<1x!tpu.dma_semaphore, #tpu.memory_space<semaphore_mem>> -> memref<!tpu.dma_semaphore, #tpu.memory_space<semaphore_mem>>
    tpu.wait_dma2 semaphore(%21 : memref<!tpu.dma_semaphore, #tpu.memory_space<semaphore_mem>>) src(%arg2 : memref<1024x512xbf16, #tpu.memory_space<any>>) dst(%arg9 : memref<1024x512xbf16, #tpu.memory_space<vmem>>)
    %c0_7 = arith.constant 0 : index
    %c0_8 = arith.constant 0 : index
    %22 = vector.load %arg9[%c0_7, %c0_8] : memref<1024x512xbf16, #tpu.memory_space<vmem>>, vector<1024x512xbf16>
    %cst_9 = arith.constant dense<0.000000e+00> : vector<8x512xf32>
    %23 = tpu.matmul %19, %22, %cst_9 {dimension_numbers = #tpu.dot_dimension_numbers<[1], [0], [0], [1], [0, 0, 1, 1], [], []>} : vector<8x1024xbf16>, vector<1024x512xbf16>, vector<8x512xf32> -> vector<8x512xf32>
    %c0_10 = arith.constant 0 : index
    %c1024 = arith.constant 1024 : index
    %24 = vector.load %arg7[%c0_10, %c1024] : memref<1x2176xf32, #tpu.memory_space<vmem>>, vector<1x512xf32>
    %25 = vector.broadcast %24 : vector<1x512xf32> to vector<8x512xf32>
    %26 = arith.addf %23, %25 : vector<8x512xf32>
    %cst_11 = arith.constant 0.000000e+00 : f32
    %27 = vector.broadcast %cst_11 : f32 to vector<8x512xf32>
    %28 = arith.maximumf %26, %27 : vector<8x512xf32>
    %29 = arith.truncf %28 : vector<8x512xf32> to vector<8x512xbf16>
    %c1_i32_12 = arith.constant 1 : i32
    %30 = tpu.memref_slice %arg14[%c1_i32_12] : memref<5x!tpu.dma_semaphore, #tpu.memory_space<semaphore_mem>> -> memref<1x!tpu.dma_semaphore, #tpu.memory_space<semaphore_mem>>
    %31 = tpu.memref_squeeze %30 : memref<1x!tpu.dma_semaphore, #tpu.memory_space<semaphore_mem>> -> memref<!tpu.dma_semaphore, #tpu.memory_space<semaphore_mem>>
    tpu.wait_dma2 semaphore(%31 : memref<!tpu.dma_semaphore, #tpu.memory_space<semaphore_mem>>) src(%arg3 : memref<512x256xbf16, #tpu.memory_space<any>>) dst(%arg10 : memref<512x256xbf16, #tpu.memory_space<vmem>>)
    %c0_13 = arith.constant 0 : index
    %c0_14 = arith.constant 0 : index
    %32 = vector.load %arg10[%c0_13, %c0_14] : memref<512x256xbf16, #tpu.memory_space<vmem>>, vector<512x256xbf16>
    %cst_15 = arith.constant dense<0.000000e+00> : vector<8x256xf32>
    %33 = tpu.matmul %29, %32, %cst_15 {dimension_numbers = #tpu.dot_dimension_numbers<[1], [0], [0], [1], [0, 0, 1, 1], [], []>} : vector<8x512xbf16>, vector<512x256xbf16>, vector<8x256xf32> -> vector<8x256xf32>
    %c0_16 = arith.constant 0 : index
    %c1536 = arith.constant 1536 : index
    %34 = vector.load %arg7[%c0_16, %c1536] : memref<1x2176xf32, #tpu.memory_space<vmem>>, vector<1x256xf32>
    %35 = vector.broadcast %34 : vector<1x256xf32> to vector<8x256xf32>
    %36 = arith.addf %33, %35 : vector<8x256xf32>
    %cst_17 = arith.constant 0.000000e+00 : f32
    %37 = vector.broadcast %cst_17 : f32 to vector<8x256xf32>
    %38 = arith.maximumf %36, %37 : vector<8x256xf32>
    %39 = arith.truncf %38 : vector<8x256xf32> to vector<8x256xbf16>
    %c2_i32_18 = arith.constant 2 : i32
    %40 = tpu.memref_slice %arg14[%c2_i32_18] : memref<5x!tpu.dma_semaphore, #tpu.memory_space<semaphore_mem>> -> memref<1x!tpu.dma_semaphore, #tpu.memory_space<semaphore_mem>>
    %41 = tpu.memref_squeeze %40 : memref<1x!tpu.dma_semaphore, #tpu.memory_space<semaphore_mem>> -> memref<!tpu.dma_semaphore, #tpu.memory_space<semaphore_mem>>
    tpu.wait_dma2 semaphore(%41 : memref<!tpu.dma_semaphore, #tpu.memory_space<semaphore_mem>>) src(%arg4 : memref<256x128xbf16, #tpu.memory_space<any>>) dst(%arg11 : memref<256x128xbf16, #tpu.memory_space<vmem>>)
    %c0_19 = arith.constant 0 : index
    %c0_20 = arith.constant 0 : index
    %42 = vector.load %arg11[%c0_19, %c0_20] : memref<256x128xbf16, #tpu.memory_space<vmem>>, vector<256x128xbf16>
    %cst_21 = arith.constant dense<0.000000e+00> : vector<8x128xf32>
    %43 = tpu.matmul %39, %42, %cst_21 {dimension_numbers = #tpu.dot_dimension_numbers<[1], [0], [0], [1], [0, 0, 1, 1], [], []>} : vector<8x256xbf16>, vector<256x128xbf16>, vector<8x128xf32> -> vector<8x128xf32>
    %c0_22 = arith.constant 0 : index
    %c1792 = arith.constant 1792 : index
    %44 = vector.load %arg7[%c0_22, %c1792] : memref<1x2176xf32, #tpu.memory_space<vmem>>, vector<1x128xf32>
    %45 = vector.broadcast %44 : vector<1x128xf32> to vector<8x128xf32>
    %46 = arith.addf %43, %45 : vector<8x128xf32>
    %cst_23 = arith.constant 0.000000e+00 : f32
    %47 = vector.broadcast %cst_23 : f32 to vector<8x128xf32>
    %48 = arith.maximumf %46, %47 : vector<8x128xf32>
    %49 = arith.truncf %48 : vector<8x128xf32> to vector<8x128xbf16>
    %c3_i32_24 = arith.constant 3 : i32
    %50 = tpu.memref_slice %arg14[%c3_i32_24] : memref<5x!tpu.dma_semaphore, #tpu.memory_space<semaphore_mem>> -> memref<1x!tpu.dma_semaphore, #tpu.memory_space<semaphore_mem>>
    %51 = tpu.memref_squeeze %50 : memref<1x!tpu.dma_semaphore, #tpu.memory_space<semaphore_mem>> -> memref<!tpu.dma_semaphore, #tpu.memory_space<semaphore_mem>>
    tpu.wait_dma2 semaphore(%51 : memref<!tpu.dma_semaphore, #tpu.memory_space<semaphore_mem>>) src(%arg5 : memref<128x128xbf16, #tpu.memory_space<any>>) dst(%arg12 : memref<128x128xbf16, #tpu.memory_space<vmem>>)
    %c0_25 = arith.constant 0 : index
    %c0_26 = arith.constant 0 : index
    %52 = vector.load %arg12[%c0_25, %c0_26] : memref<128x128xbf16, #tpu.memory_space<vmem>>, vector<128x128xbf16>
    %cst_27 = arith.constant dense<0.000000e+00> : vector<8x128xf32>
    %53 = tpu.matmul %49, %52, %cst_27 {dimension_numbers = #tpu.dot_dimension_numbers<[1], [0], [0], [1], [0, 0, 1, 1], [], []>} : vector<8x128xbf16>, vector<128x128xbf16>, vector<8x128xf32> -> vector<8x128xf32>
    %c0_28 = arith.constant 0 : index
    %c1920 = arith.constant 1920 : index
    %54 = vector.load %arg7[%c0_28, %c1920] : memref<1x2176xf32, #tpu.memory_space<vmem>>, vector<1x128xf32>
    %55 = vector.broadcast %54 : vector<1x128xf32> to vector<8x128xf32>
    %56 = arith.addf %53, %55 : vector<8x128xf32>
    %cst_29 = arith.constant 0.000000e+00 : f32
    %57 = vector.broadcast %cst_29 : f32 to vector<8x128xf32>
    %58 = arith.maximumf %56, %57 : vector<8x128xf32>
    %59 = arith.truncf %58 : vector<8x128xf32> to vector<8x128xbf16>
    %c4_i32_30 = arith.constant 4 : i32
    %60 = tpu.memref_slice %arg14[%c4_i32_30] : memref<5x!tpu.dma_semaphore, #tpu.memory_space<semaphore_mem>> -> memref<1x!tpu.dma_semaphore, #tpu.memory_space<semaphore_mem>>
    %61 = tpu.memref_squeeze %60 : memref<1x!tpu.dma_semaphore, #tpu.memory_space<semaphore_mem>> -> memref<!tpu.dma_semaphore, #tpu.memory_space<semaphore_mem>>
    tpu.wait_dma2 semaphore(%61 : memref<!tpu.dma_semaphore, #tpu.memory_space<semaphore_mem>>) src(%arg6 : memref<128x128xbf16, #tpu.memory_space<any>>) dst(%arg13 : memref<128x128xbf16, #tpu.memory_space<vmem>>)
    %c0_31 = arith.constant 0 : index
    %c0_32 = arith.constant 0 : index
    %62 = vector.load %arg13[%c0_31, %c0_32] : memref<128x128xbf16, #tpu.memory_space<vmem>>, vector<128x128xbf16>
    %cst_33 = arith.constant dense<0.000000e+00> : vector<8x128xf32>
    %63 = tpu.matmul %59, %62, %cst_33 {dimension_numbers = #tpu.dot_dimension_numbers<[1], [0], [0], [1], [0, 0, 1, 1], [], []>} : vector<8x128xbf16>, vector<128x128xbf16>, vector<8x128xf32> -> vector<8x128xf32>
    %c0_34 = arith.constant 0 : index
    %c2048 = arith.constant 2048 : index
    %64 = vector.load %arg7[%c0_34, %c2048] : memref<1x2176xf32, #tpu.memory_space<vmem>>, vector<1x128xf32>
    %65 = vector.broadcast %64 : vector<1x128xf32> to vector<8x128xf32>
    %66 = arith.addf %63, %65 : vector<8x128xf32>
    %c0_35 = arith.constant 0 : index
    %c0_36 = arith.constant 0 : index
    %67 = vector.load %arg8[%c0_35, %c0_36] : memref<8x128xf32, #tpu.memory_space<vmem>>, vector<8x128xf32>
    tpu.vector_store %arg8[%c0_35, %c0_36], %66 {strides = array<i32>} : memref<8x128xf32, #tpu.memory_space<vmem>>, vector<8x128xf32>,
    return
  }
}

</mosaic_0001>

<bundles_post_ra>
// kernel: tpu_custom_call.1
= control target key start
LH: loop header
LB: loop body
LE: loop exit
PB: predicated region body
PF: predicated region fallthrough
CT: control target
= control target key end

     0   :  { %13 = vsyncpa [#allocation9], 0  ;;  %s10372_s0 = inlined_call_operand.hbm [shape: f32[8,784], index: 0, kind: input, shape index: {}]   ;;  %s10373_s1 = inlined_call_operand.hbm [shape: bf16[784,1024], index: 1, kind: input, shape index: {}]   ;;  %s10374_s2 = inlined_call_operand.hbm [shape: bf16[1024,512], index: 2, kind: input, shape index: {}]   ;;  %s10375_s3 = inlined_call_operand.hbm [shape: bf16[512,256], index: 3, kind: input, shape index: {}]   ;;  %s10376_s4 = inlined_call_operand.hbm [shape: bf16[256,128], index: 4, kind: input, shape index: {}]   ;;  %s10377_s5 = inlined_call_operand.hbm [shape: bf16[128,128], index: 5, kind: input, shape index: {}]   ;;  %s10378_s6 = inlined_call_operand.hbm [shape: bf16[128,128], index: 6, kind: input, shape index: {}]   ;;  %s10379_s7 = inlined_call_operand.hbm [shape: f32[1,2176], index: 7, kind: input, shape index: {}]   ;;  %s10380_s8 = inlined_call_operand.hbm [shape: f32[8,128], index: 8, kind: output, shape index: {}]  }
   0x1   :  { %14 = vsyncpa [#allocation12], 0  ;;  %s31_s29 = sshll.u32 %s10373_s1, 4  ;;  %s32_s29 = int_to_ptr.hbm [resolvable:$true] %s31_s29 }
   0x2   :  { %15 = vsyncpa [#allocation10], 0  ;;  %s10108_s30 = smov [#allocation11]   ;;  %s21_s12 = sshll.u32 %s10372_s0, 4  ;;  %s22_s12 = int_to_ptr.hbm [resolvable:$true] %s21_s12 }
   0x3   :  { %s33_s9 = sshll.u32 %s10108_s30, 4  ;;  %s10109_s13 = smov 512   ;;  %s34_s9 = int_to_ptr.vmem [resolvable:$true] %s33_s9 }
   0x4   :  { %s10110_s14 = smov 32   ;;  %s10111_s15 = smov [#allocation8]  }
   0x5   :  { %39 = dma.hbm_to_vmem [thread:$0]  %s32_s29, 50176, %s34_s9, [#allocation12], %s10109_s13, %s10109_s13, %s10110_s14  }
   0x6   :  { %s23_s16 = sshll.u32 %s10111_s15, 4  ;;  %s45_s19 = sshll.u32 %s10379_s7, 4  ;;  %s24_s16 = int_to_ptr.vmem [resolvable:$true] %s23_s16  ;;  %s46_s19 = int_to_ptr.hbm [resolvable:$true] %s45_s19 }
   0x7   :  { %26 = dma.hbm_to_vmem [thread:$0]  %s22_s12, 896, %s24_s16, [#allocation9]  }
   0x8   :  { %s10112_s1 = smov [#allocation13]  }
   0x9   :  { %s47_s20 = sshll.u32 %s10112_s1, 4  ;;  %s48_s20 = int_to_ptr.vmem [resolvable:$true] %s47_s20 }
   0xa   :  { %50 = dma.hbm_to_vmem [thread:$0]  %s46_s19, 272, %s48_s20, [#allocation12]  }
   0xb   :  { %10092 = dma.done.wait [#allocation9], 896  }
   0xc   :  { %10093 = vsyncadd [#allocation9], 4294966400 }
   0xd   :  { %10094 = dma.done.wait [#allocation12], 50448  }
   0xe   :  { %10095 = vsyncadd [#allocation12], 4294916848  ;;  %v6354_v0 = vld [vmem:[#allocation11 + $0x1c0] sm:$0xf]  ;;  %vm2517_vm0 = vcmask 130048   ;;  %s71_s21 = sshll.u32 %s10374_s2, 4  ;;  %s72_s21 = int_to_ptr.hbm [resolvable:$true] %s71_s21 }
   0xf   :  { %v9177_v1 = vld [vmem:[#allocation11 + $0x1dc] sm:$0xf0]  ;;  %s10113_s22 = smov [#allocation2]   ;;  %s85_s26 = sshll.u32 %s10375_s3, 4  ;;  %s86_s26 = int_to_ptr.hbm [resolvable:$true] %s85_s26 }
  0x10   :  { %v6610_v2 = vld [vmem:[#allocation11 + $0x3c0] sm:$0xf]  ;;  %v6355_v3 = vor.u32 %v9177_v1, %v6354_v0  ;;  %s73_s23 = sshll.u32 %s10113_s22, 4  ;;  %s10114_s27 = smov [#allocation3]   ;;  %s74_s23 = int_to_ptr.vmem [resolvable:$true] %s73_s23 }
  0x11   :  { %v9241_v4 = vld [vmem:[#allocation11 + $0x3dc] sm:$0xf0]  ;;  %76 = dma.hbm_to_vmem [thread:$0]  %s72_s21, 32768, %s74_s23, [#allocation7] }
  0x12   :  { %v6866_v5 = vld [vmem:[#allocation11 + $0x5c0] sm:$0xf]  ;;  %v6611_v7 = vor.u32 %v9241_v4, %v6610_v2  ;;  %2521 = vmatpush.bf16.msra.mxu0 %v6355_v3  ;;  %s87_s2 = sshll.u32 %s10114_s27, 4  ;;  %s99_s30 = sshll.u32 %s10376_s4, 4  ;;  %s88_s2 = int_to_ptr.vmem [resolvable:$true] %s87_s2  ;;  %s100_s30 = int_to_ptr.hbm [resolvable:$true] %s99_s30 }
  0x13   :  { %v9305_v6 = vld [vmem:[#allocation11 + $0x5dc] sm:$0xf0]  ;;  %90 = dma.hbm_to_vmem [thread:$0]  %s86_s26, 8192, %s88_s2, [#allocation7 + $0x1] }
  0x14   :  { %v6867_v8 = vor.u32 %v9305_v6, %v6866_v5  ;;  %v7122_v9 = vld [vmem:[#allocation11 + $0x7c0] sm:$0xf]  ;;  %2534 = vmatpush.bf16.msra.mxu1 %v6611_v7  ;;  %s10115_s9 = smov [#allocation4]   ;;  %s113_s12 = sshll.u32 %s10377_s5, 4  ;;  %s114_s12 = int_to_ptr.hbm [resolvable:$true] %s113_s12 }
  0x15   :  { %v9369_v10 = vld [vmem:[#allocation11 + $0x7dc] sm:$0xf0]  ;;  %s101_s3 = sshll.u32 %s10115_s9, 4  ;;  %s127_s4 = sshll.u32 %s10378_s6, 4  ;;  %s102_s3 = int_to_ptr.vmem [resolvable:$true] %s101_s3  ;;  %s128_s4 = int_to_ptr.hbm [resolvable:$true] %s127_s4 }
  0x16   :  { %v6322_v11 = vld [vmem:[#allocation11 + $0x180] sm:$0xf]  ;;  %v7123_v12 = vor.u32 %v9369_v10, %v7122_v9  ;;  %2547 = vmatpush.bf16.msra.mxu2 %v6867_v8  ;;  %104 = dma.hbm_to_vmem [thread:$0]  %s100_s30, 2048, %s102_s3, [#allocation7 + $0x2] }
  0x17   :  { %v9169_v13 = vld [vmem:[#allocation11 + $0x19c] sm:$0xf0]  ;;  %s10116_s15 = smov [#allocation5]   ;;  %s10117_s17 = smov [#allocation6]  }
  0x18   :  { %v6578_v14 = vld [vmem:[#allocation11 + $0x380] sm:$0xf]  ;;  %v6323_v16 = vor.u32 %v9169_v13, %v6322_v11  ;;  %2560 = vmatpush.bf16.msra.mxu3 %v7123_v12  ;;  %s115_s16 = sshll.u32 %s10116_s15, 4  ;;  %s129_s18 = sshll.u32 %s10117_s17, 4  ;;  %s116_s16 = int_to_ptr.vmem [resolvable:$true] %s115_s16  ;;  %s130_s18 = int_to_ptr.vmem [resolvable:$true] %s129_s18 }
  0x19   :  { %v9233_v15 = vld [vmem:[#allocation11 + $0x39c] sm:$0xf0]  ;;  %118 = dma.hbm_to_vmem [thread:$0]  %s114_s12, 1024, %s116_s16, [#allocation7 + $0x3] }
  0x1a   :  { %v6579_v17 = vor.u32 %v9233_v15, %v6578_v14  ;;  %v6834_v18 = vld [vmem:[#allocation11 + $0x580] sm:$0xf]  ;;  %2522 = vmatpush.bf16.msra.mxu0 %v6323_v16  ;;  %132 = dma.hbm_to_vmem [thread:$0]  %s128_s4, 1024, %s130_s18, [#allocation7 + $0x4] }
  0x1b   :  { %v9297_v19 = vld [vmem:[#allocation11 + $0x59c] sm:$0xf0] }
  0x1c   :  { %v7090_v20 = vld [vmem:[#allocation11 + $0x780] sm:$0xf]  ;;  %v6835_v21 = vor.u32 %v9297_v19, %v6834_v18  ;;  %2535 = vmatpush.bf16.msra.mxu1 %v6579_v17 }
  0x1d   :  { %v9361_v22 = vld [vmem:[#allocation11 + $0x79c] sm:$0xf0] }
  0x1e   :  { %v6290_v23 = vld [vmem:[#allocation11 + $0x140] sm:$0xf]  ;;  %v7091_v25 = vor.u32 %v9361_v22, %v7090_v20  ;;  %2548 = vmatpush.bf16.msra.mxu2 %v6835_v21 }
  0x1f   :  { %v9161_v24 = vld [vmem:[#allocation11 + $0x15c] sm:$0xf0] }
  0x20   :  { %v6546_v26 = vld [vmem:[#allocation11 + $0x340] sm:$0xf]  ;;  %v6291_v29 = vor.u32 %v9161_v24, %v6290_v23  ;;  %2561 = vmatpush.bf16.msra.mxu3 %v7091_v25 }
  0x21   :  { %v9225_v27 = vld [vmem:[#allocation11 + $0x35c] sm:$0xf0] }
  0x22   :  { %v6802_v28 = vld [vmem:[#allocation11 + $0x540] sm:$0xf]  ;;  %v6547_v33 = vor.u32 %v9225_v27, %v6546_v26  ;;  %2523 = vmatpush.bf16.msra.mxu0 %v6291_v29 }
  0x23   :  { %v9289_v30 = vld [vmem:[#allocation11 + $0x55c] sm:$0xf0] }
  0x24   :  { %v7058_v31 = vld [vmem:[#allocation11 + $0x740] sm:$0xf]  ;;  %v6803_v34 = vor.u32 %v9289_v30, %v6802_v28  ;;  %2536 = vmatpush.bf16.msra.mxu1 %v6547_v33  ;;  %v9173_v33 = vld [vmem:[#allocation11 + $0x1c4] sm:$0xf] }
  0x25   :  { %v9353_v32 = vld [vmem:[#allocation11 + $0x75c] sm:$0xf0] }
  0x26   :  { %v6258_v35 = vld [vmem:[#allocation11 + $0x100] sm:$0xf]  ;;  %v7059_v38 = vor.u32 %v9353_v32, %v7058_v31  ;;  %2549 = vmatpush.bf16.msra.mxu2 %v6803_v34  ;;  %v6356_v34 = vld [vmem:[#allocation11 + $0x1e0] sm:$0xf0] }
  0x27   :  { %v9153_v36 = vld [vmem:[#allocation11 + $0x11c] sm:$0xf0] }
  0x28   :  { %v6514_v37 = vld [vmem:[#allocation11 + $0x300] sm:$0xf]  ;;  %v6259_v44 = vor.u32 %v9153_v36, %v6258_v35  ;;  %2562 = vmatpush.bf16.msra.mxu3 %v7059_v38  ;;  %v135_v35 = vld [vmem:[#allocation8 + $0x10] sm:$0xff] }
  0x29   :  { %v9217_v39 = vld [vmem:[#allocation11 + $0x31c] sm:$0xf0] }
  0x2a   :  { %v6770_v40 = vld [vmem:[#allocation11 + $0x500] sm:$0xf]  ;;  %v6515_v45 = vor.u32 %v9217_v39, %v6514_v37  ;;  %2524 = vmatpush.bf16.msra.mxu0 %v6259_v44 }
  0x2b   :  { %v9281_v41 = vld [vmem:[#allocation11 + $0x51c] sm:$0xf0] }
  0x2c   :  { %v7026_v42 = vld [vmem:[#allocation11 + $0x700] sm:$0xf]  ;;  %v6771_v46 = vor.u32 %v9281_v41, %v6770_v40  ;;  %2537 = vmatpush.bf16.msra.mxu1 %v6515_v45  ;;  %v9237_v40 = vld [vmem:[#allocation11 + $0x3c4] sm:$0xf]  ;;  %v133_v45 = vld [vmem:[#allocation8] sm:$0xff] }
  0x2d   :  { %v9345_v43 = vld [vmem:[#allocation11 + $0x71c] sm:$0xf0] }
  0x2e   :  { %v6226_v47 = vld [vmem:[#allocation11 + $0xc0] sm:$0xf]  ;;  %v7027_v50 = vor.u32 %v9345_v43, %v7026_v42  ;;  %2550 = vmatpush.bf16.msra.mxu2 %v6771_v46  ;;  %v6612_v43 = vld [vmem:[#allocation11 + $0x3e0] sm:$0xf0] }
  0x2f   :  { %v9145_v48 = vld [vmem:[#allocation11 + $0xdc] sm:$0xf0] }
  0x30   :  { %v6482_v49 = vld [vmem:[#allocation11 + $0x2c0] sm:$0xf]  ;;  %v6227_v56 = vor.u32 %v9145_v48, %v6226_v47  ;;  %2563 = vmatpush.bf16.msra.mxu3 %v7027_v50  ;;  %v6359_v47 = vor.u32 %v9173_v33, %v6356_v34 }
  0x31   :  { %v9209_v51 = vld [vmem:[#allocation11 + $0x2dc] sm:$0xf0] }
  0x32   :  { %v6738_v52 = vld [vmem:[#allocation11 + $0x4c0] sm:$0xf]  ;;  %v6483_v57 = vor.u32 %v9209_v51, %v6482_v49  ;;  %2525 = vmatpush.bf16.msra.mxu0 %v6227_v56  ;;  %v10173_v51 = vpack.c.bf16 %v135_v35, %v135_v35  ;;  %v9205_v35 = vld [vmem:[#allocation11 + $0x2c4] sm:$0xf] }
  0x33   :  { %v9273_v53 = vld [vmem:[#allocation11 + $0x4dc] sm:$0xf0] }
  0x34   :  { %v6994_v54 = vld [vmem:[#allocation11 + $0x6c0] sm:$0xf]  ;;  %v6739_v58 = vor.u32 %v9273_v53, %v6738_v52  ;;  %2538 = vmatpush.bf16.msra.mxu1 %v6483_v57  ;;  %v9165_v53 = vld [vmem:[#allocation11 + $0x184] sm:$0xf] }
  0x35   :  { %v9337_v55 = vld [vmem:[#allocation11 + $0x6dc] sm:$0xf0] }
  0x36   :  { %v6194_v59 = vld [vmem:[#allocation11 + $0x80] sm:$0xf]  ;;  %v6995_v62 = vor.u32 %v9337_v55, %v6994_v54  ;;  %2551 = vmatpush.bf16.msra.mxu2 %v6739_v58  ;;  %v6324_v54 = vld [vmem:[#allocation11 + $0x1a0] sm:$0xf0]  ;;  %v10175_v55 = vpack.c.bf16 %v133_v45, %v133_v45  ;;  %v6615_v58 = vor.u32 %v9237_v40, %v6612_v43 }
  0x37   :  { %v9137_v60 = vld [vmem:[#allocation11 + $0x9c] sm:$0xf0]  ;;  %v9133_v43 = vld [vmem:[#allocation11 + $0x84] sm:$0xf] }
  0x38   :  { %v6450_v61 = vld [vmem:[#allocation11 + $0x280] sm:$0xf]  ;;  %v6195_v4 = vor.u32 %v9137_v60, %v6194_v59  ;;  %2564 = vmatpush.bf16.msra.mxu3 %v6995_v62  ;;  %v9229_v60 = vld [vmem:[#allocation11 + $0x384] sm:$0xf]  ;;  %v134_v62 = vld [vmem:[#allocation8 + $0x8] sm:$0xff] }
  0x39   :  { %v9201_v63 = vld [vmem:[#allocation11 + $0x29c] sm:$0xf0] }
  0x3a   :  { %v6706_v0 = vld [vmem:[#allocation11 + $0x480] sm:$0xf]  ;;  %v6451_v5 = vor.u32 %v9201_v63, %v6450_v61  ;;  %2526 = vmatpush.bf16.msra.mxu0 %v6195_v4  ;;  %v6580_v61 = vld [vmem:[#allocation11 + $0x3a0] sm:$0xf0] }
  0x3b   :  { %v9265_v1 = vld [vmem:[#allocation11 + $0x49c] sm:$0xf0] }
  0x3c   :  { %v6962_v2 = vld [vmem:[#allocation11 + $0x680] sm:$0xf]  ;;  %v6707_v6 = vor.u32 %v9265_v1, %v6706_v0  ;;  %2539 = vmatpush.bf16.msra.mxu1 %v6451_v5  ;;  %v6327_v0 = vor.u32 %v9165_v53, %v6324_v54  ;;  %v9157_v5 = vld [vmem:[#allocation11 + $0x144] sm:$0xf] }
  0x3d   :  { %v9329_v3 = vld [vmem:[#allocation11 + $0x69c] sm:$0xf0] }
  0x3e   :  { %v6162_v7 = vld [vmem:[#allocation11 + $0x40] sm:$0xf]  ;;  %v6963_v10 = vor.u32 %v9329_v3, %v6962_v2  ;;  %2552 = vmatpush.bf16.msra.mxu2 %v6707_v6  ;;  %v6292_v6 = vld [vmem:[#allocation11 + $0x160] sm:$0xf0] }
  0x3f   :  { %v9129_v8 = vld [vmem:[#allocation11 + $0x5c] sm:$0xf0] }
  0x40   :  { %v6418_v9 = vld [vmem:[#allocation11 + $0x240] sm:$0xf]  ;;  %v6163_v16 = vor.u32 %v9129_v8, %v6162_v7  ;;  %2565 = vmatpush.bf16.msra.mxu3 %v6963_v10  ;;  %v10181_v7 = vpack.c.bf16 %v134_v62, %v134_v62  ;;  %v6583_v8 = vor.u32 %v9229_v60, %v6580_v61  ;;  %v9221_v10 = vld [vmem:[#allocation11 + $0x344] sm:$0xf] }
  0x41   :  { %v9193_v11 = vld [vmem:[#allocation11 + $0x25c] sm:$0xf0]  ;;  %v6164_v60 = vld [vmem:[#allocation11 + $0x60] sm:$0xf0] }
  0x42   :  { %v6674_v12 = vld [vmem:[#allocation11 + $0x440] sm:$0xf]  ;;  %v6419_v20 = vor.u32 %v9193_v11, %v6418_v9  ;;  %2527 = vmatpush.bf16.msra.mxu0 %v6163_v16  ;;  %v6548_v11 = vld [vmem:[#allocation11 + $0x360] sm:$0xf0] }
  0x43   :  { %v9257_v13 = vld [vmem:[#allocation11 + $0x45c] sm:$0xf0] }
  0x44   :  { %v6930_v14 = vld [vmem:[#allocation11 + $0x640] sm:$0xf]  ;;  %v6675_v21 = vor.u32 %v9257_v13, %v6674_v12  ;;  %2540 = vmatpush.bf16.msra.mxu1 %v6419_v20  ;;  %v6295_v13 = vor.u32 %v9157_v5, %v6292_v6  ;;  %v6551_v20 = vor.u32 %v9221_v10, %v6548_v11  ;;  %v9301_v10 = vld [vmem:[#allocation11 + $0x5c4] sm:$0xf] }
  0x45   :  { %v9321_v15 = vld [vmem:[#allocation11 + $0x65c] sm:$0xf0]  ;;  %v6868_v11 = vld [vmem:[#allocation11 + $0x5e0] sm:$0xf0] }
  0x46   :  { %v6130_v17 = vld [vmem:[#allocation11] sm:$0xf]  ;;  %v6931_v25 = vor.u32 %v9321_v15, %v6930_v14  ;;  %2553 = vmatpush.bf16.msra.mxu2 %v6675_v21 }
  0x47   :  { %v9121_v18 = vld [vmem:[#allocation11 + $0x1c] sm:$0xf0] }
  0x48   :  { %v6386_v19 = vld [vmem:[#allocation11 + $0x200] sm:$0xf]  ;;  %v6131_v32 = vor.u32 %v9121_v18, %v6130_v17  ;;  %2566 = vmatpush.bf16.msra.mxu3 %v6931_v25  ;;  %v9149_v18 = vld [vmem:[#allocation11 + $0x104] sm:$0xf] }
  0x49   :  { %v9185_v22 = vld [vmem:[#allocation11 + $0x21c] sm:$0xf0] }
  0x4a   :  { %v6642_v23 = vld [vmem:[#allocation11 + $0x400] sm:$0xf]  ;;  %v6387_v36 = vor.u32 %v9185_v22, %v6386_v19  ;;  %2528 = vmatpush.bf16.msra.mxu0 %v6131_v32  ;;  %v6260_v19 = vld [vmem:[#allocation11 + $0x120] sm:$0xf0]  ;;  %v139_v32 = vld [vmem:[#allocation8 + $0x30] sm:$0xff] }
  0x4b   :  { %v9249_v24 = vld [vmem:[#allocation11 + $0x41c] sm:$0xf0]  ;;  %v9213_v22 = vld [vmem:[#allocation11 + $0x304] sm:$0xf]  ;;  %v6263_v25 = vor.u32 %v9149_v18, %v6260_v19  ;;  %v10185_v45 = vpack.c.bf16 %v139_v32, %v139_v32  ;;  %v137_v18 = vld [vmem:[#allocation8 + $0x20] sm:$0xff] }
  0x4c   :  { %v6898_v26 = vld [vmem:[#allocation11 + $0x600] sm:$0xf]  ;;  %v6643_v37 = vor.u32 %v9249_v24, %v6642_v23  ;;  %2541 = vmatpush.bf16.msra.mxu1 %v6387_v36  ;;  %v6516_v23 = vld [vmem:[#allocation11 + $0x320] sm:$0xf0] }
  0x4d   :  { %v9313_v27 = vld [vmem:[#allocation11 + $0x61c] sm:$0xf0]  ;;  %2529 = vmatmul.bf16.vlgmr.msra.gmra.mxu0 %v10175_v55  ;;  %v6519_v33 = vor.u32 %v9213_v22, %v6516_v23  ;;  %v6484_v36 = vld [vmem:[#allocation11 + $0x2e0] sm:$0xf0]  ;;  %v138_v23 = vld [vmem:[#allocation8 + $0x28] sm:$0xff] }
  0x4e   :  { %v7378_v28 = vld [vmem:[#allocation11 + $0x9c0] sm:$0xf]  ;;  %v6899_v41 = vor.u32 %v9313_v27, %v6898_v26  ;;  %2554 = vmatpush.bf16.msra.mxu2 %v6643_v37  ;;  %v6388_v22 = vld [vmem:[#allocation11 + $0x220] sm:$0xf0] }
  0x4f   :  { %v9433_v29 = vld [vmem:[#allocation11 + $0x9dc] sm:$0xf0]  ;;  %2542 = vmatmul.bf16.vlgmr.msra.gmra.mxu1 %v10181_v7  ;;  %v9357_v32 = vld [vmem:[#allocation11 + $0x784] sm:$0xf] }
  0x50   :  { %v7634_v30 = vld [vmem:[#allocation11 + $0xbc0] sm:$0xf]  ;;  %v7379_v42 = vor.u32 %v9433_v29, %v7378_v28  ;;  %2567 = vmatpush.bf16.msra.mxu3 %v6899_v41 }
  0x51   :  { %v9497_v31 = vld [vmem:[#allocation11 + $0xbdc] sm:$0xf0]  ;;  %2555 = vmatmul.bf16.vlgmr.msra.gmra.mxu2 %v10173_v51 }
  0x52   :  { %v7666_v38 = vld [vmem:[#allocation11 + $0xc00] sm:$0xf]  ;;  %v7635_v46 = vor.u32 %v9497_v31, %v7634_v30  ;;  %2573 = vmatpush.bf16.msrb.mxu0 %v7379_v42  ;;  %v9141_v30 = vld [vmem:[#allocation11 + $0xc4] sm:$0xf] }
  0x53   :  { %v9505_v39 = vld [vmem:[#allocation11 + $0xc1c] sm:$0xf0]  ;;  %v6228_v31 = vld [vmem:[#allocation11 + $0xe0] sm:$0xf0] }
  0x54   :  { %v7346_v44 = vld [vmem:[#allocation11 + $0x980] sm:$0xf]  ;;  %v7667_v56 = vor.u32 %v9505_v39, %v7666_v38  ;;  %2586 = vmatpush.bf16.msrb.mxu1 %v7635_v46  ;;  %2612 = vmatpush.bf16.msrb.mxu3 %v6359_v47  ;;  %v6231_v38 = vor.u32 %v9141_v30, %v6228_v31  ;;  %v6487_v46 = vor.u32 %v9205_v35, %v6484_v36  ;;  %v6836_v31 = vld [vmem:[#allocation11 + $0x5a0] sm:$0xf0] }
  0x55   :  { %v9425_v48 = vld [vmem:[#allocation11 + $0x99c] sm:$0xf0]  ;;  %v10189_v30 = vpack.c.bf16 %v137_v18, %v137_v18  ;;  %v10191_v35 = vpack.c.bf16 %v138_v23, %v138_v23  ;;  %v9421_v36 = vld [vmem:[#allocation11 + $0x984] sm:$0xf] }
  0x56   :  { %v7602_v49 = vld [vmem:[#allocation11 + $0xb80] sm:$0xf]  ;;  %v7347_v59 = vor.u32 %v9425_v48, %v7346_v44  ;;  %2606 = vmatpush.bf16.msrb.mxu2 %v7667_v56  ;;  %v6196_v44 = vld [vmem:[#allocation11 + $0xa0] sm:$0xf0] }
  0x57   :  { %v136_v50 = vld [vmem:[#allocation8 + $0x18] sm:$0xff] }
  0x58   :  { %v9489_v52 = vld [vmem:[#allocation11 + $0xb9c] sm:$0xf0]  ;;  %v10177_v57 = vpack.c.bf16 %v136_v50, %v136_v50  ;;  %2574 = vmatpush.bf16.msrb.mxu0 %v7347_v59  ;;  %2613 = vmatpush.bf16.msrb.mxu3 %v6327_v0  ;;  %v9197_v48 = vld [vmem:[#allocation11 + $0x284] sm:$0xf] }
  0x59   :  { %v7603_v63 = vor.u32 %v9489_v52, %v7602_v49  ;;  %v7314_v1 = vld [vmem:[#allocation11 + $0x940] sm:$0xf]  ;;  %v6452_v49 = vld [vmem:[#allocation11 + $0x2a0] sm:$0xf0]  ;;  %v6199_v52 = vor.u32 %v9133_v43, %v6196_v44 }
  0x5a   :  { %v9417_v2 = vld [vmem:[#allocation11 + $0x95c] sm:$0xf0]  ;;  %2568 = vmatmul.bf16.vlgmr.msra.gmra.mxu3 %v10177_v57  ;;  %2625 = vmatpush.bf16.msra.mxu2 %v6615_v58  ;;  %v9125_v59 = vld [vmem:[#allocation11 + $0x44] sm:$0xf]  ;;  %v6455_v61 = vor.u32 %v9197_v48, %v6452_v49 }
  0x5b   :  { %v7570_v3 = vld [vmem:[#allocation11 + $0xb40] sm:$0xf]  ;;  %v7315_v9 = vor.u32 %v9417_v2, %v7314_v1  ;;  %2587 = vmatpush.bf16.msrb.mxu1 %v7603_v63  ;;  %v9189_v63 = vld [vmem:[#allocation11 + $0x244] sm:$0xf] }
  0x5c   :  { %v9481_v4 = vld [vmem:[#allocation11 + $0xb5c] sm:$0xf0]  ;;  %2614 = vmatpush.bf16.msrb.mxu3 %v6295_v13  ;;  %v6420_v0 = vld [vmem:[#allocation11 + $0x260] sm:$0xf0] }
  0x5d   :  { %v7571_v12 = vor.u32 %v9481_v4, %v7570_v3  ;;  %v7282_v14 = vld [vmem:[#allocation11 + $0x900] sm:$0xf]  ;;  %2575 = vmatpush.bf16.msrb.mxu0 %v7315_v9  ;;  %v6167_v3 = vor.u32 %v9125_v59, %v6164_v60  ;;  %v6132_v9 = vld [vmem:[#allocation11 + $0x20] sm:$0xf0] }
  0x5e   :  { %v9409_v15 = vld [vmem:[#allocation11 + $0x91c] sm:$0xf0]  ;;  %2626 = vmatpush.bf16.msra.mxu2 %v6583_v8  ;;  %v9117_v8 = vld [vmem:[#allocation11 + $0x4] sm:$0xf] }
  0x5f   :  { %v7538_v16 = vld [vmem:[#allocation11 + $0xb00] sm:$0xf]  ;;  %v7283_v21 = vor.u32 %v9409_v15, %v7282_v14  ;;  %2588 = vmatpush.bf16.msrb.mxu1 %v7571_v12  ;;  %v9365_v12 = vld [vmem:[#allocation11 + $0x7c4] sm:$0xf]  ;;  %v6423_v14 = vor.u32 %v9189_v63, %v6420_v0 }
  0x60   :  { %v9473_v17 = vld [vmem:[#allocation11 + $0xb1c] sm:$0xf0]  ;;  %2615 = vmatpush.bf16.msrb.mxu3 %v6263_v25  ;;  %v7124_v13 = vld [vmem:[#allocation11 + $0x7e0] sm:$0xf0] }
  0x61   :  { %v7539_v24 = vor.u32 %v9473_v17, %v7538_v16  ;;  %v7250_v26 = vld [vmem:[#allocation11 + $0x8c0] sm:$0xf]  ;;  %2576 = vmatpush.bf16.msrb.mxu0 %v7283_v21  ;;  %7696 = vmatmul.msk.bf16.vlgmr.msrb.gmra.mxu2 %vm2517_vm0, %v10185_v45  ;;  %v9429_v16 = vld [vmem:[#allocation11 + $0x9c4] sm:$0xf]  ;;  %v7127_v25 = vor.u32 %v9365_v12, %v7124_v13 }
  0x62   :  { %v9401_v27 = vld [vmem:[#allocation11 + $0x8dc] sm:$0xf0]  ;;  %2627 = vmatpush.bf16.msra.mxu2 %v6551_v20  ;;  %v7380_v17 = vld [vmem:[#allocation11 + $0x9e0] sm:$0xf0]  ;;  %v6135_v20 = vor.u32 %v9117_v8, %v6132_v9 }
  0x63   :  { %v7506_v28 = vld [vmem:[#allocation11 + $0xac0] sm:$0xf]  ;;  %v7251_v34 = vor.u32 %v9401_v27, %v7250_v26  ;;  %2589 = vmatpush.bf16.msrb.mxu1 %v7539_v24  ;;  %v9181_v21 = vld [vmem:[#allocation11 + $0x204] sm:$0xf]  ;;  %v6871_v24 = vor.u32 %v9301_v10, %v6868_v11 }
  0x64   :  { %v9465_v29 = vld [vmem:[#allocation11 + $0xadc] sm:$0xf0]  ;;  %2616 = vmatpush.bf16.msrb.mxu3 %v6231_v38  ;;  %v9493_v26 = vld [vmem:[#allocation11 + $0xbc4] sm:$0xf] }
  0x65   :  { %v7507_v37 = vor.u32 %v9465_v29, %v7506_v28  ;;  %v7218_v39 = vld [vmem:[#allocation11 + $0x880] sm:$0xf]  ;;  %2577 = vmatpush.bf16.msrb.mxu0 %v7251_v34  ;;  %v7636_v27 = vld [vmem:[#allocation11 + $0xbe0] sm:$0xf0]  ;;  %v7383_v29 = vor.u32 %v9429_v16, %v7380_v17  ;;  %v6391_v34 = vor.u32 %v9181_v21, %v6388_v22 }
  0x66   :  { %v9393_v40 = vld [vmem:[#allocation11 + $0x89c] sm:$0xf0]  ;;  %2628 = vmatpush.bf16.msra.mxu2 %v6519_v33  ;;  %v9293_v28 = vld [vmem:[#allocation11 + $0x584] sm:$0xf]  ;;  %v7639_v38 = vor.u32 %v9493_v26, %v7636_v27 }
  0x67   :  { %v7474_v41 = vld [vmem:[#allocation11 + $0xa80] sm:$0xf]  ;;  %v7219_v47 = vor.u32 %v9393_v40, %v7218_v39  ;;  %2590 = vmatpush.bf16.msrb.mxu1 %v7507_v37  ;;  %v7092_v33 = vld [vmem:[#allocation11 + $0x7a0] sm:$0xf0]  ;;  %v6839_v39 = vor.u32 %v9293_v28, %v6836_v31 }
  0x68   :  { %v9457_v42 = vld [vmem:[#allocation11 + $0xa9c] sm:$0xf0]  ;;  %2617 = vmatpush.bf16.msrb.mxu3 %v6199_v52  ;;  %v7348_v37 = vld [vmem:[#allocation11 + $0x9a0] sm:$0xf0]  ;;  %v7095_v40 = vor.u32 %v9357_v32, %v7092_v33 }
  0x69   :  { %v7475_v50 = vor.u32 %v9457_v42, %v7474_v41  ;;  %v7186_v53 = vld [vmem:[#allocation11 + $0x840] sm:$0xf]  ;;  %2578 = vmatpush.bf16.msrb.mxu0 %v7219_v47  ;;  %v9485_v41 = vld [vmem:[#allocation11 + $0xb84] sm:$0xf]  ;;  %v7351_v44 = vor.u32 %v9421_v36, %v7348_v37 }
  0x6a   :  { %v9385_v54 = vld [vmem:[#allocation11 + $0x85c] sm:$0xf0]  ;;  %2629 = vmatpush.bf16.msra.mxu2 %v6487_v46  ;;  %v7604_v42 = vld [vmem:[#allocation11 + $0xba0] sm:$0xf0] }
  0x6b   :  { %v7442_v56 = vld [vmem:[#allocation11 + $0xa40] sm:$0xf]  ;;  %v7187_v62 = vor.u32 %v9385_v54, %v7186_v53  ;;  %2591 = vmatpush.bf16.msrb.mxu1 %v7475_v50  ;;  %v9285_v43 = vld [vmem:[#allocation11 + $0x544] sm:$0xf]  ;;  %v7607_v52 = vor.u32 %v9485_v41, %v7604_v42 }
  0x6c   :  { %v9449_v58 = vld [vmem:[#allocation11 + $0xa5c] sm:$0xf0]  ;;  %2618 = vmatpush.bf16.msrb.mxu3 %v6167_v3  ;;  %v6804_v46 = vld [vmem:[#allocation11 + $0x560] sm:$0xf0] }
  0x6d   :  { %v7154_v1 = vld [vmem:[#allocation11 + $0x800] sm:$0xf]  ;;  %v7443_v2 = vor.u32 %v9449_v58, %v7442_v56  ;;  %2579 = vmatpush.bf16.msrb.mxu0 %v7187_v62  ;;  %v9349_v47 = vld [vmem:[#allocation11 + $0x744] sm:$0xf]  ;;  %v6807_v53 = vor.u32 %v9285_v43, %v6804_v46 }
  0x6e   :  { %v9377_v4 = vld [vmem:[#allocation11 + $0x81c] sm:$0xf0]  ;;  %2630 = vmatpush.bf16.msra.mxu2 %v6455_v61  ;;  %v7060_v48 = vld [vmem:[#allocation11 + $0x760] sm:$0xf0] }
  0x6f   :  { %v7410_v5 = vld [vmem:[#allocation11 + $0xa00] sm:$0xf]  ;;  %v7155_v15 = vor.u32 %v9377_v4, %v7154_v1  ;;  %2592 = vmatpush.bf16.msrb.mxu1 %v7443_v2  ;;  %v9413_v49 = vld [vmem:[#allocation11 + $0x944] sm:$0xf]  ;;  %v7063_v54 = vor.u32 %v9349_v47, %v7060_v48 }
  0x70   :  { %v9441_v6 = vld [vmem:[#allocation11 + $0xa1c] sm:$0xf0]  ;;  %2619 = vmatpush.bf16.msrb.mxu3 %v6135_v20  ;;  %v7316_v50 = vld [vmem:[#allocation11 + $0x960] sm:$0xf0] }
  0x71   :  { %v7411_v19 = vor.u32 %v9441_v6, %v7410_v5  ;;  %2580 = vmatpush.bf16.msrb.mxu0 %v7155_v15  ;;  %v9477_v56 = vld [vmem:[#allocation11 + $0xb44] sm:$0xf]  ;;  %v7319_v60 = vor.u32 %v9413_v49, %v7316_v50 }
  0x72   :  { %2631 = vmatpush.bf16.msra.mxu2 %v6423_v14  ;;  %v7572_v58 = vld [vmem:[#allocation11 + $0xb60] sm:$0xf0] }
  0x73   :  { %2593 = vmatpush.bf16.msrb.mxu1 %v7411_v19  ;;  %2620 = vmatmul.bf16.vlgmr.msrb.gmra.mxu3 %v10175_v55  ;;  %v9277_v59 = vld [vmem:[#allocation11 + $0x504] sm:$0xf]  ;;  %v7575_v2 = vor.u32 %v9477_v56, %v7572_v58  ;;  %v6362_v56 = vld [vmem:[#allocation11 + $0x1c8] sm:$0xf] }
  0x74   :  { %2664 = vmatpush.bf16.msra.mxu3 %v7383_v29  ;;  %2581 = vmatmul.bf16.vlgmr.msrb.gmra.mxu0 %v10189_v30  ;;  %v6772_v61 = vld [vmem:[#allocation11 + $0x520] sm:$0xf0]  ;;  %v9178_v58 = vld [vmem:[#allocation11 + $0x1e4] sm:$0xf0] }
  0x75   :  { %2638 = vmatpush.bf16.msra.mxu0 %v6871_v24  ;;  %v9341_v62 = vld [vmem:[#allocation11 + $0x704] sm:$0xf]  ;;  %v6775_v3 = vor.u32 %v9277_v59, %v6772_v61 }
  0x76   :  { %2632 = vmatpush.bf16.msra.mxu2 %v6391_v34  ;;  %2594 = vmatmul.bf16.vlgmr.msrb.gmra.mxu1 %v10191_v35  ;;  %v7028_v63 = vld [vmem:[#allocation11 + $0x720] sm:$0xf0] }
  0x77   :  { %2651 = vmatpush.bf16.msra.mxu1 %v7127_v25  ;;  %v9405_v0 = vld [vmem:[#allocation11 + $0x904] sm:$0xf]  ;;  %v7031_v4 = vor.u32 %v9341_v62, %v7028_v63  ;;  %v6874_v62 = vld [vmem:[#allocation11 + $0x5c8] sm:$0xf] }
  0x78   :  { %2665 = vmatpush.bf16.msra.mxu3 %v7351_v44  ;;  %v7284_v1 = vld [vmem:[#allocation11 + $0x920] sm:$0xf0]  ;;  %v9306_v63 = vld [vmem:[#allocation11 + $0x5e4] sm:$0xf0] }
  0x79   :  { %2639 = vmatpush.bf16.msra.mxu0 %v6839_v39  ;;  %2633 = vmatmul.bf16.vlgmr.msra.gmra.mxu2 %v10181_v7  ;;  %v9469_v5 = vld [vmem:[#allocation11 + $0xb04] sm:$0xf]  ;;  %v7287_v9 = vor.u32 %v9405_v0, %v7284_v1 }
  0x7a   :  { %2677 = vmatpush.bf16.msrb.mxu2 %v7639_v38  ;;  %v7540_v6 = vld [vmem:[#allocation11 + $0xb20] sm:$0xf0] }
  0x7b   :  { %2652 = vmatpush.bf16.msra.mxu1 %v7095_v40  ;;  %v9269_v8 = vld [vmem:[#allocation11 + $0x4c4] sm:$0xf]  ;;  %v7543_v15 = vor.u32 %v9469_v5, %v7540_v6  ;;  %v6363_v5 = vor.u32 %v9178_v58, %v6362_v56  ;;  %v7130_v6 = vld [vmem:[#allocation11 + $0x7c8] sm:$0xf] }
  0x7c   :  { %2666 = vmatpush.bf16.msra.mxu3 %v7319_v60  ;;  %v6740_v10 = vld [vmem:[#allocation11 + $0x4e0] sm:$0xf0] }
  0x7d   :  { %2640 = vmatpush.bf16.msra.mxu0 %v6807_v53  ;;  %v9333_v11 = vld [vmem:[#allocation11 + $0x6c4] sm:$0xf]  ;;  %v6743_v16 = vor.u32 %v9269_v8, %v6740_v10  ;;  %v9370_v8 = vld [vmem:[#allocation11 + $0x7e4] sm:$0xf0] }
  0x7e   :  { %2678 = vmatpush.bf16.msrb.mxu2 %v7607_v52  ;;  %v6996_v12 = vld [vmem:[#allocation11 + $0x6e0] sm:$0xf0]  ;;  %v6618_v10 = vld [vmem:[#allocation11 + $0x3c8] sm:$0xf] }
  0x7f   :  { %2653 = vmatpush.bf16.msra.mxu1 %v7063_v54  ;;  %v9397_v13 = vld [vmem:[#allocation11 + $0x8c4] sm:$0xf]  ;;  %v6999_v17 = vor.u32 %v9333_v11, %v6996_v12  ;;  %v9242_v11 = vld [vmem:[#allocation11 + $0x3e4] sm:$0xf0]  ;;  %v6875_v12 = vor.u32 %v9306_v63, %v6874_v62 }
  0x80   :  { %v7252_v14 = vld [vmem:[#allocation11 + $0x8e0] sm:$0xf0]  ;;  %2667 = vmatpush.bf16.msra.mxu3 %v7287_v9  ;;  %v7002_v62 = vld [vmem:[#allocation11 + $0x6c8] sm:$0xf] }
  0x81   :  { %2641 = vmatpush.bf16.msra.mxu0 %v6775_v3  ;;  %v9461_v18 = vld [vmem:[#allocation11 + $0xac4] sm:$0xf]  ;;  %v7255_v21 = vor.u32 %v9397_v13, %v7252_v14  ;;  %v6330_v14 = vld [vmem:[#allocation11 + $0x188] sm:$0xf] }
  0x82   :  { %2679 = vmatpush.bf16.msrb.mxu2 %v7575_v2  ;;  %v7508_v19 = vld [vmem:[#allocation11 + $0xae0] sm:$0xf0]  ;;  %v9338_v63 = vld [vmem:[#allocation11 + $0x6e4] sm:$0xf0] }
  0x83   :  { %2654 = vmatpush.bf16.msra.mxu1 %v7031_v4  ;;  %v9261_v20 = vld [vmem:[#allocation11 + $0x484] sm:$0xf]  ;;  %v7511_v27 = vor.u32 %v9461_v18, %v7508_v19  ;;  %v9298_v18 = vld [vmem:[#allocation11 + $0x5a4] sm:$0xf0]  ;;  %v6619_v19 = vor.u32 %v9242_v11, %v6618_v10 }
  0x84   :  { %v6708_v22 = vld [vmem:[#allocation11 + $0x4a0] sm:$0xf0]  ;;  %2668 = vmatpush.bf16.msra.mxu3 %v7255_v21  ;;  %v9362_v21 = vld [vmem:[#allocation11 + $0x7a4] sm:$0xf0] }
  0x85   :  { %v9325_v23 = vld [vmem:[#allocation11 + $0x684] sm:$0xf]  ;;  %2642 = vmatpush.bf16.msra.mxu0 %v6743_v16  ;;  %v6711_v28 = vor.u32 %v9261_v20, %v6708_v22  ;;  %v7131_v16 = vor.u32 %v9370_v8, %v7130_v6  ;;  %v7098_v20 = vld [vmem:[#allocation11 + $0x788] sm:$0xf]  ;;  %v7003_v6 = vor.u32 %v9338_v63, %v7002_v62 }
  0x86   :  { %v6964_v24 = vld [vmem:[#allocation11 + $0x6a0] sm:$0xf0]  ;;  %2680 = vmatpush.bf16.msrb.mxu2 %v7543_v15  ;;  %v9170_v15 = vld [vmem:[#allocation11 + $0x1a4] sm:$0xf0] }
  0x87   :  { %v9389_v25 = vld [vmem:[#allocation11 + $0x884] sm:$0xf]  ;;  %2655 = vmatpush.bf16.msra.mxu1 %v6999_v17  ;;  %v6967_v29 = vor.u32 %v9325_v23, %v6964_v24  ;;  %v6842_v17 = vld [vmem:[#allocation11 + $0x588] sm:$0xf]  ;;  %v6331_v22 = vor.u32 %v9170_v15, %v6330_v14 }
  0x88   :  { %v7220_v26 = vld [vmem:[#allocation11 + $0x8a0] sm:$0xf0]  ;;  %v6586_v23 = vld [vmem:[#allocation11 + $0x388] sm:$0xf] }
  0x89   :  { %v9453_v31 = vld [vmem:[#allocation11 + $0xa84] sm:$0xf]  ;;  %v7223_v34 = vor.u32 %v9389_v25, %v7220_v26  ;;  %2643 = vmatpush.bf16.msra.mxu0 %v6711_v28  ;;  %v9234_v24 = vld [vmem:[#allocation11 + $0x3a4] sm:$0xf0]  ;;  %v7099_v28 = vor.u32 %v9362_v21, %v7098_v20 }
  0x8a   :  { %v7476_v32 = vld [vmem:[#allocation11 + $0xaa0] sm:$0xf0]  ;;  %2681 = vmatpush.bf16.msrb.mxu2 %v7511_v27  ;;  %v6298_v25 = vld [vmem:[#allocation11 + $0x148] sm:$0xf]  ;;  %v6843_v27 = vor.u32 %v9298_v18, %v6842_v17 }
  0x8b   :  { %v9253_v33 = vld [vmem:[#allocation11 + $0x444] sm:$0xf]  ;;  %v7479_v41 = vor.u32 %v9453_v31, %v7476_v32  ;;  %2656 = vmatpush.bf16.msra.mxu1 %v6967_v29  ;;  %2669 = vmatpush.bf16.msra.mxu3 %v7223_v34  ;;  %v9162_v26 = vld [vmem:[#allocation11 + $0x164] sm:$0xf0]  ;;  %v6587_v32 = vor.u32 %v9234_v24, %v6586_v23 }
  0x8c   :  { %v6676_v36 = vld [vmem:[#allocation11 + $0x460] sm:$0xf0]  ;;  %v6810_v29 = vld [vmem:[#allocation11 + $0x548] sm:$0xf] }
  0x8d   :  { %v9317_v37 = vld [vmem:[#allocation11 + $0x644] sm:$0xf]  ;;  %v6679_v44 = vor.u32 %v9253_v33, %v6676_v36  ;;  %v9290_v31 = vld [vmem:[#allocation11 + $0x564] sm:$0xf0]  ;;  %v6299_v36 = vor.u32 %v9162_v26, %v6298_v25 }
  0x8e   :  { %v6932_v38 = vld [vmem:[#allocation11 + $0x660] sm:$0xf0]  ;;  %2682 = vmatpush.bf16.msrb.mxu2 %v7479_v41  ;;  %v7066_v33 = vld [vmem:[#allocation11 + $0x748] sm:$0xf]  ;;  %v6811_v41 = vor.u32 %v9290_v31, %v6810_v29 }
  0x8f   :  { %v9381_v39 = vld [vmem:[#allocation11 + $0x844] sm:$0xf]  ;;  %v6935_v46 = vor.u32 %v9317_v37, %v6932_v38  ;;  %2644 = vmatpush.bf16.msra.mxu0 %v6679_v44  ;;  %v9354_v34 = vld [vmem:[#allocation11 + $0x764] sm:$0xf0] }
  0x90   :  { %v7188_v40 = vld [vmem:[#allocation11 + $0x860] sm:$0xf0]  ;;  %v6554_v37 = vld [vmem:[#allocation11 + $0x348] sm:$0xf] }
  0x91   :  { %v9445_v42 = vld [vmem:[#allocation11 + $0xa44] sm:$0xf]  ;;  %v7191_v50 = vor.u32 %v9381_v39, %v7188_v40  ;;  %2657 = vmatpush.bf16.msra.mxu1 %v6935_v46  ;;  %v9226_v38 = vld [vmem:[#allocation11 + $0x364] sm:$0xf0] }
  0x92   :  { %v7444_v43 = vld [vmem:[#allocation11 + $0xa60] sm:$0xf0]  ;;  %v6266_v39 = vld [vmem:[#allocation11 + $0x108] sm:$0xf]  ;;  %v6555_v46 = vor.u32 %v9226_v38, %v6554_v37 }
  0x93   :  { %v9245_v47 = vld [vmem:[#allocation11 + $0x404] sm:$0xf]  ;;  %v7447_v60 = vor.u32 %v9445_v42, %v7444_v43  ;;  %2670 = vmatpush.bf16.msra.mxu3 %v7191_v50  ;;  %v9154_v40 = vld [vmem:[#allocation11 + $0x124] sm:$0xf0]  ;;  %v7067_v42 = vor.u32 %v9354_v34, %v7066_v33 }
  0x94   :  { %v6644_v48 = vld [vmem:[#allocation11 + $0x420] sm:$0xf0]  ;;  %v6778_v43 = vld [vmem:[#allocation11 + $0x508] sm:$0xf] }
  0x95   :  { %v9309_v49 = vld [vmem:[#allocation11 + $0x604] sm:$0xf]  ;;  %v6647_v0 = vor.u32 %v9245_v47, %v6644_v48  ;;  %2683 = vmatpush.bf16.msrb.mxu2 %v7447_v60  ;;  %v9282_v44 = vld [vmem:[#allocation11 + $0x524] sm:$0xf0] }
  0x96   :  { %v6900_v52 = vld [vmem:[#allocation11 + $0x620] sm:$0xf0]  ;;  %v7034_v47 = vld [vmem:[#allocation11 + $0x708] sm:$0xf]  ;;  %v6779_v56 = vor.u32 %v9282_v44, %v6778_v43 }
  0x97   :  { %v9373_v53 = vld [vmem:[#allocation11 + $0x804] sm:$0xf]  ;;  %v6903_v1 = vor.u32 %v9309_v49, %v6900_v52  ;;  %2645 = vmatpush.bf16.msra.mxu0 %v6647_v0  ;;  %v9346_v48 = vld [vmem:[#allocation11 + $0x724] sm:$0xf0]  ;;  %v6267_v49 = vor.u32 %v9154_v40, %v6266_v39 }
  0x98   :  { %v7156_v54 = vld [vmem:[#allocation11 + $0x820] sm:$0xf0]  ;;  %v6522_v50 = vld [vmem:[#allocation11 + $0x308] sm:$0xf]  ;;  %v7035_v58 = vor.u32 %v9346_v48, %v7034_v47  ;;  %v9174_v47 = vld [vmem:[#allocation11 + $0x1cc] sm:$0xf] }
  0x99   :  { %v9501_v59 = vld [vmem:[#allocation11 + $0xc04] sm:$0xf]  ;;  %v7159_v4 = vor.u32 %v9373_v53, %v7156_v54  ;;  %2658 = vmatpush.bf16.msra.mxu1 %v6903_v1  ;;  %v9218_v52 = vld [vmem:[#allocation11 + $0x324] sm:$0xf0]  ;;  %v6364_v48 = vld [vmem:[#allocation11 + $0x1e8] sm:$0xf0] }
  0x9a   :  { %v7668_v61 = vld [vmem:[#allocation11 + $0xc20] sm:$0xf0]  ;;  %2646 = vmatmul.bf16.vlgmr.msra.gmra.mxu0 %v10173_v51  ;;  %v6234_v53 = vld [vmem:[#allocation11 + $0xc8] sm:$0xf]  ;;  %v6367_v63 = vor.u32 %v9174_v47, %v6364_v48 }
  0x9b   :  { %v9437_v2 = vld [vmem:[#allocation11 + $0xa04] sm:$0xf]  ;;  %v7671_v9 = vor.u32 %v9501_v59, %v7668_v61  ;;  %2671 = vmatpush.bf16.msra.mxu3 %v7159_v4  ;;  %2729 = vmatpush.bf16.msrb.mxu0 %v6875_v12  ;;  %v9146_v54 = vld [vmem:[#allocation11 + $0xe4] sm:$0xf0]  ;;  %v6523_v61 = vor.u32 %v9218_v52, %v6522_v50 }
  0x9c   :  { %v7412_v3 = vld [vmem:[#allocation11 + $0xa20] sm:$0xf0]  ;;  %2659 = vmatmul.bf16.vlgmr.msra.gmra.mxu1 %v10177_v57  ;;  %v6746_v59 = vld [vmem:[#allocation11 + $0x4c8] sm:$0xf]  ;;  %v6235_v0 = vor.u32 %v9146_v54, %v6234_v53 }
  0x9d   :  { %v7415_v13 = vor.u32 %v9437_v2, %v7412_v3  ;;  %2703 = vmatpush.bf16.msrb.mxu1 %v6363_v5  ;;  %v9274_v60 = vld [vmem:[#allocation11 + $0x4e4] sm:$0xf0] }
  0x9e   :  { %2672 = vmatmul.bf16.vlgmr.msra.gmra.mxu3 %v10189_v30  ;;  %v6490_v1 = vld [vmem:[#allocation11 + $0x2c8] sm:$0xf]  ;;  %v6747_v5 = vor.u32 %v9274_v60, %v6746_v59  ;;  %v9238_v60 = vld [vmem:[#allocation11 + $0x3cc] sm:$0xf] }
  0x9f   :  { %2697 = vmatpush.bf16.msrb.mxu3 %v7671_v9  ;;  %2684 = vmatpush.bf16.msrb.mxu2 %v7415_v13  ;;  %v9210_v2 = vld [vmem:[#allocation11 + $0x2e4] sm:$0xf0] }
  0xa0   :  { %2730 = vmatpush.bf16.msrb.mxu0 %v6843_v27  ;;  %v6202_v3 = vld [vmem:[#allocation11 + $0x88] sm:$0xf]  ;;  %v6491_v10 = vor.u32 %v9210_v2, %v6490_v1  ;;  %v9166_v1 = vld [vmem:[#allocation11 + $0x18c] sm:$0xf] }
  0xa1   :  { %2704 = vmatpush.bf16.msrb.mxu1 %v6331_v22  ;;  %v9138_v4 = vld [vmem:[#allocation11 + $0xa4] sm:$0xf0]  ;;  %v6332_v2 = vld [vmem:[#allocation11 + $0x1a8] sm:$0xf0] }
  0xa2   :  { %2685 = vmatmul.bf16.vlgmr.msrb.gmra.mxu2 %v10191_v35  ;;  %v6714_v8 = vld [vmem:[#allocation11 + $0x488] sm:$0xf]  ;;  %v6203_v13 = vor.u32 %v9138_v4, %v6202_v3 }
  0xa3   :  { %2742 = vmatpush.bf16.msra.mxu2 %v7131_v16  ;;  %2716 = vmatpush.bf16.msra.mxu3 %v6619_v19  ;;  %v9266_v9 = vld [vmem:[#allocation11 + $0x4a4] sm:$0xf0] }
  0xa4   :  { %2731 = vmatpush.bf16.msrb.mxu0 %v6811_v41  ;;  %v6970_v11 = vld [vmem:[#allocation11 + $0x688] sm:$0xf]  ;;  %v6715_v18 = vor.u32 %v9266_v9, %v6714_v8 }
  0xa5   :  { %2705 = vmatpush.bf16.msrb.mxu1 %v6299_v36  ;;  %v9330_v12 = vld [vmem:[#allocation11 + $0x6a4] sm:$0xf0] }
  0xa6   :  { %v6458_v14 = vld [vmem:[#allocation11 + $0x288] sm:$0xf]  ;;  %v6971_v19 = vor.u32 %v9330_v12, %v6970_v11  ;;  %v6588_v11 = vld [vmem:[#allocation11 + $0x3a8] sm:$0xf0]  ;;  %v6335_v12 = vor.u32 %v9166_v1, %v6332_v2 }
  0xa7   :  { %2743 = vmatpush.bf16.msra.mxu2 %v7099_v28  ;;  %2717 = vmatpush.bf16.msra.mxu3 %v6587_v32  ;;  %v9202_v15 = vld [vmem:[#allocation11 + $0x2a4] sm:$0xf0]  ;;  %v6460_v1 = vld [vmem:[#allocation11 + $0x2a8] sm:$0xf0] }
  0xa8   :  { %2732 = vmatpush.bf16.msrb.mxu0 %v6779_v56  ;;  %v6170_v16 = vld [vmem:[#allocation11 + $0x48] sm:$0xf]  ;;  %v6459_v22 = vor.u32 %v9202_v15, %v6458_v14  ;;  %v9158_v14 = vld [vmem:[#allocation11 + $0x14c] sm:$0xf] }
  0xa9   :  { %2706 = vmatpush.bf16.msrb.mxu1 %v6267_v49  ;;  %v9130_v17 = vld [vmem:[#allocation11 + $0x64] sm:$0xf0]  ;;  %v6300_v15 = vld [vmem:[#allocation11 + $0x168] sm:$0xf0] }
  0xaa   :  { %v6682_v20 = vld [vmem:[#allocation11 + $0x448] sm:$0xf]  ;;  %v6171_v25 = vor.u32 %v9130_v17, %v6170_v16 }
  0xab   :  { %2744 = vmatpush.bf16.msra.mxu2 %v7067_v42  ;;  %2718 = vmatpush.bf16.msra.mxu3 %v6555_v46  ;;  %v9258_v21 = vld [vmem:[#allocation11 + $0x464] sm:$0xf0] }
  0xac   :  { %2733 = vmatpush.bf16.msrb.mxu0 %v6747_v5  ;;  %v6938_v23 = vld [vmem:[#allocation11 + $0x648] sm:$0xf]  ;;  %v6683_v31 = vor.u32 %v9258_v21, %v6682_v20 }
  0xad   :  { %2707 = vmatpush.bf16.msrb.mxu1 %v6235_v0  ;;  %v9322_v24 = vld [vmem:[#allocation11 + $0x664] sm:$0xf0] }
  0xae   :  { %7697 = vmatmul.msk.bf16.vlgmr.msrb.gmra.mxu3 %vm2517_vm0, %v10185_v45  ;;  %v6426_v26 = vld [vmem:[#allocation11 + $0x248] sm:$0xf]  ;;  %v6939_v34 = vor.u32 %v9322_v24, %v6938_v23  ;;  %v6556_v23 = vld [vmem:[#allocation11 + $0x368] sm:$0xf0]  ;;  %v6303_v24 = vor.u32 %v9158_v14, %v6300_v15 }
  0xaf   :  { %2745 = vmatpush.bf16.msra.mxu2 %v7035_v58  ;;  %2719 = vmatpush.bf16.msra.mxu3 %v6523_v61  ;;  %v9194_v27 = vld [vmem:[#allocation11 + $0x264] sm:$0xf0]  ;;  %v6620_v61 = vld [vmem:[#allocation11 + $0x3e8] sm:$0xf0] }
  0xb0   :  { %v6138_v28 = vld [vmem:[#allocation11 + $0x8] sm:$0xf]  ;;  %2734 = vmatpush.bf16.msrb.mxu0 %v6715_v18  ;;  %v6427_v40 = vor.u32 %v9194_v27, %v6426_v26  ;;  %v6623_v8 = vor.u32 %v9238_v60, %v6620_v61  ;;  %v9150_v26 = vld [vmem:[#allocation11 + $0x10c] sm:$0xf] }
  0xb1   :  { %2708 = vmatpush.bf16.msrb.mxu1 %v6203_v13  ;;  %v9122_v29 = vld [vmem:[#allocation11 + $0x24] sm:$0xf0]  ;;  %v6268_v27 = vld [vmem:[#allocation11 + $0x128] sm:$0xf0] }
  0xb2   :  { %v7386_v32 = vld [vmem:[#allocation11 + $0x9c8] sm:$0xf]  ;;  %v6139_v44 = vor.u32 %v9122_v29, %v6138_v28  ;;  %v6428_v14 = vld [vmem:[#allocation11 + $0x268] sm:$0xf0] }
  0xb3   :  { %2746 = vmatpush.bf16.msra.mxu2 %v7003_v6  ;;  %2720 = vmatpush.bf16.msra.mxu3 %v6491_v10  ;;  %v9434_v33 = vld [vmem:[#allocation11 + $0x9e4] sm:$0xf0]  ;;  %v9230_v10 = vld [vmem:[#allocation11 + $0x38c] sm:$0xf] }
  0xb4   :  { %v6394_v36 = vld [vmem:[#allocation11 + $0x208] sm:$0xf]  ;;  %2735 = vmatpush.bf16.msrb.mxu0 %v6683_v31  ;;  %v7387_v49 = vor.u32 %v9434_v33, %v7386_v32  ;;  %v6591_v20 = vor.u32 %v9230_v10, %v6588_v11 }
  0xb5   :  { %v6906_v37 = vld [vmem:[#allocation11 + $0x608] sm:$0xf]  ;;  %2709 = vmatpush.bf16.msrb.mxu1 %v6171_v25 }
  0xb6   :  { %v6650_v38 = vld [vmem:[#allocation11 + $0x408] sm:$0xf] }
  0xb7   :  { %2747 = vmatpush.bf16.msra.mxu2 %v6971_v19  ;;  %v9250_v39 = vld [vmem:[#allocation11 + $0x424] sm:$0xf0]  ;;  %2721 = vmatpush.bf16.msra.mxu3 %v6459_v22  ;;  %v9222_v22 = vld [vmem:[#allocation11 + $0x34c] sm:$0xf] }
  0xb8   :  { %v9314_v41 = vld [vmem:[#allocation11 + $0x624] sm:$0xf0]  ;;  %v6651_v53 = vor.u32 %v9250_v39, %v6650_v38  ;;  %v6559_v33 = vor.u32 %v9222_v22, %v6556_v23  ;;  %v6271_v38 = vor.u32 %v9150_v26, %v6268_v27  ;;  %v7132_v26 = vld [vmem:[#allocation11 + $0x7e8] sm:$0xf0] }
  0xb9   :  { %v7674_v42 = vld [vmem:[#allocation11 + $0xc08] sm:$0xf]  ;;  %v6907_v56 = vor.u32 %v9314_v41, %v6906_v37  ;;  %2710 = vmatpush.bf16.msrb.mxu1 %v6139_v44  ;;  %v6524_v37 = vld [vmem:[#allocation11 + $0x328] sm:$0xf0] }
  0xba   :  { %v9506_v43 = vld [vmem:[#allocation11 + $0xc24] sm:$0xf0]  ;;  %2736 = vmatpush.bf16.msrb.mxu0 %v6651_v53  ;;  %v6236_v41 = vld [vmem:[#allocation11 + $0xe8] sm:$0xf0] }
  0xbb   :  { %v9186_v46 = vld [vmem:[#allocation11 + $0x224] sm:$0xf0]  ;;  %2748 = vmatpush.bf16.msra.mxu2 %v6939_v34  ;;  %v7675_v59 = vor.u32 %v9506_v43, %v7674_v42  ;;  %2722 = vmatpush.bf16.msra.mxu3 %v6427_v40  ;;  %v9142_v40 = vld [vmem:[#allocation11 + $0xcc] sm:$0xf] }
  0xbc   :  { %v7642_v50 = vld [vmem:[#allocation11 + $0xbc8] sm:$0xf]  ;;  %v6395_v62 = vor.u32 %v9186_v46, %v6394_v36  ;;  %2711 = vmatmul.bf16.vlgmr.msrb.gmra.mxu1 %v10175_v55  ;;  %v9214_v36 = vld [vmem:[#allocation11 + $0x30c] sm:$0xf] }
  0xbd   :  { %v9498_v52 = vld [vmem:[#allocation11 + $0xbe4] sm:$0xf0]  ;;  %2755 = vmatpush.bf16.msra.mxu1 %v7387_v49  ;;  %2737 = vmatmul.bf16.vlgmr.msrb.gmra.mxu0 %v10173_v51  ;;  %v6527_v47 = vor.u32 %v9214_v36, %v6524_v37  ;;  %v9206_v49 = vld [vmem:[#allocation11 + $0x2cc] sm:$0xf] }
  0xbe   :  { %v7354_v54 = vld [vmem:[#allocation11 + $0x988] sm:$0xf]  ;;  %v7643_v0 = vor.u32 %v9498_v52, %v7642_v50  ;;  %2788 = vmatpush.bf16.msra.mxu0 %v7675_v59  ;;  %v6492_v50 = vld [vmem:[#allocation11 + $0x2e8] sm:$0xf0]  ;;  %v6239_v52 = vor.u32 %v9142_v40, %v6236_v41 }
  0xbf   :  { %v9426_v58 = vld [vmem:[#allocation11 + $0x9a4] sm:$0xf0]  ;;  %2749 = vmatpush.bf16.msra.mxu2 %v6907_v56  ;;  %2723 = vmatpush.bf16.msra.mxu3 %v6395_v62  ;;  %v6204_v56 = vld [vmem:[#allocation11 + $0xa8] sm:$0xf0]  ;;  %v6495_v62 = vor.u32 %v9206_v49, %v6492_v50 }
  0xc0   :  { %v7355_v3 = vor.u32 %v9426_v58, %v7354_v54  ;;  %v7610_v4 = vld [vmem:[#allocation11 + $0xb88] sm:$0xf]  ;;  %v9134_v54 = vld [vmem:[#allocation11 + $0x8c] sm:$0xf] }
  0xc1   :  { %v9490_v5 = vld [vmem:[#allocation11 + $0xba4] sm:$0xf0]  ;;  %v6207_v2 = vor.u32 %v9134_v54, %v6204_v56  ;;  %v6396_v36 = vld [vmem:[#allocation11 + $0x228] sm:$0xf0] }
  0xc2   :  { %v7322_v6 = vld [vmem:[#allocation11 + $0x948] sm:$0xf]  ;;  %v7611_v13 = vor.u32 %v9490_v5, %v7610_v4  ;;  %2756 = vmatpush.bf16.msra.mxu1 %v7355_v3  ;;  %2807 = vmatpush.bf16.msrb.mxu0 %v6623_v8  ;;  %v9126_v4 = vld [vmem:[#allocation11 + $0x4c] sm:$0xf] }
  0xc3   :  { %v9418_v9 = vld [vmem:[#allocation11 + $0x964] sm:$0xf0]  ;;  %2794 = vmatpush.bf16.msrb.mxu2 %v6367_v63  ;;  %2768 = vmatpush.bf16.msrb.mxu3 %v7643_v0  ;;  %v9198_v0 = vld [vmem:[#allocation11 + $0x28c] sm:$0xf] }
  0xc4   :  { %v7323_v16 = vor.u32 %v9418_v9, %v7322_v6  ;;  %v7578_v17 = vld [vmem:[#allocation11 + $0xb48] sm:$0xf]  ;;  %2724 = vmatmul.bf16.vlgmr.msra.gmra.mxu3 %v10181_v7  ;;  %2750 = vmatmul.bf16.vlgmr.msra.gmra.mxu2 %v10177_v57  ;;  %v6172_v5 = vld [vmem:[#allocation11 + $0x68] sm:$0xf0]  ;;  %v6463_v11 = vor.u32 %v9198_v0, %v6460_v1 }
  0xc5   :  { %v9482_v18 = vld [vmem:[#allocation11 + $0xb64] sm:$0xf0]  ;;  %v6175_v15 = vor.u32 %v9126_v4, %v6172_v5  ;;  %v9286_v49 = vld [vmem:[#allocation11 + $0x54c] sm:$0xf] }
  0xc6   :  { %v7290_v19 = vld [vmem:[#allocation11 + $0x908] sm:$0xf]  ;;  %v7579_v25 = vor.u32 %v9482_v18, %v7578_v17  ;;  %2757 = vmatpush.bf16.msra.mxu1 %v7323_v16  ;;  %2808 = vmatpush.bf16.msrb.mxu0 %v6591_v20  ;;  %v9302_v16 = vld [vmem:[#allocation11 + $0x5cc] sm:$0xf] }
  0xc7   :  { %v9410_v21 = vld [vmem:[#allocation11 + $0x924] sm:$0xf0]  ;;  %2795 = vmatpush.bf16.msrb.mxu2 %v6335_v12  ;;  %2769 = vmatpush.bf16.msrb.mxu3 %v7611_v13  ;;  %v9190_v13 = vld [vmem:[#allocation11 + $0x24c] sm:$0xf] }
  0xc8   :  { %v7291_v28 = vor.u32 %v9410_v21, %v7290_v19  ;;  %v7546_v29 = vld [vmem:[#allocation11 + $0xb08] sm:$0xf]  ;;  %v6876_v17 = vld [vmem:[#allocation11 + $0x5e8] sm:$0xf0] }
  0xc9   :  { %v9474_v31 = vld [vmem:[#allocation11 + $0xb24] sm:$0xf0]  ;;  %v9118_v20 = vld [vmem:[#allocation11 + $0xc] sm:$0xf]  ;;  %v6879_v27 = vor.u32 %v9302_v16, %v6876_v17 }
  0xca   :  { %v7258_v32 = vld [vmem:[#allocation11 + $0x8c8] sm:$0xf]  ;;  %v7547_v39 = vor.u32 %v9474_v31, %v7546_v29  ;;  %2758 = vmatpush.bf16.msra.mxu1 %v7291_v28  ;;  %2809 = vmatpush.bf16.msrb.mxu0 %v6559_v33  ;;  %v6140_v21 = vld [vmem:[#allocation11 + $0x28] sm:$0xf0] }
  0xcb   :  { %v9402_v34 = vld [vmem:[#allocation11 + $0x8e4] sm:$0xf0]  ;;  %2796 = vmatpush.bf16.msrb.mxu2 %v6303_v24  ;;  %2770 = vmatpush.bf16.msrb.mxu3 %v7579_v25  ;;  %v6431_v24 = vor.u32 %v9190_v13, %v6428_v14  ;;  %v9366_v25 = vld [vmem:[#allocation11 + $0x7cc] sm:$0xf] }
  0xcc   :  { %v7259_v42 = vor.u32 %v9402_v34, %v7258_v32  ;;  %v7514_v43 = vld [vmem:[#allocation11 + $0xac8] sm:$0xf]  ;;  %v9430_v28 = vld [vmem:[#allocation11 + $0x9cc] sm:$0xf]  ;;  %v6143_v32 = vor.u32 %v9118_v20, %v6140_v21  ;;  %v7135_v40 = vor.u32 %v9366_v25, %v7132_v26 }
  0xcd   :  { %v9466_v44 = vld [vmem:[#allocation11 + $0xae4] sm:$0xf0]  ;;  %7698 = vmatmul.msk.bf16.vlgmr.msra.gmra.mxu0 %vm2517_vm0, %v10185_v45  ;;  %v7388_v29 = vld [vmem:[#allocation11 + $0x9e8] sm:$0xf0] }
  0xce   :  { %v7226_v46 = vld [vmem:[#allocation11 + $0x888] sm:$0xf]  ;;  %v7515_v53 = vor.u32 %v9466_v44, %v7514_v43  ;;  %2759 = vmatpush.bf16.msra.mxu1 %v7259_v42  ;;  %2810 = vmatpush.bf16.msrb.mxu0 %v6527_v47  ;;  %v9294_v31 = vld [vmem:[#allocation11 + $0x58c] sm:$0xf]  ;;  %v7391_v41 = vor.u32 %v9430_v28, %v7388_v29 }
  0xcf   :  { %v9394_v48 = vld [vmem:[#allocation11 + $0x8a4] sm:$0xf0]  ;;  %2797 = vmatpush.bf16.msrb.mxu2 %v6271_v38  ;;  %2771 = vmatpush.bf16.msrb.mxu3 %v7547_v39  ;;  %v6844_v33 = vld [vmem:[#allocation11 + $0x5a8] sm:$0xf0] }
  0xd0   :  { %v7227_v58 = vor.u32 %v9394_v48, %v7226_v46  ;;  %v7482_v59 = vld [vmem:[#allocation11 + $0xa88] sm:$0xf]  ;;  %v9182_v34 = vld [vmem:[#allocation11 + $0x20c] sm:$0xf]  ;;  %v6847_v43 = vor.u32 %v9294_v31, %v6844_v33  ;;  %v2543_v33 = vpop.f32.mrf.mxu1 }
  0xd1   :  { %v9458_v60 = vld [vmem:[#allocation11 + $0xaa4] sm:$0xf0]  ;;  %v9494_v38 = vld [vmem:[#allocation11 + $0xbcc] sm:$0xf]  ;;  %v6399_v44 = vor.u32 %v9182_v34, %v6396_v36 }
  0xd2   :  { %v7194_v61 = vld [vmem:[#allocation11 + $0x848] sm:$0xf]  ;;  %v7483_v3 = vor.u32 %v9458_v60, %v7482_v59  ;;  %2760 = vmatpush.bf16.msra.mxu1 %v7227_v58  ;;  %2811 = vmatpush.bf16.msrb.mxu0 %v6495_v62  ;;  %v7644_v39 = vld [vmem:[#allocation11 + $0xbe8] sm:$0xf0]  ;;  %v10210_v60 = vld [vmem:[#allocation13] sm:$0xff] }
  0xd3   :  { %v9386_v63 = vld [vmem:[#allocation11 + $0x864] sm:$0xf0]  ;;  %2798 = vmatpush.bf16.msrb.mxu2 %v6239_v52  ;;  %2772 = vmatpush.bf16.msrb.mxu3 %v7515_v53  ;;  %v9358_v42 = vld [vmem:[#allocation11 + $0x78c] sm:$0xf]  ;;  %v7647_v52 = vor.u32 %v9494_v38, %v7644_v39 }
  0xd4   :  { %v7195_v6 = vor.u32 %v9386_v63, %v7194_v61  ;;  %v7450_v8 = vld [vmem:[#allocation11 + $0xa48] sm:$0xf]  ;;  %v7100_v46 = vld [vmem:[#allocation11 + $0x7a8] sm:$0xf0]  ;;  %v2556_v38 = vpop.f32.mrf.mxu2 }
  0xd5   :  { %v9450_v9 = vld [vmem:[#allocation11 + $0xa64] sm:$0xf0]  ;;  %v9422_v47 = vld [vmem:[#allocation11 + $0x98c] sm:$0xf]  ;;  %v7103_v56 = vor.u32 %v9358_v42, %v7100_v46 }
  0xd6   :  { %v7162_v10 = vld [vmem:[#allocation11 + $0x808] sm:$0xf]  ;;  %v7451_v18 = vor.u32 %v9450_v9, %v7450_v8  ;;  %2761 = vmatpush.bf16.msra.mxu1 %v7195_v6  ;;  %2812 = vmatpush.bf16.msrb.mxu0 %v6463_v11  ;;  %v7356_v48 = vld [vmem:[#allocation11 + $0x9a8] sm:$0xf0]  ;;  %v541_v6 = vperm.slane %v10210_v60, 0 }
  0xd7   :  { %v9378_v12 = vld [vmem:[#allocation11 + $0x824] sm:$0xf0]  ;;  %2799 = vmatpush.bf16.msrb.mxu2 %v6207_v2  ;;  %2773 = vmatpush.bf16.msrb.mxu3 %v7483_v3  ;;  %v6812_v50 = vld [vmem:[#allocation11 + $0x568] sm:$0xf0]  ;;  %v7359_v58 = vor.u32 %v9422_v47, %v7356_v48 }
  0xd8   :  { %v7418_v19 = vld [vmem:[#allocation11 + $0xa08] sm:$0xf]  ;;  %v7163_v22 = vor.u32 %v9378_v12, %v7162_v10  ;;  %v9486_v53 = vld [vmem:[#allocation11 + $0xb8c] sm:$0xf]  ;;  %v6815_v61 = vor.u32 %v9286_v49, %v6812_v50 }
  0xd9   :  { %v9442_v23 = vld [vmem:[#allocation11 + $0xa24] sm:$0xf0]  ;;  %v7612_v54 = vld [vmem:[#allocation11 + $0xba8] sm:$0xf0] }
  0xda   :  { %v7419_v37 = vor.u32 %v9442_v23, %v7418_v19  ;;  %2762 = vmatpush.bf16.msra.mxu1 %v7163_v22  ;;  %2813 = vmatpush.bf16.msrb.mxu0 %v6431_v24  ;;  %v9350_v59 = vld [vmem:[#allocation11 + $0x74c] sm:$0xf]  ;;  %v7615_v3 = vor.u32 %v9486_v53, %v7612_v54 }
  0xdb   :  { %2800 = vmatpush.bf16.msrb.mxu2 %v6175_v15  ;;  %2774 = vmatpush.bf16.msrb.mxu3 %v7451_v18  ;;  %v7068_v62 = vld [vmem:[#allocation11 + $0x768] sm:$0xf0]  ;;  %v2530_v18 = vpop.f32.mrf.mxu0 }
  0xdc   :  { %v9414_v63 = vld [vmem:[#allocation11 + $0x94c] sm:$0xf]  ;;  %v7071_v8 = vor.u32 %v9350_v59, %v7068_v62  ;;  %v2531_v19 = vadd.f32 %v2530_v18, %v541_v6 }
  0xdd   :  { %2763 = vmatmul.bf16.vlgmr.msra.gmra.mxu1 %v10189_v30  ;;  %v7324_v0 = vld [vmem:[#allocation11 + $0x968] sm:$0xf0]  ;;  %v2569_v48 = vpop.f32.mrf.mxu3 }
  0xde   :  { %2820 = vmatpush.bf16.msrb.mxu1 %v6879_v27  ;;  %2814 = vmatpush.bf16.msrb.mxu0 %v6399_v44  ;;  %v9278_v1 = vld [vmem:[#allocation11 + $0x50c] sm:$0xf]  ;;  %v7327_v9 = vor.u32 %v9414_v63, %v7324_v0  ;;  %v2544_v34 = vadd.f32 %v2543_v33, %v2531_v19 }
  0xdf   :  { %2801 = vmatpush.bf16.msrb.mxu2 %v6143_v32  ;;  %2775 = vmatpush.bf16.msrb.mxu3 %v7419_v37  ;;  %v6780_v2 = vld [vmem:[#allocation11 + $0x528] sm:$0xf0] }
  0xe0   :  { %v9478_v4 = vld [vmem:[#allocation11 + $0xb4c] sm:$0xf]  ;;  %v6783_v11 = vor.u32 %v9278_v1, %v6780_v2  ;;  %v2557_v47 = vadd.f32 %v2556_v38, %v2544_v34 }
  0xe1   :  { %v7580_v5 = vld [vmem:[#allocation11 + $0xb68] sm:$0xf0]  ;;  %2815 = vmatmul.bf16.vlgmr.msrb.gmra.mxu0 %v10181_v7 }
  0xe2   :  { %2821 = vmatpush.bf16.msrb.mxu1 %v6847_v43  ;;  %2776 = vmatmul.bf16.vlgmr.msrb.gmra.mxu3 %v10191_v35  ;;  %v9342_v10 = vld [vmem:[#allocation11 + $0x70c] sm:$0xf]  ;;  %v7583_v17 = vor.u32 %v9478_v4, %v7580_v5  ;;  %v10216_v54 = vadd.f32 %v2569_v48, %v2557_v47  ;;  %v9299_v47 = vld [vmem:[#allocation11 + $0x5ac] sm:$0xf0] }
  0xe3   :  { %2833 = vmatpush.bf16.msra.mxu3 %v7135_v40  ;;  %2846 = vmatpush.bf16.msra.mxu2 %v7391_v41  ;;  %v7036_v12 = vld [vmem:[#allocation11 + $0x728] sm:$0xf0]  ;;  %v2532_v53 = vpop.f32.mrf.mxu0 }
  0xe4   :  { %2859 = vmatpush.bf16.msra.mxu0 %v7647_v52  ;;  %2802 = vmatmul.bf16.vlgmr.msrb.gmra.mxu2 %v10175_v55  ;;  %v9406_v13 = vld [vmem:[#allocation11 + $0x90c] sm:$0xf]  ;;  %v7039_v22 = vor.u32 %v9342_v10, %v7036_v12  ;;  %v2558_v12 = vpop.f32.mrf.mxu2  ;;  %v9363_v53 = vld [vmem:[#allocation11 + $0x7ac] sm:$0xf0] }
  0xe5   :  { %v7292_v14 = vld [vmem:[#allocation11 + $0x928] sm:$0xf0] }
  0xe6   :  { %2822 = vmatpush.bf16.msrb.mxu1 %v6815_v61  ;;  %v9270_v15 = vld [vmem:[#allocation11 + $0x4cc] sm:$0xf]  ;;  %v7295_v23 = vor.u32 %v9406_v13, %v7292_v14 }
  0xe7   :  { %2834 = vmatpush.bf16.msra.mxu3 %v7103_v56  ;;  %2847 = vmatpush.bf16.msra.mxu2 %v7359_v58  ;;  %v6748_v16 = vld [vmem:[#allocation11 + $0x4e8] sm:$0xf0] }
  0xe8   :  { %2860 = vmatpush.bf16.msra.mxu0 %v7615_v3  ;;  %v9470_v20 = vld [vmem:[#allocation11 + $0xb0c] sm:$0xf]  ;;  %v6751_v25 = vor.u32 %v9270_v15, %v6748_v16 }
  0xe9   :  { %v7548_v21 = vld [vmem:[#allocation11 + $0xb28] sm:$0xf0] }
  0xea   :  { %v9334_v24 = vld [vmem:[#allocation11 + $0x6cc] sm:$0xf]  ;;  %2823 = vmatpush.bf16.msrb.mxu1 %v6783_v11  ;;  %v7551_v32 = vor.u32 %v9470_v20, %v7548_v21  ;;  %v2571_v20 = vpop.f32.mrf.mxu3 }
  0xeb   :  { %2835 = vmatpush.bf16.msra.mxu3 %v7071_v8  ;;  %2848 = vmatpush.bf16.msra.mxu2 %v7327_v9  ;;  %v7004_v26 = vld [vmem:[#allocation11 + $0x6e8] sm:$0xf0]  ;;  %v2545_v8 = vpop.f32.mrf.mxu1 }
  0xec   :  { %v9398_v27 = vld [vmem:[#allocation11 + $0x8cc] sm:$0xf]  ;;  %2861 = vmatpush.bf16.msra.mxu0 %v7583_v17  ;;  %v7007_v39 = vor.u32 %v9334_v24, %v7004_v26  ;;  %v9179_v24 = vld [vmem:[#allocation11 + $0x1ec] sm:$0xf0] }
  0xed   :  { %v7260_v28 = vld [vmem:[#allocation11 + $0x8e8] sm:$0xf0]  ;;  %v9243_v26 = vld [vmem:[#allocation11 + $0x3ec] sm:$0xf0] }
  0xee   :  { %v9262_v29 = vld [vmem:[#allocation11 + $0x48c] sm:$0xf]  ;;  %v7263_v40 = vor.u32 %v9398_v27, %v7260_v28  ;;  %2824 = vmatpush.bf16.msrb.mxu1 %v6751_v25  ;;  %v6626_v25 = vld [vmem:[#allocation11 + $0x3d0] sm:$0xf] }
  0xef   :  { %v6716_v31 = vld [vmem:[#allocation11 + $0x4a8] sm:$0xf0]  ;;  %2836 = vmatpush.bf16.msra.mxu3 %v7039_v22  ;;  %2849 = vmatpush.bf16.msra.mxu2 %v7295_v23  ;;  %v6370_v23 = vld [vmem:[#allocation11 + $0x1d0] sm:$0xf]  ;;  %v6627_v38 = vor.u32 %v9243_v26, %v6626_v25 }
  0xf0   :  { %v9462_v36 = vld [vmem:[#allocation11 + $0xacc] sm:$0xf]  ;;  %v6719_v42 = vor.u32 %v9262_v29, %v6716_v31  ;;  %2862 = vmatpush.bf16.msra.mxu0 %v7551_v32  ;;  %v6882_v27 = vld [vmem:[#allocation11 + $0x5d0] sm:$0xf]  ;;  %v6371_v34 = vor.u32 %v9179_v24, %v6370_v23 }
  0xf1   :  { %v7516_v37 = vld [vmem:[#allocation11 + $0xae8] sm:$0xf0]  ;;  %v9307_v28 = vld [vmem:[#allocation11 + $0x5ec] sm:$0xf0]  ;;  %v2582_v12 = vpop.f32.mrf.mxu0 }
  0xf2   :  { %v9326_v41 = vld [vmem:[#allocation11 + $0x68c] sm:$0xf]  ;;  %v7519_v52 = vor.u32 %v9462_v36, %v7516_v37  ;;  %2825 = vmatpush.bf16.msrb.mxu1 %v6719_v42  ;;  %v7138_v36 = vld [vmem:[#allocation11 + $0x7d0] sm:$0xf] }
  0xf3   :  { %v6972_v43 = vld [vmem:[#allocation11 + $0x6a8] sm:$0xf0]  ;;  %2837 = vmatpush.bf16.msra.mxu3 %v7007_v39  ;;  %2850 = vmatpush.bf16.msra.mxu2 %v7263_v40  ;;  %v9371_v37 = vld [vmem:[#allocation11 + $0x7ec] sm:$0xf0]  ;;  %v6883_v39 = vor.u32 %v9307_v28, %v6882_v27 }
  0xf4   :  { %v9390_v44 = vld [vmem:[#allocation11 + $0x88c] sm:$0xf]  ;;  %v6975_v59 = vor.u32 %v9326_v41, %v6972_v43  ;;  %2863 = vmatpush.bf16.msra.mxu0 %v7519_v52  ;;  %v6338_v40 = vld [vmem:[#allocation11 + $0x190] sm:$0xf]  ;;  %v7139_v48 = vor.u32 %v9371_v37, %v7138_v36 }
  0xf5   :  { %v7228_v46 = vld [vmem:[#allocation11 + $0x8a8] sm:$0xf0]  ;;  %v9171_v41 = vld [vmem:[#allocation11 + $0x1ac] sm:$0xf0] }
  0xf6   :  { %v9254_v49 = vld [vmem:[#allocation11 + $0x44c] sm:$0xf]  ;;  %v7231_v61 = vor.u32 %v9390_v44, %v7228_v46  ;;  %v6594_v42 = vld [vmem:[#allocation11 + $0x390] sm:$0xf] }
  0xf7   :  { %v6684_v50 = vld [vmem:[#allocation11 + $0x468] sm:$0xf0]  ;;  %2838 = vmatpush.bf16.msra.mxu3 %v6975_v59  ;;  %v9235_v44 = vld [vmem:[#allocation11 + $0x3ac] sm:$0xf0] }
  0xf8   :  { %v9454_v56 = vld [vmem:[#allocation11 + $0xa8c] sm:$0xf]  ;;  %v6687_v63 = vor.u32 %v9254_v49, %v6684_v50  ;;  %2851 = vmatpush.bf16.msra.mxu2 %v7231_v61  ;;  %v6850_v46 = vld [vmem:[#allocation11 + $0x590] sm:$0xf]  ;;  %v2608_v49 = vpop.f32.mrf.mxu2  ;;  %v6339_v50 = vor.u32 %v9171_v41, %v6338_v40 }
  0xf9   :  { %v7484_v58 = vld [vmem:[#allocation11 + $0xaa8] sm:$0xf0]  ;;  %v7106_v52 = vld [vmem:[#allocation11 + $0x790] sm:$0xf] }
  0xfa   :  { %v9318_v62 = vld [vmem:[#allocation11 + $0x64c] sm:$0xf]  ;;  %v7487_v5 = vor.u32 %v9454_v56, %v7484_v58  ;;  %2826 = vmatpush.bf16.msrb.mxu1 %v6687_v63  ;;  %v6595_v56 = vor.u32 %v9235_v44, %v6594_v42  ;;  %v6851_v58 = vor.u32 %v9299_v47, %v6850_v46  ;;  %v6306_v59 = vld [vmem:[#allocation11 + $0x150] sm:$0xf] }
  0xfb   :  { %v6940_v0 = vld [vmem:[#allocation11 + $0x668] sm:$0xf0]  ;;  %v9163_v61 = vld [vmem:[#allocation11 + $0x16c] sm:$0xf0] }
  0xfc   :  { %v9382_v1 = vld [vmem:[#allocation11 + $0x84c] sm:$0xf]  ;;  %v6943_v13 = vor.u32 %v9318_v62, %v6940_v0  ;;  %2864 = vmatpush.bf16.msra.mxu0 %v7487_v5  ;;  %v6562_v62 = vld [vmem:[#allocation11 + $0x350] sm:$0xf] }
  0xfd   :  { %v7196_v2 = vld [vmem:[#allocation11 + $0x868] sm:$0xf0]  ;;  %v9227_v63 = vld [vmem:[#allocation11 + $0x36c] sm:$0xf0] }
  0xfe   :  { %v9246_v3 = vld [vmem:[#allocation11 + $0x40c] sm:$0xf]  ;;  %v7199_v14 = vor.u32 %v9382_v1, %v7196_v2  ;;  %2839 = vmatpush.bf16.msra.mxu3 %v6943_v13  ;;  %v6818_v0 = vld [vmem:[#allocation11 + $0x550] sm:$0xf]  ;;  %v7107_v2 = vor.u32 %v9363_v53, %v7106_v52 }
  0xff   :  { %v6652_v4 = vld [vmem:[#allocation11 + $0x428] sm:$0xf0]  ;;  %v9291_v1 = vld [vmem:[#allocation11 + $0x56c] sm:$0xf0] }
 0x100   :  { %v9502_v6 = vld [vmem:[#allocation11 + $0xc0c] sm:$0xf]  ;;  %v6655_v16 = vor.u32 %v9246_v3, %v6652_v4  ;;  %2852 = vmatpush.bf16.msra.mxu2 %v7199_v14  ;;  %v6307_v3 = vor.u32 %v9163_v61, %v6306_v59  ;;  %v7074_v4 = vld [vmem:[#allocation11 + $0x750] sm:$0xf]  ;;  %v6819_v8 = vor.u32 %v9291_v1, %v6818_v0 }
 0x101   :  { %v7676_v9 = vld [vmem:[#allocation11 + $0xc28] sm:$0xf0]  ;;  %v9355_v5 = vld [vmem:[#allocation11 + $0x76c] sm:$0xf0] }
 0x102   :  { %v9446_v10 = vld [vmem:[#allocation11 + $0xa4c] sm:$0xf]  ;;  %v7679_v21 = vor.u32 %v9502_v6, %v7676_v9  ;;  %2827 = vmatpush.bf16.msrb.mxu1 %v6655_v16  ;;  %v6563_v6 = vor.u32 %v9227_v63, %v6562_v62  ;;  %v6274_v9 = vld [vmem:[#allocation11 + $0x110] sm:$0xf]  ;;  %v2583_v16 = vadd.f32 %v2582_v12, %v10216_v54 }
 0x103   :  { %v7452_v11 = vld [vmem:[#allocation11 + $0xa68] sm:$0xf0]  ;;  %v9219_v13 = vld [vmem:[#allocation11 + $0x32c] sm:$0xf0] }
 0x104   :  { %v9310_v15 = vld [vmem:[#allocation11 + $0x60c] sm:$0xf]  ;;  %v7455_v22 = vor.u32 %v9446_v10, %v7452_v11  ;;  %v9155_v10 = vld [vmem:[#allocation11 + $0x12c] sm:$0xf0] }
 0x105   :  { %v6908_v17 = vld [vmem:[#allocation11 + $0x628] sm:$0xf0]  ;;  %2828 = vmatmul.bf16.vlgmr.msrb.gmra.mxu1 %v10173_v51  ;;  %v6530_v11 = vld [vmem:[#allocation11 + $0x310] sm:$0xf]  ;;  %v6275_v20 = vor.u32 %v9155_v10, %v6274_v9 }
 0x106   :  { %v9374_v18 = vld [vmem:[#allocation11 + $0x80c] sm:$0xf]  ;;  %v6911_v29 = vor.u32 %v9310_v15, %v6908_v17  ;;  %2879 = vmatpush.bf16.msra.mxu1 %v7679_v21  ;;  %2865 = vmatpush.bf16.msra.mxu0 %v7455_v22  ;;  %v6786_v14 = vld [vmem:[#allocation11 + $0x510] sm:$0xf]  ;;  %v2595_v17 = vpop.f32.mrf.mxu1  ;;  %v6531_v24 = vor.u32 %v9219_v13, %v6530_v11 }
 0x107   :  { %v7164_v19 = vld [vmem:[#allocation11 + $0x828] sm:$0xf0]  ;;  %v9283_v15 = vld [vmem:[#allocation11 + $0x52c] sm:$0xf0]  ;;  %v2596_v23 = vadd.f32 %v2595_v17, %v2583_v16 }
 0x108   :  { %v9438_v31 = vld [vmem:[#allocation11 + $0xa0c] sm:$0xf]  ;;  %v7167_v33 = vor.u32 %v9374_v18, %v7164_v19  ;;  %2840 = vmatpush.bf16.msra.mxu3 %v6911_v29  ;;  %v7075_v18 = vor.u32 %v9355_v5, %v7074_v4  ;;  %v2610_v19 = vpop.f32.mrf.mxu2  ;;  %v7042_v21 = vld [vmem:[#allocation11 + $0x710] sm:$0xf]  ;;  %v6787_v25 = vor.u32 %v9283_v15, %v6786_v14 }
 0x109   :  { %v7420_v32 = vld [vmem:[#allocation11 + $0xa28] sm:$0xf0]  ;;  %v9347_v22 = vld [vmem:[#allocation11 + $0x72c] sm:$0xf0]  ;;  %v2609_v54 = vadd.f32 %v2608_v49, %v2596_v23  ;;  %v2621_v49 = vpop.f32.mrf.mxu3 }
 0x10a   :  { %v7423_v43 = vor.u32 %v9438_v31, %v7420_v32  ;;  %2853 = vmatpush.bf16.msra.mxu2 %v7167_v33  ;;  %2898 = vmatpush.bf16.msrb.mxu1 %v6627_v38  ;;  %v6242_v26 = vld [vmem:[#allocation11 + $0xd0] sm:$0xf]  ;;  %v7043_v33 = vor.u32 %v9347_v22, %v7042_v21 }
 0x10b   :  { %2841 = vmatmul.bf16.vlgmr.msra.gmra.mxu3 %v10177_v57  ;;  %v9147_v27 = vld [vmem:[#allocation11 + $0xec] sm:$0xf0]  ;;  %v3249_v40 = vmax.f32 %v2609_v54, 0.0 }
 0x10c   :  { %2885 = vmatpush.bf16.msrb.mxu3 %v6371_v34  ;;  %2866 = vmatpush.bf16.msra.mxu0 %v7423_v43  ;;  %v6498_v28 = vld [vmem:[#allocation11 + $0x2d0] sm:$0xf]  ;;  %v542_v34 = vperm.slane %v10210_v60, 1  ;;  %v6243_v36 = vor.u32 %v9147_v27, %v6242_v26 }
 0x10d   :  { %2854 = vmatmul.bf16.vlgmr.msra.gmra.mxu2 %v10189_v30  ;;  %v9211_v29 = vld [vmem:[#allocation11 + $0x2ec] sm:$0xf0]  ;;  %v10224_v52 = vpack.c.bf16 %v3249_v40, %v3249_v40 }
 0x10e   :  { %2911 = vmatpush.bf16.msrb.mxu2 %v6883_v39  ;;  %2899 = vmatpush.bf16.msrb.mxu1 %v6595_v56  ;;  %v6754_v31 = vld [vmem:[#allocation11 + $0x4d0] sm:$0xf]  ;;  %v6499_v41 = vor.u32 %v9211_v29, %v6498_v28  ;;  %v2622_v56 = vadd.f32 %v2621_v49, %v542_v34 }
 0x10f   :  { %2867 = vmatmul.bf16.vlgmr.msra.gmra.mxu0 %v10191_v35  ;;  %v9275_v32 = vld [vmem:[#allocation11 + $0x4ec] sm:$0xf0] }
 0x110   :  { %2924 = vmatpush.bf16.msrb.mxu0 %v7139_v48  ;;  %2886 = vmatpush.bf16.msrb.mxu3 %v6339_v50  ;;  %v6210_v37 = vld [vmem:[#allocation11 + $0x90] sm:$0xf]  ;;  %v6755_v42 = vor.u32 %v9275_v32, %v6754_v31  ;;  %v2584_v50 = vpop.f32.mrf.mxu0  ;;  %v2634_v63 = vpop.f32.mrf.mxu2 }
 0x111   :  { %v7010_v38 = vld [vmem:[#allocation11 + $0x6d0] sm:$0xf]  ;;  %v10228_v5 = vadd.f32 %v2634_v63, %v2622_v56  ;;  %v9231_v56 = vld [vmem:[#allocation11 + $0x394] sm:$0xf] }
 0x112   :  { %2912 = vmatpush.bf16.msrb.mxu2 %v6851_v58  ;;  %2900 = vmatpush.bf16.msrb.mxu1 %v6563_v6  ;;  %v9339_v39 = vld [vmem:[#allocation11 + $0x6ec] sm:$0xf0]  ;;  %v2597_v58 = vpop.f32.mrf.mxu1  ;;  %v9167_v63 = vld [vmem:[#allocation11 + $0x194] sm:$0xf] }
 0x113   :  { %v9139_v43 = vld [vmem:[#allocation11 + $0xac] sm:$0xf0]  ;;  %v7011_v53 = vor.u32 %v9339_v39, %v7010_v38  ;;  %v6628_v38 = vld [vmem:[#allocation11 + $0x3f0] sm:$0xf0] }
 0x114   :  { %2925 = vmatpush.bf16.msrb.mxu0 %v7107_v2  ;;  %2887 = vmatpush.bf16.msrb.mxu3 %v6307_v3  ;;  %v6466_v44 = vld [vmem:[#allocation11 + $0x290] sm:$0xf]  ;;  %v6211_v59 = vor.u32 %v9139_v43, %v6210_v37  ;;  %v9239_v37 = vld [vmem:[#allocation11 + $0x3d4] sm:$0xf] }
 0x115   :  { %v9203_v46 = vld [vmem:[#allocation11 + $0x2ac] sm:$0xf0]  ;;  %7699 = vmatmul.msk.bf16.vlgmr.msra.gmra.mxu1 %vm2517_vm0, %v10185_v45  ;;  %v6372_v43 = vld [vmem:[#allocation11 + $0x1f0] sm:$0xf0]  ;;  %v6631_v50 = vor.u32 %v9239_v37, %v6628_v38 }
 0x116   :  { %2913 = vmatpush.bf16.msrb.mxu2 %v6819_v8  ;;  %2901 = vmatpush.bf16.msrb.mxu1 %v6531_v24  ;;  %v6722_v47 = vld [vmem:[#allocation11 + $0x490] sm:$0xf]  ;;  %v6467_v0 = vor.u32 %v9203_v46, %v6466_v44  ;;  %v2623_v24 = vpop.f32.mrf.mxu3  ;;  %v6596_v58 = vld [vmem:[#allocation11 + $0x3b0] sm:$0xf0] }
 0x117   :  { %v9267_v48 = vld [vmem:[#allocation11 + $0x4ac] sm:$0xf0]  ;;  %v6500_v37 = vld [vmem:[#allocation11 + $0x2f0] sm:$0xf0] }
 0x118   :  { %2926 = vmatpush.bf16.msrb.mxu0 %v7075_v18  ;;  %2888 = vmatpush.bf16.msrb.mxu3 %v6275_v20  ;;  %v6978_v61 = vld [vmem:[#allocation11 + $0x690] sm:$0xf]  ;;  %v6723_v1 = vor.u32 %v9267_v48, %v6722_v47 }
 0x119   :  { %v9331_v62 = vld [vmem:[#allocation11 + $0x6ac] sm:$0xf0] }
 0x11a   :  { %2914 = vmatpush.bf16.msrb.mxu2 %v6787_v25  ;;  %2902 = vmatpush.bf16.msrb.mxu1 %v6499_v41  ;;  %v6178_v2 = vld [vmem:[#allocation11 + $0x50] sm:$0xf]  ;;  %v6979_v10 = vor.u32 %v9331_v62, %v6978_v61  ;;  %v2660_v24 = vpop.f32.mrf.mxu1 }
 0x11b   :  { %v9131_v3 = vld [vmem:[#allocation11 + $0x6c] sm:$0xf0] }
 0x11c   :  { %2927 = vmatpush.bf16.msrb.mxu0 %v7043_v33  ;;  %2889 = vmatpush.bf16.msrb.mxu3 %v6243_v36  ;;  %v6434_v4 = vld [vmem:[#allocation11 + $0x250] sm:$0xf]  ;;  %v6179_v12 = vor.u32 %v9131_v3, %v6178_v2  ;;  %v2636_v33 = vpop.f32.mrf.mxu2 }
 0x11d   :  { %v9195_v6 = vld [vmem:[#allocation11 + $0x26c] sm:$0xf0] }
 0x11e   :  { %2915 = vmatpush.bf16.msrb.mxu2 %v6755_v42  ;;  %v6690_v8 = vld [vmem:[#allocation11 + $0x450] sm:$0xf]  ;;  %2903 = vmatpush.bf16.msrb.mxu1 %v6467_v0  ;;  %v6435_v16 = vor.u32 %v9195_v6, %v6434_v4  ;;  %v9175_v42 = vld [vmem:[#allocation11 + $0x1d4] sm:$0xf]  ;;  %v6599_v4 = vor.u32 %v9231_v56, %v6596_v58 }
 0x11f   :  { %v9259_v9 = vld [vmem:[#allocation11 + $0x46c] sm:$0xf0]  ;;  %v6340_v0 = vld [vmem:[#allocation11 + $0x1b0] sm:$0xf0] }
 0x120   :  { %2928 = vmatpush.bf16.msrb.mxu0 %v7011_v53  ;;  %v6146_v11 = vld [vmem:[#allocation11 + $0x10] sm:$0xf]  ;;  %2890 = vmatpush.bf16.msrb.mxu3 %v6211_v59  ;;  %v6691_v17 = vor.u32 %v9259_v9, %v6690_v8  ;;  %v6375_v53 = vor.u32 %v9175_v42, %v6372_v43  ;;  %v6343_v6 = vor.u32 %v9167_v63, %v6340_v0  ;;  %v9223_v8 = vld [vmem:[#allocation11 + $0x354] sm:$0xf] }
 0x121   :  { %v9123_v13 = vld [vmem:[#allocation11 + $0x2c] sm:$0xf0]  ;;  %v6564_v9 = vld [vmem:[#allocation11 + $0x370] sm:$0xf0]  ;;  %v2673_v43 = vpop.f32.mrf.mxu3 }
 0x122   :  { %v6946_v14 = vld [vmem:[#allocation11 + $0x650] sm:$0xf]  ;;  %2916 = vmatpush.bf16.msrb.mxu2 %v6723_v1  ;;  %v6147_v29 = vor.u32 %v9123_v13, %v6146_v11  ;;  %2904 = vmatpush.bf16.msrb.mxu1 %v6435_v16  ;;  %v9159_v13 = vld [vmem:[#allocation11 + $0x154] sm:$0xf] }
 0x123   :  { %v9323_v15 = vld [vmem:[#allocation11 + $0x66c] sm:$0xf0]  ;;  %v6244_v42 = vld [vmem:[#allocation11 + $0xf0] sm:$0xf0] }
 0x124   :  { %v6402_v18 = vld [vmem:[#allocation11 + $0x210] sm:$0xf]  ;;  %2929 = vmatpush.bf16.msrb.mxu0 %v6979_v10  ;;  %v6947_v25 = vor.u32 %v9323_v15, %v6946_v14  ;;  %2891 = vmatpush.bf16.msrb.mxu3 %v6179_v12  ;;  %v6308_v14 = vld [vmem:[#allocation11 + $0x170] sm:$0xf0] }
 0x125   :  { %v9187_v19 = vld [vmem:[#allocation11 + $0x22c] sm:$0xf0]  ;;  %v9199_v58 = vld [vmem:[#allocation11 + $0x294] sm:$0xf] }
 0x126   :  { %v6658_v20 = vld [vmem:[#allocation11 + $0x410] sm:$0xf]  ;;  %2917 = vmatpush.bf16.msrb.mxu2 %v6691_v17  ;;  %v6403_v34 = vor.u32 %v9187_v19, %v6402_v18  ;;  %v2647_v18 = vpop.f32.mrf.mxu0 }
 0x127   :  { %v9251_v21 = vld [vmem:[#allocation11 + $0x42c] sm:$0xf0]  ;;  %v2648_v19 = vadd.f32 %v2647_v18, %v10228_v5  ;;  %v6180_v18 = vld [vmem:[#allocation11 + $0x70] sm:$0xf0] }
 0x128   :  { %v7394_v22 = vld [vmem:[#allocation11 + $0x9d0] sm:$0xf]  ;;  %v6659_v36 = vor.u32 %v9251_v21, %v6658_v20  ;;  %2930 = vmatpush.bf16.msrb.mxu0 %v6947_v25  ;;  %2892 = vmatpush.bf16.msrb.mxu3 %v6147_v29  ;;  %v6567_v20 = vor.u32 %v9223_v8, %v6564_v9  ;;  %v6311_v21 = vor.u32 %v9159_v13, %v6308_v14  ;;  %v6276_v29 = vld [vmem:[#allocation11 + $0x130] sm:$0xf0] }
 0x129   :  { %v9435_v23 = vld [vmem:[#allocation11 + $0x9ec] sm:$0xf0]  ;;  %2905 = vmatpush.bf16.msrb.mxu1 %v6403_v34 }
 0x12a   :  { %v7650_v26 = vld [vmem:[#allocation11 + $0xbd0] sm:$0xf]  ;;  %v7395_v39 = vor.u32 %v9435_v23, %v7394_v22  ;;  %2918 = vmatpush.bf16.msrb.mxu2 %v6659_v36  ;;  %v9215_v22 = vld [vmem:[#allocation11 + $0x314] sm:$0xf] }
 0x12b   :  { %v9499_v27 = vld [vmem:[#allocation11 + $0xbec] sm:$0xf0]  ;;  %2893 = vmatmul.bf16.vlgmr.msrb.gmra.mxu3 %v10175_v55  ;;  %v6532_v23 = vld [vmem:[#allocation11 + $0x330] sm:$0xf0] }
 0x12c   :  { %v7682_v28 = vld [vmem:[#allocation11 + $0xc10] sm:$0xf]  ;;  %v7651_v40 = vor.u32 %v9499_v27, %v7650_v26  ;;  %2937 = vmatpush.bf16.msra.mxu3 %v7395_v39  ;;  %2906 = vmatmul.bf16.vlgmr.msrb.gmra.mxu1 %v10181_v7  ;;  %v6535_v5 = vor.u32 %v9215_v22, %v6532_v23  ;;  %v9207_v36 = vld [vmem:[#allocation11 + $0x2d4] sm:$0xf] }
 0x12d   :  { %v9507_v31 = vld [vmem:[#allocation11 + $0xc2c] sm:$0xf0]  ;;  %2919 = vmatmul.bf16.vlgmr.msrb.gmra.mxu2 %v10173_v51  ;;  %v9303_v22 = vld [vmem:[#allocation11 + $0x5d4] sm:$0xf] }
 0x12e   :  { %v6914_v32 = vld [vmem:[#allocation11 + $0x610] sm:$0xf]  ;;  %v7683_v44 = vor.u32 %v9507_v31, %v7682_v28  ;;  %2950 = vmatpush.bf16.msra.mxu1 %v7651_v40  ;;  %v9151_v28 = vld [vmem:[#allocation11 + $0x114] sm:$0xf]  ;;  %v2661_v31 = vadd.f32 %v2660_v24, %v2648_v19  ;;  %v2675_v19 = vpop.f32.mrf.mxu3 }
 0x12f   :  { %v9315_v54 = vld [vmem:[#allocation11 + $0x62c] sm:$0xf0]  ;;  %v6279_v34 = vor.u32 %v9151_v28, %v6276_v29  ;;  %v6884_v23 = vld [vmem:[#allocation11 + $0x5f0] sm:$0xf0] }
 0x130   :  { %v7362_v41 = vld [vmem:[#allocation11 + $0x990] sm:$0xf]  ;;  %v6915_v46 = vor.u32 %v9315_v54, %v6914_v32  ;;  %2970 = vmatpush.bf16.msra.mxu2 %v7683_v44  ;;  %v9367_v24 = vld [vmem:[#allocation11 + $0x7d4] sm:$0xf] }
 0x131   :  { %v9427_v47 = vld [vmem:[#allocation11 + $0x9ac] sm:$0xf0]  ;;  %v9183_v28 = vld [vmem:[#allocation11 + $0x214] sm:$0xf] }
 0x132   :  { %v7618_v48 = vld [vmem:[#allocation11 + $0xb90] sm:$0xf]  ;;  %v7363_v59 = vor.u32 %v9427_v47, %v7362_v41  ;;  %2931 = vmatpush.bf16.msrb.mxu0 %v6915_v46  ;;  %v9143_v41 = vld [vmem:[#allocation11 + $0xd4] sm:$0xf] }
 0x133   :  { %v9491_v49 = vld [vmem:[#allocation11 + $0xbac] sm:$0xf0]  ;;  %v6247_v56 = vor.u32 %v9143_v41, %v6244_v42  ;;  %v9359_v41 = vld [vmem:[#allocation11 + $0x794] sm:$0xf] }
 0x134   :  { %v7619_v61 = vor.u32 %v9491_v49, %v7618_v48  ;;  %v7330_v62 = vld [vmem:[#allocation11 + $0x950] sm:$0xf]  ;;  %2989 = vmatpush.bf16.msrb.mxu2 %v6631_v50  ;;  %2938 = vmatpush.bf16.msra.mxu3 %v7363_v59  ;;  %v2674_v48 = vadd.f32 %v2673_v43, %v2661_v31  ;;  %v2649_v49 = vpop.f32.mrf.mxu0  ;;  %v2686_v50 = vpop.f32.mrf.mxu2  ;;  %v6468_v59 = vld [vmem:[#allocation11 + $0x2b0] sm:$0xf0] }
 0x135   :  { %v9419_v1 = vld [vmem:[#allocation11 + $0x96c] sm:$0xf0]  ;;  %2932 = vmatmul.bf16.vlgmr.msrb.gmra.mxu0 %v10177_v57  ;;  %v6471_v9 = vor.u32 %v9199_v58, %v6468_v59  ;;  %v7108_v42 = vld [vmem:[#allocation11 + $0x7b0] sm:$0xf0] }
 0x136   :  { %v7586_v2 = vld [vmem:[#allocation11 + $0xb50] sm:$0xf]  ;;  %2976 = vmatpush.bf16.msra.mxu0 %v6375_v53  ;;  %2951 = vmatpush.bf16.msra.mxu1 %v7619_v61  ;;  %v7331_v10 = vor.u32 %v9419_v1, %v7330_v62  ;;  %v6503_v53 = vor.u32 %v9207_v36, %v6500_v37  ;;  %v10235_v61 = vadd.f32 %v2686_v50, %v2674_v48  ;;  %v9135_v1 = vld [vmem:[#allocation11 + $0x94] sm:$0xf]  ;;  %v2699_v49 = vpop.f32.mrf.mxu3 }
 0x137   :  { %v9483_v3 = vld [vmem:[#allocation11 + $0xb6c] sm:$0xf0]  ;;  %v9119_v37 = vld [vmem:[#allocation11 + $0x14] sm:$0xf] }
 0x138   :  { %v7587_v11 = vor.u32 %v9483_v3, %v7586_v2  ;;  %v7298_v12 = vld [vmem:[#allocation11 + $0x910] sm:$0xf]  ;;  %2990 = vmatpush.bf16.msrb.mxu2 %v6599_v4  ;;  %2939 = vmatpush.bf16.msra.mxu3 %v7331_v10  ;;  %v6212_v2 = vld [vmem:[#allocation11 + $0xb0] sm:$0xf0]  ;;  %v2662_v3 = vpop.f32.mrf.mxu1 }
 0x139   :  { %v9411_v15 = vld [vmem:[#allocation11 + $0x92c] sm:$0xf0]  ;;  %v6215_v10 = vor.u32 %v9135_v1, %v6212_v2  ;;  %v7620_v58 = vld [vmem:[#allocation11 + $0xbb0] sm:$0xf0] }
 0x13a   :  { %v7554_v16 = vld [vmem:[#allocation11 + $0xb10] sm:$0xf]  ;;  %2977 = vmatpush.bf16.msra.mxu0 %v6343_v6  ;;  %2952 = vmatpush.bf16.msra.mxu1 %v7587_v11  ;;  %v7299_v25 = vor.u32 %v9411_v15, %v7298_v12  ;;  %v9191_v11 = vld [vmem:[#allocation11 + $0x254] sm:$0xf] }
 0x13b   :  { %v9475_v17 = vld [vmem:[#allocation11 + $0xb2c] sm:$0xf0]  ;;  %v6436_v12 = vld [vmem:[#allocation11 + $0x270] sm:$0xf0] }
 0x13c   :  { %v7555_v26 = vor.u32 %v9475_v17, %v7554_v16  ;;  %v7266_v27 = vld [vmem:[#allocation11 + $0x8d0] sm:$0xf]  ;;  %2991 = vmatpush.bf16.msrb.mxu2 %v6567_v20  ;;  %2940 = vmatpush.bf16.msra.mxu3 %v7299_v25  ;;  %v9127_v17 = vld [vmem:[#allocation11 + $0x54] sm:$0xf]  ;;  %v2688_v29 = vpop.f32.mrf.mxu2 }
 0x13d   :  { %v9403_v32 = vld [vmem:[#allocation11 + $0x8ec] sm:$0xf0]  ;;  %7700 = vmatmul.msk.bf16.vlgmr.msra.gmra.mxu2 %vm2517_vm0, %v10185_v45  ;;  %v7140_v25 = vld [vmem:[#allocation11 + $0x7f0] sm:$0xf0] }
 0x13e   :  { %v7522_v54 = vld [vmem:[#allocation11 + $0xad0] sm:$0xf]  ;;  %2978 = vmatpush.bf16.msra.mxu0 %v6311_v21  ;;  %2953 = vmatpush.bf16.msra.mxu1 %v7555_v26  ;;  %v7267_v38 = vor.u32 %v9403_v32, %v7266_v27  ;;  %v6439_v26 = vor.u32 %v9191_v11, %v6436_v12  ;;  %v6183_v27 = vor.u32 %v9127_v17, %v6180_v18  ;;  %v9287_v59 = vld [vmem:[#allocation11 + $0x554] sm:$0xf] }
 0x13f   :  { %v9467_v33 = vld [vmem:[#allocation11 + $0xaec] sm:$0xf0]  ;;  %v7143_v36 = vor.u32 %v9367_v24, %v7140_v25  ;;  %v9351_v1 = vld [vmem:[#allocation11 + $0x754] sm:$0xf]  ;;  %v2738_v25 = vpop.f32.mrf.mxu0 }
 0x140   :  { %v7523_v39 = vor.u32 %v9467_v33, %v7522_v54  ;;  %v7234_v40 = vld [vmem:[#allocation11 + $0x890] sm:$0xf]  ;;  %2992 = vmatpush.bf16.msrb.mxu2 %v6535_v5  ;;  %2941 = vmatpush.bf16.msra.mxu3 %v7267_v38  ;;  %v6404_v54 = vld [vmem:[#allocation11 + $0x230] sm:$0xf0] }
 0x141   :  { %v9395_v44 = vld [vmem:[#allocation11 + $0x8ac] sm:$0xf0]  ;;  %v9495_v33 = vld [vmem:[#allocation11 + $0xbd4] sm:$0xf]  ;;  %v6407_v43 = vor.u32 %v9183_v28, %v6404_v54  ;;  %v543_v54 = vperm.slane %v10210_v60, 2 }
 0x142   :  { %v7490_v46 = vld [vmem:[#allocation11 + $0xa90] sm:$0xf]  ;;  %2979 = vmatpush.bf16.msra.mxu0 %v6279_v34  ;;  %2954 = vmatpush.bf16.msra.mxu1 %v7523_v39  ;;  %v7235_v62 = vor.u32 %v9395_v44, %v7234_v40  ;;  %v7652_v5 = vld [vmem:[#allocation11 + $0xbf0] sm:$0xf0]  ;;  %v6887_v34 = vor.u32 %v9303_v22, %v6884_v23  ;;  %v2701_v22 = vpop.f32.mrf.mxu3 }
 0x143   :  { %v9459_v47 = vld [vmem:[#allocation11 + $0xaac] sm:$0xf0]  ;;  %v6148_v38 = vld [vmem:[#allocation11 + $0x30] sm:$0xf0] }
 0x144   :  { %v7491_v63 = vor.u32 %v9459_v47, %v7490_v46  ;;  %v7202_v0 = vld [vmem:[#allocation11 + $0x850] sm:$0xf]  ;;  %2993 = vmatpush.bf16.msrb.mxu2 %v6503_v53  ;;  %2942 = vmatpush.bf16.msra.mxu3 %v7235_v62  ;;  %v9295_v39 = vld [vmem:[#allocation11 + $0x594] sm:$0xf]  ;;  %v7655_v47 = vor.u32 %v9495_v33, %v7652_v5  ;;  %v6151_v48 = vor.u32 %v9119_v37, %v6148_v38 }
 0x145   :  { %v9387_v4 = vld [vmem:[#allocation11 + $0x86c] sm:$0xf0]  ;;  %v6852_v40 = vld [vmem:[#allocation11 + $0x5b0] sm:$0xf0]  ;;  %v7111_v53 = vor.u32 %v9359_v41, %v7108_v42  ;;  %v2700_v62 = vadd.f32 %v2699_v49, %v10235_v61 }
 0x146   :  { %v7458_v6 = vld [vmem:[#allocation11 + $0xa50] sm:$0xf]  ;;  %2980 = vmatpush.bf16.msra.mxu0 %v6247_v56  ;;  %2955 = vmatpush.bf16.msra.mxu1 %v7491_v63  ;;  %v7203_v14 = vor.u32 %v9387_v4, %v7202_v0  ;;  %v9431_v44 = vld [vmem:[#allocation11 + $0x9d4] sm:$0xf]  ;;  %v6855_v50 = vor.u32 %v9295_v39, %v6852_v40 }
 0x147   :  { %v9451_v8 = vld [vmem:[#allocation11 + $0xa6c] sm:$0xf0]  ;;  %v7396_v46 = vld [vmem:[#allocation11 + $0x9f0] sm:$0xf0] }
 0x148   :  { %v7170_v13 = vld [vmem:[#allocation11 + $0x810] sm:$0xf]  ;;  %v7459_v15 = vor.u32 %v9451_v8, %v7458_v6  ;;  %2994 = vmatpush.bf16.msrb.mxu2 %v6471_v9  ;;  %2943 = vmatpush.bf16.msra.mxu3 %v7203_v14  ;;  %v9487_v56 = vld [vmem:[#allocation11 + $0xb94] sm:$0xf]  ;;  %v7399_v63 = vor.u32 %v9431_v44, %v7396_v46  ;;  %v3250_v6 = vmax.f32 %v2700_v62, 0.0 }
 0x149   :  { %v9379_v16 = vld [vmem:[#allocation11 + $0x82c] sm:$0xf0]  ;;  %v6820_v0 = vld [vmem:[#allocation11 + $0x570] sm:$0xf0]  ;;  %v7623_v8 = vor.u32 %v9487_v56, %v7620_v58  ;;  %v2740_v58 = vpop.f32.mrf.mxu0 }
 0x14a   :  { %v7426_v20 = vld [vmem:[#allocation11 + $0xa10] sm:$0xf]  ;;  %2981 = vmatpush.bf16.msra.mxu0 %v6215_v10  ;;  %2956 = vmatpush.bf16.msra.mxu1 %v7459_v15  ;;  %v7171_v31 = vor.u32 %v9379_v16, %v7170_v13  ;;  %v7076_v2 = vld [vmem:[#allocation11 + $0x770] sm:$0xf0]  ;;  %v6823_v9 = vor.u32 %v9287_v59, %v6820_v0  ;;  %v10241_v13 = vpack.c.bf16 %v3250_v6, %v3250_v6  ;;  %v2751_v6 = vpop.f32.mrf.mxu2  ;;  %v6602_v58 = vld [vmem:[#allocation11 + $0x398] sm:$0xf] }
 0x14b   :  { %v9443_v21 = vld [vmem:[#allocation11 + $0xa2c] sm:$0xf0]  ;;  %v9423_v3 = vld [vmem:[#allocation11 + $0x994] sm:$0xf]  ;;  %v7079_v10 = vor.u32 %v9351_v1, %v7076_v2 }
 0x14c   :  { %v7427_v32 = vor.u32 %v9443_v21, %v7426_v20  ;;  %2995 = vmatpush.bf16.msrb.mxu2 %v6439_v26  ;;  %2944 = vmatpush.bf16.msra.mxu3 %v7171_v31  ;;  %v7364_v4 = vld [vmem:[#allocation11 + $0x9b0] sm:$0xf0] }
 0x14d   :  { %v9479_v11 = vld [vmem:[#allocation11 + $0xb54] sm:$0xf]  ;;  %v7367_v14 = vor.u32 %v9423_v3, %v7364_v4 }
 0x14e   :  { %2982 = vmatpush.bf16.msra.mxu0 %v6183_v27  ;;  %2957 = vmatpush.bf16.msra.mxu1 %v7427_v32  ;;  %v7588_v12 = vld [vmem:[#allocation11 + $0xb70] sm:$0xf0] }
 0x14f   :  { %2945 = vmatmul.bf16.vlgmr.msra.gmra.mxu3 %v10189_v30  ;;  %v9279_v61 = vld [vmem:[#allocation11 + $0x514] sm:$0xf]  ;;  %v7591_v20 = vor.u32 %v9479_v11, %v7588_v12 }
 0x150   :  { %3002 = vmatpush.bf16.msrb.mxu3 %v6887_v34  ;;  %2996 = vmatpush.bf16.msrb.mxu2 %v6407_v43  ;;  %v6788_v15 = vld [vmem:[#allocation11 + $0x530] sm:$0xf0]  ;;  %v2712_v34 = vpop.f32.mrf.mxu1 }
 0x151   :  { %2958 = vmatmul.bf16.vlgmr.msra.gmra.mxu1 %v10191_v35  ;;  %v9343_v16 = vld [vmem:[#allocation11 + $0x714] sm:$0xf]  ;;  %v6791_v23 = vor.u32 %v9279_v61, %v6788_v15  ;;  %v2713_v43 = vadd.f32 %v2712_v34, %v543_v54  ;;  %v9244_v34 = vld [vmem:[#allocation11 + $0x3f4] sm:$0xf0] }
 0x152   :  { %3015 = vmatpush.bf16.msrb.mxu1 %v7143_v36  ;;  %2983 = vmatpush.bf16.msra.mxu0 %v6151_v48  ;;  %v7044_v17 = vld [vmem:[#allocation11 + $0x730] sm:$0xf0] }
 0x153   :  { %v9415_v18 = vld [vmem:[#allocation11 + $0x954] sm:$0xf]  ;;  %2997 = vmatmul.bf16.vlgmr.msrb.gmra.mxu2 %v10181_v7  ;;  %v7047_v24 = vor.u32 %v9343_v16, %v7044_v17 }
 0x154   :  { %3041 = vmatpush.bf16.msra.mxu2 %v7655_v47  ;;  %3003 = vmatpush.bf16.msrb.mxu3 %v6855_v50  ;;  %v7332_v19 = vld [vmem:[#allocation11 + $0x970] sm:$0xf0]  ;;  %v2725_v50 = vpop.f32.mrf.mxu3 }
 0x155   :  { %2984 = vmatmul.bf16.vlgmr.msra.gmra.mxu0 %v10175_v55  ;;  %v9471_v21 = vld [vmem:[#allocation11 + $0xb14] sm:$0xf]  ;;  %v7335_v29 = vor.u32 %v9415_v18, %v7332_v19  ;;  %v2726_v0 = vadd.f32 %v2725_v50, %v2713_v43  ;;  %v9308_v50 = vld [vmem:[#allocation11 + $0x5f4] sm:$0xf0] }
 0x156   :  { %3016 = vmatpush.bf16.msrb.mxu1 %v7111_v53  ;;  %3028 = vmatpush.bf16.msrb.mxu0 %v7399_v63  ;;  %v7556_v26 = vld [vmem:[#allocation11 + $0xb30] sm:$0xf0] }
 0x157   :  { %v9271_v27 = vld [vmem:[#allocation11 + $0x4d4] sm:$0xf]  ;;  %v7559_v36 = vor.u32 %v9471_v21, %v7556_v26  ;;  %v2739_v12 = vadd.f32 %v2738_v25, %v2726_v0  ;;  %v6378_v26 = vld [vmem:[#allocation11 + $0x1d8] sm:$0xf] }
 0x158   :  { %3042 = vmatpush.bf16.msra.mxu2 %v7623_v8  ;;  %3004 = vmatpush.bf16.msrb.mxu3 %v6823_v9  ;;  %v6756_v28 = vld [vmem:[#allocation11 + $0x4f0] sm:$0xf0]  ;;  %v7114_v0 = vld [vmem:[#allocation11 + $0x798] sm:$0xf] }
 0x159   :  { %v9335_v31 = vld [vmem:[#allocation11 + $0x6d4] sm:$0xf]  ;;  %v6759_v37 = vor.u32 %v9271_v27, %v6756_v28  ;;  %v10247_v19 = vadd.f32 %v2751_v6, %v2739_v12  ;;  %v9180_v27 = vld [vmem:[#allocation11 + $0x1f4] sm:$0xf0] }
 0x15a   :  { %3017 = vmatpush.bf16.msrb.mxu1 %v7079_v10  ;;  %3029 = vmatpush.bf16.msrb.mxu0 %v7367_v14  ;;  %v7012_v32 = vld [vmem:[#allocation11 + $0x6f0] sm:$0xf0]  ;;  %v2714_v10 = vpop.f32.mrf.mxu1  ;;  %v6858_v6 = vld [vmem:[#allocation11 + $0x598] sm:$0xf] }
 0x15b   :  { %v9407_v33 = vld [vmem:[#allocation11 + $0x914] sm:$0xf]  ;;  %v7015_v38 = vor.u32 %v9335_v31, %v7012_v32 }
 0x15c   :  { %v7300_v5 = vld [vmem:[#allocation11 + $0x930] sm:$0xf0]  ;;  %3043 = vmatpush.bf16.msra.mxu2 %v7591_v20  ;;  %3005 = vmatpush.bf16.msrb.mxu3 %v6791_v23 }
 0x15d   :  { %v9463_v39 = vld [vmem:[#allocation11 + $0xad4] sm:$0xf]  ;;  %v7303_v42 = vor.u32 %v9407_v33, %v7300_v5  ;;  %v6634_v5 = vld [vmem:[#allocation11 + $0x3d8] sm:$0xf] }
 0x15e   :  { %3018 = vmatpush.bf16.msrb.mxu1 %v7047_v24  ;;  %v7524_v40 = vld [vmem:[#allocation11 + $0xaf0] sm:$0xf0]  ;;  %3030 = vmatpush.bf16.msrb.mxu0 %v7335_v29 }
 0x15f   :  { %v9263_v41 = vld [vmem:[#allocation11 + $0x494] sm:$0xf]  ;;  %v7527_v49 = vor.u32 %v9463_v39, %v7524_v40  ;;  %v6379_v39 = vor.u32 %v9180_v27, %v6378_v26  ;;  %v7146_v40 = vld [vmem:[#allocation11 + $0x7d8] sm:$0xf] }
 0x160   :  { %v6724_v44 = vld [vmem:[#allocation11 + $0x4b0] sm:$0xf0]  ;;  %3044 = vmatpush.bf16.msra.mxu2 %v7559_v36  ;;  %3006 = vmatpush.bf16.msrb.mxu3 %v6759_v37  ;;  %v2727_v36 = vpop.f32.mrf.mxu3  ;;  %v10249_v37 = vpop.f32.mrf.mxu0  ;;  %v6538_v27 = vld [vmem:[#allocation11 + $0x318] sm:$0xf] }
 0x161   :  { %v9327_v46 = vld [vmem:[#allocation11 + $0x694] sm:$0xf]  ;;  %v6727_v53 = vor.u32 %v9263_v41, %v6724_v44  ;;  %v9372_v41 = vld [vmem:[#allocation11 + $0x7f4] sm:$0xf0] }
 0x162   :  { %v6980_v47 = vld [vmem:[#allocation11 + $0x6b0] sm:$0xf0]  ;;  %3019 = vmatpush.bf16.msrb.mxu1 %v7015_v38  ;;  %3031 = vmatpush.bf16.msrb.mxu0 %v7303_v42  ;;  %v9284_v36 = vld [vmem:[#allocation11 + $0x534] sm:$0xf0] }
 0x163   :  { %v9399_v48 = vld [vmem:[#allocation11 + $0x8d4] sm:$0xf]  ;;  %v6983_v56 = vor.u32 %v9327_v46, %v6980_v47  ;;  %v6346_v46 = vld [vmem:[#allocation11 + $0x198] sm:$0xf] }
 0x164   :  { %v7268_v60 = vld [vmem:[#allocation11 + $0x8f0] sm:$0xf0]  ;;  %3045 = vmatpush.bf16.msra.mxu2 %v7527_v49  ;;  %3007 = vmatpush.bf16.msrb.mxu3 %v6727_v53  ;;  %v9172_v47 = vld [vmem:[#allocation11 + $0x1b4] sm:$0xf0]  ;;  %v6635_v53 = vor.u32 %v9244_v34, %v6634_v5 }
 0x165   :  { %v9455_v59 = vld [vmem:[#allocation11 + $0xa94] sm:$0xf]  ;;  %v7271_v1 = vor.u32 %v9399_v48, %v7268_v60  ;;  %v2753_v48 = vpop.f32.mrf.mxu2  ;;  %v6890_v49 = vld [vmem:[#allocation11 + $0x5d8] sm:$0xf] }
 0x166   :  { %v7492_v62 = vld [vmem:[#allocation11 + $0xab0] sm:$0xf0]  ;;  %3020 = vmatpush.bf16.msrb.mxu1 %v6983_v56  ;;  %v7147_v56 = vor.u32 %v9372_v41, %v7146_v40  ;;  %v9148_v5 = vld [vmem:[#allocation11 + $0xf4] sm:$0xf0] }
 0x167   :  { %v9255_v63 = vld [vmem:[#allocation11 + $0x454] sm:$0xf]  ;;  %v7495_v11 = vor.u32 %v9455_v59, %v7492_v62  ;;  %3032 = vmatpush.bf16.msrb.mxu0 %v7271_v1  ;;  %v6347_v62 = vor.u32 %v9172_v47, %v6346_v46  ;;  %v9364_v1 = vld [vmem:[#allocation11 + $0x7b4] sm:$0xf0] }
 0x168   :  { %v6692_v2 = vld [vmem:[#allocation11 + $0x470] sm:$0xf0]  ;;  %v7115_v10 = vor.u32 %v9364_v1, %v7114_v0  ;;  %v2792_v12 = vpop.f32.mrf.mxu0  ;;  %v6794_v34 = vld [vmem:[#allocation11 + $0x518] sm:$0xf] }
 0x169   :  { %v9319_v3 = vld [vmem:[#allocation11 + $0x654] sm:$0xf]  ;;  %v6695_v14 = vor.u32 %v9255_v63, %v6692_v2  ;;  %3046 = vmatpush.bf16.msra.mxu2 %v7495_v11  ;;  %v9236_v63 = vld [vmem:[#allocation11 + $0x3b4] sm:$0xf0]  ;;  %v6891_v2 = vor.u32 %v9308_v50, %v6890_v49  ;;  %v10256_v50 = vld [vmem:[#allocation13] sm:$0xff] }
 0x16a   :  { %v6948_v4 = vld [vmem:[#allocation11 + $0x670] sm:$0xf0]  ;;  %v6570_v11 = vld [vmem:[#allocation11 + $0x358] sm:$0xf] }
 0x16b   :  { %v9391_v8 = vld [vmem:[#allocation11 + $0x894] sm:$0xf]  ;;  %v6951_v15 = vor.u32 %v9319_v3, %v6948_v4  ;;  %3008 = vmatpush.bf16.msrb.mxu3 %v6695_v14  ;;  %v6314_v3 = vld [vmem:[#allocation11 + $0x158] sm:$0xf] }
 0x16c   :  { %v7236_v9 = vld [vmem:[#allocation11 + $0x8b0] sm:$0xf0]  ;;  %v9164_v4 = vld [vmem:[#allocation11 + $0x174] sm:$0xf0] }
 0x16d   :  { %v9447_v61 = vld [vmem:[#allocation11 + $0xa54] sm:$0xf]  ;;  %v7239_v20 = vor.u32 %v9391_v8, %v7236_v9  ;;  %3021 = vmatpush.bf16.msrb.mxu1 %v6951_v15  ;;  %v9300_v8 = vld [vmem:[#allocation11 + $0x5b4] sm:$0xf0]  ;;  %v6603_v9 = vor.u32 %v9236_v63, %v6602_v58  ;;  %v2777_v63 = vpop.f32.mrf.mxu3 }
 0x16e   :  { %v7460_v16 = vld [vmem:[#allocation11 + $0xa70] sm:$0xf0]  ;;  %v9228_v14 = vld [vmem:[#allocation11 + $0x374] sm:$0xf0] }
 0x16f   :  { %v9247_v17 = vld [vmem:[#allocation11 + $0x414] sm:$0xf]  ;;  %v7463_v25 = vor.u32 %v9447_v61, %v7460_v16  ;;  %3033 = vmatpush.bf16.msrb.mxu0 %v7239_v20  ;;  %v6315_v61 = vor.u32 %v9164_v4, %v6314_v3  ;;  %v7082_v15 = vld [vmem:[#allocation11 + $0x758] sm:$0xf] }
 0x170   :  { %v6660_v18 = vld [vmem:[#allocation11 + $0x430] sm:$0xf0]  ;;  %v9356_v16 = vld [vmem:[#allocation11 + $0x774] sm:$0xf0]  ;;  %v2816_v48 = vpop.f32.mrf.mxu0 }
 0x171   :  { %v9311_v21 = vld [vmem:[#allocation11 + $0x614] sm:$0xf]  ;;  %v6663_v32 = vor.u32 %v9247_v17, %v6660_v18  ;;  %3047 = vmatpush.bf16.msra.mxu2 %v7463_v25  ;;  %v6859_v17 = vor.u32 %v9300_v8, %v6858_v6  ;;  %v6282_v18 = vld [vmem:[#allocation11 + $0x118] sm:$0xf]  ;;  %v7083_v26 = vor.u32 %v9356_v16, %v7082_v15 }
 0x172   :  { %v6916_v22 = vld [vmem:[#allocation11 + $0x630] sm:$0xf0]  ;;  %v9156_v20 = vld [vmem:[#allocation11 + $0x134] sm:$0xf0] }
 0x173   :  { %v9383_v23 = vld [vmem:[#allocation11 + $0x854] sm:$0xf]  ;;  %v6919_v54 = vor.u32 %v9311_v21, %v6916_v22  ;;  %3009 = vmatpush.bf16.msrb.mxu3 %v6663_v32  ;;  %v6826_v21 = vld [vmem:[#allocation11 + $0x558] sm:$0xf] }
 0x174   :  { %v7204_v24 = vld [vmem:[#allocation11 + $0x870] sm:$0xf0]  ;;  %v9292_v22 = vld [vmem:[#allocation11 + $0x574] sm:$0xf0] }
 0x175   :  { %v9439_v28 = vld [vmem:[#allocation11 + $0xa14] sm:$0xf]  ;;  %v7207_v38 = vor.u32 %v9383_v23, %v7204_v24  ;;  %3022 = vmatpush.bf16.msrb.mxu1 %v6919_v54  ;;  %v2764_v23 = vpop.f32.mrf.mxu1  ;;  %v6571_v24 = vor.u32 %v9228_v14, %v6570_v11  ;;  %v9348_v32 = vld [vmem:[#allocation11 + $0x734] sm:$0xf0]  ;;  %v6827_v54 = vor.u32 %v9292_v22, %v6826_v21 }
 0x176   :  { %v9503_v29 = vld [vmem:[#allocation11 + $0xc14] sm:$0xf]  ;;  %3010 = vmatmul.bf16.vlgmr.msrb.gmra.mxu3 %v10173_v51  ;;  %v2765_v25 = vadd.f32 %v2764_v23, %v10247_v19  ;;  %v6506_v40 = vld [vmem:[#allocation11 + $0x2d8] sm:$0xf] }
 0x177   :  { %v7684_v31 = vld [vmem:[#allocation11 + $0xc30] sm:$0xf0]  ;;  %3034 = vmatpush.bf16.msrb.mxu0 %v7207_v38  ;;  %v9212_v41 = vld [vmem:[#allocation11 + $0x2f4] sm:$0xf0] }
 0x178   :  { %v7428_v33 = vld [vmem:[#allocation11 + $0xa30] sm:$0xf0]  ;;  %v7687_v43 = vor.u32 %v9503_v29, %v7684_v31  ;;  %3023 = vmatmul.bf16.vlgmr.msrb.gmra.mxu1 %v10177_v57  ;;  %v9220_v29 = vld [vmem:[#allocation11 + $0x334] sm:$0xf0]  ;;  %v2778_v4 = vadd.f32 %v2777_v63, %v2765_v25 }
 0x179   :  { %v9375_v42 = vld [vmem:[#allocation11 + $0x814] sm:$0xf]  ;;  %v7431_v60 = vor.u32 %v9439_v28, %v7428_v33  ;;  %3067 = vmatpush.bf16.msra.mxu1 %v6379_v39  ;;  %v6283_v28 = vor.u32 %v9156_v20, %v6282_v18  ;;  %v7050_v31 = vld [vmem:[#allocation11 + $0x718] sm:$0xf]  ;;  %v6539_v38 = vor.u32 %v9220_v29, %v6538_v27  ;;  %v2818_v29 = vpop.f32.mrf.mxu0 }
 0x17a   :  { %v7172_v44 = vld [vmem:[#allocation11 + $0x830] sm:$0xf0]  ;;  %3061 = vmatpush.bf16.msra.mxu3 %v7687_v43  ;;  %v6250_v33 = vld [vmem:[#allocation11 + $0xd8] sm:$0xf]  ;;  %v7051_v39 = vor.u32 %v9348_v32, %v7050_v31  ;;  %v2791_v14 = vadd.f32 %v10249_v37, %v2778_v4 }
 0x17b   :  { %v7175_v59 = vor.u32 %v9375_v42, %v7172_v44  ;;  %3048 = vmatpush.bf16.msra.mxu2 %v7431_v60  ;;  %v6251_v19 = vor.u32 %v9148_v5, %v6250_v33  ;;  %v7018_v42 = vld [vmem:[#allocation11 + $0x6d8] sm:$0xf]  ;;  %v6795_v44 = vor.u32 %v9284_v36, %v6794_v34 }
 0x17c   :  { %v9340_v43 = vld [vmem:[#allocation11 + $0x6f4] sm:$0xf0] }
 0x17d   :  { %3035 = vmatpush.bf16.msrb.mxu0 %v7175_v59  ;;  %3068 = vmatpush.bf16.msra.mxu1 %v6347_v62  ;;  %v6218_v46 = vld [vmem:[#allocation11 + $0x98] sm:$0xf]  ;;  %v7019_v58 = vor.u32 %v9340_v43, %v7018_v42  ;;  %v2766_v59 = vpop.f32.mrf.mxu1  ;;  %v2779_v42 = vpop.f32.mrf.mxu3 }
 0x17e   :  { %3080 = vmatpush.bf16.msrb.mxu3 %v6635_v53  ;;  %3049 = vmatmul.bf16.vlgmr.msra.gmra.mxu2 %v10191_v35  ;;  %v9140_v47 = vld [vmem:[#allocation11 + $0xb4] sm:$0xf0]  ;;  %v544_v53 = vperm.slane %v10256_v50, 3  ;;  %v6572_v42 = vld [vmem:[#allocation11 + $0x378] sm:$0xf0] }
 0x17f   :  { %3106 = vmatpush.bf16.msrb.mxu2 %v7147_v56  ;;  %v6762_v60 = vld [vmem:[#allocation11 + $0x4d8] sm:$0xf]  ;;  %v6507_v56 = vor.u32 %v9212_v41, %v6506_v40  ;;  %v6219_v0 = vor.u32 %v9140_v47, %v6218_v46  ;;  %v9176_v46 = vld [vmem:[#allocation11 + $0x1dc] sm:$0xf] }
 0x180   :  { %3036 = vmatmul.bf16.vlgmr.msrb.gmra.mxu0 %v10189_v30  ;;  %v9276_v49 = vld [vmem:[#allocation11 + $0x4f4] sm:$0xf0]  ;;  %v6380_v47 = vld [vmem:[#allocation11 + $0x1f8] sm:$0xf0] }
 0x181   :  { %3093 = vmatpush.bf16.msra.mxu0 %v6891_v2  ;;  %3069 = vmatpush.bf16.msra.mxu1 %v6315_v61  ;;  %v6474_v62 = vld [vmem:[#allocation11 + $0x298] sm:$0xf]  ;;  %v6763_v6 = vor.u32 %v9276_v49, %v6762_v60 }
 0x182   :  { %3081 = vmatpush.bf16.msrb.mxu3 %v6603_v9  ;;  %v9204_v1 = vld [vmem:[#allocation11 + $0x2b4] sm:$0xf0] }
 0x183   :  { %3107 = vmatpush.bf16.msrb.mxu2 %v7115_v10  ;;  %v6986_v2 = vld [vmem:[#allocation11 + $0x698] sm:$0xf]  ;;  %v2803_v10 = vpop.f32.mrf.mxu2  ;;  %v6475_v15 = vor.u32 %v9204_v1, %v6474_v62  ;;  %v6383_v1 = vor.u32 %v9176_v46, %v6380_v47 }
 0x184   :  { %v9332_v3 = vld [vmem:[#allocation11 + $0x6b4] sm:$0xf0]  ;;  %v2804_v61 = vadd.f32 %v2803_v10, %v544_v53 }
 0x185   :  { %3094 = vmatpush.bf16.msra.mxu0 %v6859_v17  ;;  %3070 = vmatpush.bf16.msra.mxu1 %v6283_v28  ;;  %v6186_v8 = vld [vmem:[#allocation11 + $0x58] sm:$0xf]  ;;  %v6987_v16 = vor.u32 %v9332_v3, %v6986_v2  ;;  %v2829_v29 = vpop.f32.mrf.mxu1 }
 0x186   :  { %3082 = vmatpush.bf16.msrb.mxu3 %v6571_v24  ;;  %v9132_v9 = vld [vmem:[#allocation11 + $0x74] sm:$0xf0]  ;;  %v10262_v24 = vadd.f32 %v2816_v48, %v2804_v61  ;;  %v9240_v61 = vld [vmem:[#allocation11 + $0x3dc] sm:$0xf] }
 0x187   :  { %3108 = vmatpush.bf16.msrb.mxu2 %v7083_v26  ;;  %7701 = vmatmul.msk.bf16.vlgmr.msra.gmra.mxu3 %vm2517_vm0, %v10185_v45  ;;  %v6730_v11 = vld [vmem:[#allocation11 + $0x498] sm:$0xf]  ;;  %v6187_v20 = vor.u32 %v9132_v9, %v6186_v8  ;;  %v3251_v26 = vmax.f32 %v2791_v14, 0.0  ;;  %v9168_v8 = vld [vmem:[#allocation11 + $0x19c] sm:$0xf] }
 0x188   :  { %v9268_v12 = vld [vmem:[#allocation11 + $0x4b4] sm:$0xf0]  ;;  %v6348_v9 = vld [vmem:[#allocation11 + $0x1b8] sm:$0xf0] }
 0x189   :  { %3095 = vmatpush.bf16.msra.mxu0 %v6827_v54  ;;  %3071 = vmatpush.bf16.msra.mxu1 %v6251_v19  ;;  %v6442_v17 = vld [vmem:[#allocation11 + $0x258] sm:$0xf]  ;;  %v6731_v27 = vor.u32 %v9268_v12, %v6730_v11  ;;  %v10264_v54 = vpack.c.bf16 %v3251_v26, %v3251_v26  ;;  %v6636_v14 = vld [vmem:[#allocation11 + $0x3f8] sm:$0xf0] }
 0x18a   :  { %3083 = vmatpush.bf16.msrb.mxu3 %v6539_v38  ;;  %v9196_v18 = vld [vmem:[#allocation11 + $0x274] sm:$0xf0] }
 0x18b   :  { %3109 = vmatpush.bf16.msrb.mxu2 %v7051_v39  ;;  %v6954_v21 = vld [vmem:[#allocation11 + $0x658] sm:$0xf]  ;;  %v6443_v33 = vor.u32 %v9196_v18, %v6442_v17  ;;  %v2805_v60 = vpop.f32.mrf.mxu2 }
 0x18c   :  { %v9324_v22 = vld [vmem:[#allocation11 + $0x674] sm:$0xf0]  ;;  %v6252_v60 = vld [vmem:[#allocation11 + $0xf8] sm:$0xf0] }
 0x18d   :  { %3096 = vmatpush.bf16.msra.mxu0 %v6795_v44  ;;  %3072 = vmatpush.bf16.msra.mxu1 %v6219_v0  ;;  %v6154_v23 = vld [vmem:[#allocation11 + $0x18] sm:$0xf]  ;;  %v6955_v5 = vor.u32 %v9324_v22, %v6954_v21  ;;  %v9160_v21 = vld [vmem:[#allocation11 + $0x15c] sm:$0xf] }
 0x18e   :  { %3084 = vmatpush.bf16.msrb.mxu3 %v6507_v56  ;;  %v9124_v25 = vld [vmem:[#allocation11 + $0x34] sm:$0xf0]  ;;  %v6316_v22 = vld [vmem:[#allocation11 + $0x178] sm:$0xf0] }
 0x18f   :  { %3110 = vmatpush.bf16.msrb.mxu2 %v7019_v58  ;;  %v6698_v28 = vld [vmem:[#allocation11 + $0x458] sm:$0xf]  ;;  %v6155_v39 = vor.u32 %v9124_v25, %v6154_v23  ;;  %v6639_v23 = vor.u32 %v9240_v61, %v6636_v14  ;;  %v9232_v25 = vld [vmem:[#allocation11 + $0x39c] sm:$0xf] }
 0x190   :  { %v9260_v37 = vld [vmem:[#allocation11 + $0x474] sm:$0xf0] }
 0x191   :  { %3097 = vmatpush.bf16.msra.mxu0 %v6763_v6  ;;  %v7402_v31 = vld [vmem:[#allocation11 + $0x9d8] sm:$0xf]  ;;  %3073 = vmatpush.bf16.msra.mxu1 %v6187_v20  ;;  %v6699_v43 = vor.u32 %v9260_v37, %v6698_v28  ;;  %v6604_v28 = vld [vmem:[#allocation11 + $0x3b8] sm:$0xf0] }
 0x192   :  { %v9436_v32 = vld [vmem:[#allocation11 + $0x9f4] sm:$0xf0]  ;;  %3085 = vmatpush.bf16.msrb.mxu3 %v6475_v15 }
 0x193   :  { %3111 = vmatpush.bf16.msrb.mxu2 %v6987_v16  ;;  %v6410_v34 = vld [vmem:[#allocation11 + $0x218] sm:$0xf]  ;;  %v7403_v44 = vor.u32 %v9436_v32, %v7402_v31  ;;  %v6351_v16 = vor.u32 %v9168_v8, %v6348_v9  ;;  %v6319_v31 = vor.u32 %v9160_v21, %v6316_v22  ;;  %v9136_v8 = vld [vmem:[#allocation11 + $0x9c] sm:$0xf] }
 0x194   :  { %v9188_v36 = vld [vmem:[#allocation11 + $0x234] sm:$0xf0]  ;;  %v6220_v9 = vld [vmem:[#allocation11 + $0xb8] sm:$0xf0] }
 0x195   :  { %v6922_v38 = vld [vmem:[#allocation11 + $0x618] sm:$0xf]  ;;  %3098 = vmatpush.bf16.msra.mxu0 %v6731_v27  ;;  %v6411_v58 = vor.u32 %v9188_v36, %v6410_v34  ;;  %3074 = vmatpush.bf16.msra.mxu1 %v6155_v39  ;;  %v9152_v36 = vld [vmem:[#allocation11 + $0x11c] sm:$0xf]  ;;  %v6607_v39 = vor.u32 %v9232_v25, %v6604_v28 }
 0x196   :  { %v9316_v40 = vld [vmem:[#allocation11 + $0x634] sm:$0xf0]  ;;  %3086 = vmatpush.bf16.msrb.mxu3 %v6443_v33  ;;  %v2830_v33 = vadd.f32 %v2829_v29, %v10262_v24 }
 0x197   :  { %v7658_v19 = vld [vmem:[#allocation11 + $0xbd8] sm:$0xf]  ;;  %3112 = vmatpush.bf16.msrb.mxu2 %v6955_v5  ;;  %v6923_v59 = vor.u32 %v9316_v40, %v6922_v38  ;;  %v6284_v38 = vld [vmem:[#allocation11 + $0x138] sm:$0xf0] }
 0x198   :  { %v9500_v41 = vld [vmem:[#allocation11 + $0xbf4] sm:$0xf0]  ;;  %3075 = vmatmul.bf16.vlgmr.msra.gmra.mxu1 %v10175_v55 }
 0x199   :  { %v6666_v48 = vld [vmem:[#allocation11 + $0x418] sm:$0xf]  ;;  %v7659_v0 = vor.u32 %v9500_v41, %v7658_v19  ;;  %3099 = vmatpush.bf16.msra.mxu0 %v6699_v43  ;;  %3119 = vmatpush.bf16.msrb.mxu1 %v7403_v44  ;;  %v9224_v41 = vld [vmem:[#allocation11 + $0x35c] sm:$0xf]  ;;  %v6287_v44 = vor.u32 %v9152_v36, %v6284_v38 }
 0x19a   :  { %v9252_v49 = vld [vmem:[#allocation11 + $0x434] sm:$0xf0]  ;;  %3087 = vmatpush.bf16.msrb.mxu3 %v6411_v58  ;;  %v9216_v58 = vld [vmem:[#allocation11 + $0x31c] sm:$0xf] }
 0x19b   :  { %v7370_v53 = vld [vmem:[#allocation11 + $0x998] sm:$0xf]  ;;  %v6667_v3 = vor.u32 %v9252_v49, %v6666_v48  ;;  %3113 = vmatpush.bf16.msrb.mxu2 %v6923_v59  ;;  %v9144_v48 = vld [vmem:[#allocation11 + $0xdc] sm:$0xf]  ;;  %v6575_v49 = vor.u32 %v9224_v41, %v6572_v42 }
 0x19c   :  { %v9428_v56 = vld [vmem:[#allocation11 + $0x9b4] sm:$0xf0]  ;;  %v6540_v59 = vld [vmem:[#allocation11 + $0x338] sm:$0xf0] }
 0x19d   :  { %v7690_v62 = vld [vmem:[#allocation11 + $0xc18] sm:$0xf]  ;;  %v7371_v4 = vor.u32 %v9428_v56, %v7370_v53  ;;  %3100 = vmatpush.bf16.msra.mxu0 %v6667_v3  ;;  %3088 = vmatmul.bf16.vlgmr.msrb.gmra.mxu3 %v10181_v7  ;;  %v2842_v3 = vpop.f32.mrf.mxu3 }
 0x19e   :  { %v9508_v63 = vld [vmem:[#allocation11 + $0xc34] sm:$0xf0]  ;;  %3132 = vmatpush.bf16.msra.mxu3 %v7659_v0  ;;  %3114 = vmatmul.bf16.vlgmr.msrb.gmra.mxu2 %v10177_v57 }
 0x19f   :  { %v7626_v2 = vld [vmem:[#allocation11 + $0xb98] sm:$0xf]  ;;  %v7691_v10 = vor.u32 %v9508_v63, %v7690_v62  ;;  %3158 = vmatpush.bf16.msra.mxu2 %v6383_v1  ;;  %3120 = vmatpush.bf16.msrb.mxu1 %v7371_v4  ;;  %v2868_v62 = vpop.f32.mrf.mxu0  ;;  %v2831_v63 = vpop.f32.mrf.mxu1  ;;  %v6255_v1 = vor.u32 %v9144_v48, %v6252_v60  ;;  %v6444_v60 = vld [vmem:[#allocation11 + $0x278] sm:$0xf0] }
 0x1a0   :  { %v9492_v6 = vld [vmem:[#allocation11 + $0xbb4] sm:$0xf0]  ;;  %3101 = vmatmul.bf16.vlgmr.msra.gmra.mxu0 %v10173_v51 }
 0x1a1   :  { %v7338_v11 = vld [vmem:[#allocation11 + $0x958] sm:$0xf]  ;;  %v7627_v15 = vor.u32 %v9492_v6, %v7626_v2  ;;  %3152 = vmatpush.bf16.msrb.mxu0 %v7691_v10  ;;  %v2843_v10 = vadd.f32 %v2842_v3, %v2830_v33  ;;  %v9304_v33 = vld [vmem:[#allocation11 + $0x5dc] sm:$0xf] }
 0x1a2   :  { %v9420_v12 = vld [vmem:[#allocation11 + $0x974] sm:$0xf0] }
 0x1a3   :  { %v7594_v17 = vld [vmem:[#allocation11 + $0xb58] sm:$0xf]  ;;  %v7339_v18 = vor.u32 %v9420_v12, %v7338_v11  ;;  %3133 = vmatpush.bf16.msra.mxu3 %v7627_v15  ;;  %3159 = vmatpush.bf16.msra.mxu2 %v6351_v16  ;;  %v2855_v11 = vpop.f32.mrf.mxu2  ;;  %v6543_v12 = vor.u32 %v9216_v58, %v6540_v59  ;;  %v9208_v15 = vld [vmem:[#allocation11 + $0x2dc] sm:$0xf] }
 0x1a4   :  { %v9484_v20 = vld [vmem:[#allocation11 + $0xb74] sm:$0xf0]  ;;  %v6508_v16 = vld [vmem:[#allocation11 + $0x2f8] sm:$0xf0] }
 0x1a5   :  { %v7306_v26 = vld [vmem:[#allocation11 + $0x918] sm:$0xf]  ;;  %v7595_v37 = vor.u32 %v9484_v20, %v7594_v17  ;;  %3121 = vmatpush.bf16.msrb.mxu1 %v7339_v18  ;;  %3171 = vmatpush.bf16.msra.mxu0 %v6639_v23  ;;  %v2856_v17 = vadd.f32 %v2855_v11, %v2843_v10  ;;  %v6223_v20 = vor.u32 %v9136_v8, %v6220_v9  ;;  %v9432_v59 = vld [vmem:[#allocation11 + $0x9dc] sm:$0xf] }
 0x1a6   :  { %v9412_v27 = vld [vmem:[#allocation11 + $0x934] sm:$0xf0]  ;;  %v6511_v28 = vor.u32 %v9208_v15, %v6508_v16  ;;  %v6412_v10 = vld [vmem:[#allocation11 + $0x238] sm:$0xf0] }
 0x1a7   :  { %v7562_v32 = vld [vmem:[#allocation11 + $0xb18] sm:$0xf]  ;;  %v7307_v5 = vor.u32 %v9412_v27, %v7306_v26  ;;  %3134 = vmatpush.bf16.msra.mxu3 %v7595_v37  ;;  %3160 = vmatpush.bf16.msra.mxu2 %v6319_v31  ;;  %v9128_v26 = vld [vmem:[#allocation11 + $0x5c] sm:$0xf]  ;;  %v2869_v25 = vadd.f32 %v2868_v62, %v2856_v17  ;;  %v2881_v36 = vpop.f32.mrf.mxu1 }
 0x1a8   :  { %v9476_v34 = vld [vmem:[#allocation11 + $0xb34] sm:$0xf0]  ;;  %v6188_v27 = vld [vmem:[#allocation11 + $0x78] sm:$0xf0] }
 0x1a9   :  { %v7274_v40 = vld [vmem:[#allocation11 + $0x8d8] sm:$0xf]  ;;  %v7563_v43 = vor.u32 %v9476_v34, %v7562_v32  ;;  %3122 = vmatpush.bf16.msrb.mxu1 %v7307_v5  ;;  %3172 = vmatpush.bf16.msra.mxu0 %v6607_v39  ;;  %v9200_v31 = vld [vmem:[#allocation11 + $0x29c] sm:$0xf]  ;;  %v2870_v34 = vpop.f32.mrf.mxu0  ;;  %v6191_v39 = vor.u32 %v9128_v26, %v6188_v27  ;;  %v2882_v41 = vadd.f32 %v2881_v36, %v2869_v25 }
 0x1aa   :  { %v9404_v19 = vld [vmem:[#allocation11 + $0x8f4] sm:$0xf0]  ;;  %v6476_v32 = vld [vmem:[#allocation11 + $0x2b8] sm:$0xf0] }
 0x1ab   :  { %v7530_v46 = vld [vmem:[#allocation11 + $0xad8] sm:$0xf]  ;;  %v7275_v24 = vor.u32 %v9404_v19, %v7274_v40  ;;  %3135 = vmatpush.bf16.msra.mxu3 %v7563_v43  ;;  %3161 = vmatpush.bf16.msra.mxu2 %v6287_v44  ;;  %v6892_v5 = vld [vmem:[#allocation11 + $0x5f8] sm:$0xf0]  ;;  %v3252_v58 = vmax.f32 %v2882_v41, 0.0 }
 0x1ac   :  { %v9468_v47 = vld [vmem:[#allocation11 + $0xaf4] sm:$0xf0]  ;;  %v9120_v43 = vld [vmem:[#allocation11 + $0x1c] sm:$0xf]  ;;  %v6895_v48 = vor.u32 %v9304_v33, %v6892_v5 }
 0x1ad   :  { %v7242_v53 = vld [vmem:[#allocation11 + $0x898] sm:$0xf]  ;;  %v7531_v0 = vor.u32 %v9468_v47, %v7530_v46  ;;  %3123 = vmatpush.bf16.msrb.mxu1 %v7275_v24  ;;  %3173 = vmatpush.bf16.msra.mxu0 %v6575_v49  ;;  %v6156_v44 = vld [vmem:[#allocation11 + $0x38] sm:$0xf0]  ;;  %v2844_v24 = vpop.f32.mrf.mxu3  ;;  %v6479_v47 = vor.u32 %v9200_v31, %v6476_v32 }
 0x1ae   :  { %v9396_v56 = vld [vmem:[#allocation11 + $0x8b4] sm:$0xf0]  ;;  %v9192_v46 = vld [vmem:[#allocation11 + $0x25c] sm:$0xf]  ;;  %v6159_v3 = vor.u32 %v9120_v43, %v6156_v44 }
 0x1af   :  { %v7498_v2 = vld [vmem:[#allocation11 + $0xa98] sm:$0xf]  ;;  %v7243_v4 = vor.u32 %v9396_v56, %v7242_v53  ;;  %3136 = vmatpush.bf16.msra.mxu3 %v7531_v0  ;;  %3162 = vmatpush.bf16.msra.mxu2 %v6255_v1  ;;  %v9368_v49 = vld [vmem:[#allocation11 + $0x7dc] sm:$0xf]  ;;  %v2857_v56 = vpop.f32.mrf.mxu2  ;;  %v6447_v8 = vor.u32 %v9192_v46, %v6444_v60 }
 0x1b0   :  { %v9460_v6 = vld [vmem:[#allocation11 + $0xab4] sm:$0xf0]  ;;  %7702 = vmatmul.msk.bf16.vlgmr.msrb.gmra.mxu0 %vm2517_vm0, %v10185_v45  ;;  %v7148_v53 = vld [vmem:[#allocation11 + $0x7f8] sm:$0xf0] }
 0x1b1   :  { %v7210_v61 = vld [vmem:[#allocation11 + $0x858] sm:$0xf]  ;;  %v7499_v18 = vor.u32 %v9460_v6, %v7498_v2  ;;  %3124 = vmatpush.bf16.msrb.mxu1 %v7243_v4  ;;  %3174 = vmatpush.bf16.msra.mxu0 %v6543_v12  ;;  %v7404_v62 = vld [vmem:[#allocation11 + $0x9f8] sm:$0xf0]  ;;  %v10273_v2 = vpack.c.bf16 %v3252_v58, %v3252_v58  ;;  %v7151_v4 = vor.u32 %v9368_v49, %v7148_v53 }
 0x1b2   :  { %v9388_v14 = vld [vmem:[#allocation11 + $0x874] sm:$0xf0]  ;;  %v9296_v0 = vld [vmem:[#allocation11 + $0x59c] sm:$0xf]  ;;  %v7407_v9 = vor.u32 %v9432_v59, %v7404_v62 }
 0x1b3   :  { %v7466_v21 = vld [vmem:[#allocation11 + $0xa58] sm:$0xf]  ;;  %v7211_v22 = vor.u32 %v9388_v14, %v7210_v61  ;;  %3137 = vmatpush.bf16.msra.mxu3 %v7499_v18  ;;  %3163 = vmatpush.bf16.msra.mxu2 %v6223_v20  ;;  %v6860_v1 = vld [vmem:[#allocation11 + $0x5b8] sm:$0xf0] }
 0x1b4   :  { %v9452_v23 = vld [vmem:[#allocation11 + $0xa74] sm:$0xf0]  ;;  %v9184_v6 = vld [vmem:[#allocation11 + $0x21c] sm:$0xf]  ;;  %v6863_v61 = vor.u32 %v9296_v0, %v6860_v1  ;;  %v545_v0 = vperm.slane %v10256_v50, 4 }
 0x1b5   :  { %v7178_v29 = vld [vmem:[#allocation11 + $0x818] sm:$0xf]  ;;  %v7467_v38 = vor.u32 %v9452_v23, %v7466_v21  ;;  %3125 = vmatpush.bf16.msrb.mxu1 %v7211_v22  ;;  %3175 = vmatpush.bf16.msra.mxu0 %v6511_v28  ;;  %v9360_v11 = vld [vmem:[#allocation11 + $0x79c] sm:$0xf]  ;;  %v2883_v21 = vpop.f32.mrf.mxu1  ;;  %v6415_v23 = vor.u32 %v9184_v6, %v6412_v10  ;;  %v2933_v6 = vpop.f32.mrf.mxu0 }
 0x1b6   :  { %v9380_v37 = vld [vmem:[#allocation11 + $0x834] sm:$0xf0]  ;;  %v7116_v12 = vld [vmem:[#allocation11 + $0x7b8] sm:$0xf0] }
 0x1b7   :  { %v7434_v40 = vld [vmem:[#allocation11 + $0xa18] sm:$0xf]  ;;  %v7179_v42 = vor.u32 %v9380_v37, %v7178_v29  ;;  %3138 = vmatpush.bf16.msra.mxu3 %v7467_v38  ;;  %3164 = vmatpush.bf16.msra.mxu2 %v6191_v39  ;;  %v9424_v14 = vld [vmem:[#allocation11 + $0x99c] sm:$0xf]  ;;  %v7119_v22 = vor.u32 %v9360_v11, %v7116_v12  ;;  %v2920_v11 = vpop.f32.mrf.mxu2  ;;  %v2894_v12 = vpop.f32.mrf.mxu3 }
 0x1b8   :  { %v9444_v19 = vld [vmem:[#allocation11 + $0xa34] sm:$0xf0]  ;;  %v7372_v15 = vld [vmem:[#allocation11 + $0x9b8] sm:$0xf0] }
 0x1b9   :  { %v7435_v63 = vor.u32 %v9444_v19, %v7434_v40  ;;  %3126 = vmatpush.bf16.msrb.mxu1 %v7179_v42  ;;  %3176 = vmatpush.bf16.msra.mxu0 %v6479_v47  ;;  %v9288_v16 = vld [vmem:[#allocation11 + $0x55c] sm:$0xf]  ;;  %v7375_v26 = vor.u32 %v9424_v14, %v7372_v15 }
 0x1ba   :  { %v6828_v17 = vld [vmem:[#allocation11 + $0x578] sm:$0xf0] }
 0x1bb   :  { %3139 = vmatpush.bf16.msra.mxu3 %v7435_v63  ;;  %v9496_v18 = vld [vmem:[#allocation11 + $0xbdc] sm:$0xf]  ;;  %3165 = vmatpush.bf16.msra.mxu2 %v6159_v3  ;;  %v6831_v28 = vor.u32 %v9288_v16, %v6828_v17 }
 0x1bc   :  { %3127 = vmatmul.bf16.vlgmr.msrb.gmra.mxu1 %v10189_v30  ;;  %v7660_v20 = vld [vmem:[#allocation11 + $0xbf8] sm:$0xf0] }
 0x1bd   :  { %3184 = vmatpush.bf16.msra.mxu1 %v6895_v48  ;;  %3177 = vmatpush.bf16.msra.mxu0 %v6447_v8  ;;  %v9352_v27 = vld [vmem:[#allocation11 + $0x75c] sm:$0xf]  ;;  %v7663_v29 = vor.u32 %v9496_v18, %v7660_v20  ;;  %v2895_v18 = vadd.f32 %v2894_v12, %v545_v0 }
 0x1be   :  { %v7084_v25 = vld [vmem:[#allocation11 + $0x778] sm:$0xf0]  ;;  %3140 = vmatmul.bf16.vlgmr.msra.gmra.mxu3 %v10191_v35  ;;  %3166 = vmatmul.bf16.vlgmr.msra.gmra.mxu2 %v10175_v55 }
 0x1bf   :  { %3197 = vmatpush.bf16.msrb.mxu3 %v7151_v4  ;;  %3210 = vmatpush.bf16.msrb.mxu2 %v7407_v9  ;;  %v9416_v37 = vld [vmem:[#allocation11 + $0x95c] sm:$0xf]  ;;  %v7087_v36 = vor.u32 %v9352_v27, %v7084_v25  ;;  %v2907_v4 = vpop.f32.mrf.mxu1 }
 0x1c0   :  { %v7340_v31 = vld [vmem:[#allocation11 + $0x978] sm:$0xf0] }
 0x1c1   :  { %3185 = vmatpush.bf16.msra.mxu1 %v6863_v61  ;;  %v9280_v32 = vld [vmem:[#allocation11 + $0x51c] sm:$0xf]  ;;  %3178 = vmatpush.bf16.msra.mxu0 %v6415_v23  ;;  %v7343_v38 = vor.u32 %v9416_v37, %v7340_v31 }
 0x1c2   :  { %v6796_v33 = vld [vmem:[#allocation11 + $0x538] sm:$0xf0] }
 0x1c3   :  { %v9488_v5 = vld [vmem:[#allocation11 + $0xb9c] sm:$0xf]  ;;  %3198 = vmatpush.bf16.msrb.mxu3 %v7119_v22  ;;  %3211 = vmatpush.bf16.msrb.mxu2 %v7375_v26  ;;  %v6799_v19 = vor.u32 %v9280_v32, %v6796_v33  ;;  %v2908_v26 = vadd.f32 %v2907_v4, %v2895_v18 }
 0x1c4   :  { %v7628_v34 = vld [vmem:[#allocation11 + $0xbb8] sm:$0xf0]  ;;  %3179 = vmatmul.bf16.vlgmr.msra.gmra.mxu0 %v10181_v7 }
 0x1c5   :  { %v9344_v39 = vld [vmem:[#allocation11 + $0x71c] sm:$0xf]  ;;  %3186 = vmatpush.bf16.msra.mxu1 %v6831_v28  ;;  %3223 = vmatpush.bf16.msrb.mxu0 %v7663_v29  ;;  %v7631_v41 = vor.u32 %v9488_v5, %v7628_v34  ;;  %v2921_v5 = vadd.f32 %v2920_v11, %v2908_v26 }
 0x1c6   :  { %v7052_v40 = vld [vmem:[#allocation11 + $0x738] sm:$0xf0] }
 0x1c7   :  { %v9408_v42 = vld [vmem:[#allocation11 + $0x91c] sm:$0xf]  ;;  %3199 = vmatpush.bf16.msrb.mxu3 %v7087_v36  ;;  %v7055_v48 = vor.u32 %v9344_v39, %v7052_v40  ;;  %3212 = vmatpush.bf16.msrb.mxu2 %v7343_v38  ;;  %v2909_v39 = vpop.f32.mrf.mxu1  ;;  %v2935_v40 = vpop.f32.mrf.mxu0 }
 0x1c8   :  { %v7308_v43 = vld [vmem:[#allocation11 + $0x938] sm:$0xf0] }
 0x1c9   :  { %v9272_v44 = vld [vmem:[#allocation11 + $0x4dc] sm:$0xf]  ;;  %v7311_v55 = vor.u32 %v9408_v42, %v7308_v43  ;;  %3187 = vmatpush.bf16.msra.mxu1 %v6799_v19  ;;  %3224 = vmatpush.bf16.msrb.mxu0 %v7631_v41  ;;  %v2934_v43 = vadd.f32 %v2933_v6, %v2921_v5 }
 0x1ca   :  { %v6764_v46 = vld [vmem:[#allocation11 + $0x4f8] sm:$0xf0] }
 0x1cb   :  { %v9480_v24 = vld [vmem:[#allocation11 + $0xb5c] sm:$0xf]  ;;  %v6767_v56 = vor.u32 %v9272_v44, %v6764_v46  ;;  %3200 = vmatpush.bf16.msrb.mxu3 %v7055_v48  ;;  %3213 = vmatpush.bf16.msrb.mxu2 %v7311_v55 }
 0x1cc   :  { %v7596_v47 = vld [vmem:[#allocation11 + $0xb78] sm:$0xf0] }
 0x1cd   :  { %v9336_v60 = vld [vmem:[#allocation11 + $0x6dc] sm:$0xf]  ;;  %v7599_v58 = vor.u32 %v9480_v24, %v7596_v47  ;;  %3188 = vmatpush.bf16.msra.mxu1 %v6767_v56  ;;  %v2922_v47 = vpop.f32.mrf.mxu2 }
 0x1ce   :  { %v7020_v49 = vld [vmem:[#allocation11 + $0x6f8] sm:$0xf0] }
 0x1cf   :  { %v9400_v53 = vld [vmem:[#allocation11 + $0x8dc] sm:$0xf]  ;;  %v7023_v7 = vor.u32 %v9336_v60, %v7020_v49  ;;  %3225 = vmatpush.bf16.msrb.mxu0 %v7599_v58 }
 0x1d0   :  { %v7276_v59 = vld [vmem:[#allocation11 + $0x8f8] sm:$0xf0] }
 0x1d1   :  { %v9264_v62 = vld [vmem:[#allocation11 + $0x49c] sm:$0xf]  ;;  %v7279_v8 = vor.u32 %v9400_v53, %v7276_v59  ;;  %3201 = vmatpush.bf16.msrb.mxu3 %v7023_v7  ;;  %v2896_v53 = vpop.f32.mrf.mxu3 }
 0x1d2   :  { %v6732_v63 = vld [vmem:[#allocation11 + $0x4b8] sm:$0xf0] }
 0x1d3   :  { %v9472_v1 = vld [vmem:[#allocation11 + $0xb1c] sm:$0xf]  ;;  %v6735_v61 = vor.u32 %v9264_v62, %v6732_v63  ;;  %3214 = vmatpush.bf16.msrb.mxu2 %v7279_v8  ;;  %v2959_v8 = vpop.f32.mrf.mxu1 }
 0x1d4   :  { %v7564_v3 = vld [vmem:[#allocation11 + $0xb38] sm:$0xf0] }
 0x1d5   :  { %v9328_v9 = vld [vmem:[#allocation11 + $0x69c] sm:$0xf]  ;;  %v7567_v14 = vor.u32 %v9472_v1, %v7564_v3  ;;  %3189 = vmatpush.bf16.msra.mxu1 %v6735_v61  ;;  %v2972_v6 = vpop.f32.mrf.mxu2 }
 0x1d6   :  { %v6988_v10 = vld [vmem:[#allocation11 + $0x6b8] sm:$0xf0] }
 0x1d7   :  { %v9392_v15 = vld [vmem:[#allocation11 + $0x89c] sm:$0xf]  ;;  %v6991_v23 = vor.u32 %v9328_v9, %v6988_v10  ;;  %3226 = vmatpush.bf16.msrb.mxu0 %v7567_v14  ;;  %v546_v9 = vperm.slane %v10256_v50, 5  ;;  %v2985_v10 = vpop.f32.mrf.mxu0 }
 0x1d8   :  { %v7244_v16 = vld [vmem:[#allocation11 + $0x8b8] sm:$0xf0] }
 0x1d9   :  { %v9256_v17 = vld [vmem:[#allocation11 + $0x45c] sm:$0xf]  ;;  %v7247_v27 = vor.u32 %v9392_v15, %v7244_v16  ;;  %3202 = vmatpush.bf16.msrb.mxu3 %v6991_v23  ;;  %v2946_v11 = vpop.f32.mrf.mxu3  ;;  %v2986_v61 = vadd.f32 %v2985_v10, %v546_v9  ;;  %v548_v10 = vperm.slane %v10256_v50, 7 }
 0x1da   :  { %v6700_v20 = vld [vmem:[#allocation11 + $0x478] sm:$0xf0]  ;;  %v2947_v12 = vadd.f32 %v2946_v11, %v2934_v43 }
 0x1db   :  { %v9464_v21 = vld [vmem:[#allocation11 + $0xadc] sm:$0xf]  ;;  %v6703_v29 = vor.u32 %v9256_v17, %v6700_v20  ;;  %3215 = vmatpush.bf16.msrb.mxu2 %v7247_v27 }
 0x1dc   :  { %v7532_v22 = vld [vmem:[#allocation11 + $0xaf8] sm:$0xf0] }
 0x1dd   :  { %v9320_v25 = vld [vmem:[#allocation11 + $0x65c] sm:$0xf]  ;;  %v7535_v37 = vor.u32 %v9464_v21, %v7532_v22  ;;  %3190 = vmatpush.bf16.msra.mxu1 %v6703_v29  ;;  %v2974_v7 = vpop.f32.mrf.mxu2 }
 0x1de   :  { %v6956_v28 = vld [vmem:[#allocation11 + $0x678] sm:$0xf0] }
 0x1df   :  { %v9384_v31 = vld [vmem:[#allocation11 + $0x85c] sm:$0xf]  ;;  %v6959_v19 = vor.u32 %v9320_v25, %v6956_v28  ;;  %3227 = vmatpush.bf16.msrb.mxu0 %v7535_v37  ;;  %v2987_v15 = vpop.f32.mrf.mxu0 }
 0x1e0   :  { %v7212_v32 = vld [vmem:[#allocation11 + $0x878] sm:$0xf0] }
 0x1e1   :  { %v9248_v33 = vld [vmem:[#allocation11 + $0x41c] sm:$0xf]  ;;  %v7215_v44 = vor.u32 %v9384_v31, %v7212_v32  ;;  %3203 = vmatpush.bf16.msrb.mxu3 %v6959_v19  ;;  %v2948_v16 = vpop.f32.mrf.mxu3 }
 0x1e2   :  { %v6668_v34 = vld [vmem:[#allocation11 + $0x438] sm:$0xf0] }
 0x1e3   :  { %v9456_v36 = vld [vmem:[#allocation11 + $0xa9c] sm:$0xf]  ;;  %v6671_v48 = vor.u32 %v9248_v33, %v6668_v34  ;;  %3216 = vmatpush.bf16.msrb.mxu2 %v7215_v44 }
 0x1e4   :  { %v7500_v38 = vld [vmem:[#allocation11 + $0xab8] sm:$0xf0] }
 0x1e5   :  { %v9504_v41 = vld [vmem:[#allocation11 + $0xc1c] sm:$0xf]  ;;  %v7503_v55 = vor.u32 %v9456_v36, %v7500_v38  ;;  %3191 = vmatpush.bf16.msra.mxu1 %v6671_v48 }
 0x1e6   :  { %v7692_v42 = vld [vmem:[#allocation11 + $0xc38] sm:$0xf0] }
 0x1e7   :  { %v9312_v46 = vld [vmem:[#allocation11 + $0x61c] sm:$0xf]  ;;  %v7695_v56 = vor.u32 %v9504_v41, %v7692_v42  ;;  %3228 = vmatpush.bf16.msrb.mxu0 %v7503_v55 }
 0x1e8   :  { %v6924_v24 = vld [vmem:[#allocation11 + $0x638] sm:$0xf0]  ;;  %3192 = vmatmul.bf16.vlgmr.msra.gmra.mxu1 %v10173_v51  ;;  %v2960_v51 = vadd.f32 %v2959_v8, %v2947_v12 }
 0x1e9   :  { %v9376_v60 = vld [vmem:[#allocation11 + $0x81c] sm:$0xf]  ;;  %v6927_v62 = vor.u32 %v9312_v46, %v6924_v24  ;;  %3243 = vmatpush.bf16.msrb.mxu1 %v7695_v56  ;;  %v547_v24 = vperm.slane %v10256_v50, 6 }
 0x1ea   :  { %v7180_v49 = vld [vmem:[#allocation11 + $0x838] sm:$0xf0] }
 0x1eb   :  { %v9448_v58 = vld [vmem:[#allocation11 + $0xa5c] sm:$0xf]  ;;  %v7183_v63 = vor.u32 %v9376_v60, %v7180_v49  ;;  %3204 = vmatpush.bf16.msrb.mxu3 %v6927_v62 }
 0x1ec   :  { %v7468_v59 = vld [vmem:[#allocation11 + $0xa78] sm:$0xf0] }
 0x1ed   :  { %v7471_v0 = vor.u32 %v9448_v58, %v7468_v59  ;;  %v9440_v1 = vld [vmem:[#allocation11 + $0xa1c] sm:$0xf]  ;;  %3217 = vmatpush.bf16.msrb.mxu2 %v7183_v63 }
 0x1ee   :  { %v7436_v3 = vld [vmem:[#allocation11 + $0xa38] sm:$0xf0]  ;;  %3205 = vmatmul.bf16.vlgmr.msrb.gmra.mxu3 %v10177_v57  ;;  %v2998_v57 = vpop.f32.mrf.mxu2 }
 0x1ef   :  { %3229 = vmatpush.bf16.msrb.mxu0 %v7471_v0  ;;  %v7439_v4 = vor.u32 %v9440_v1, %v7436_v3  ;;  %v2999_v14 = vadd.f32 %v2998_v57, %v2986_v61 }
 0x1f0   :  { %3218 = vmatmul.bf16.vlgmr.msrb.gmra.mxu2 %v10189_v30  ;;  %v2973_v30 = vadd.f32 %v2972_v6, %v2960_v51 }
 0x1f3   :  { %3230 = vmatpush.bf16.msrb.mxu0 %v7439_v4 }
 0x1f6   :  { %3231 = vmatmul.bf16.vlgmr.msrb.gmra.mxu0 %v10191_v35  ;;  %v2961_v35 = vpop.f32.mrf.mxu1  ;;  %v3000_v18 = vpop.f32.mrf.mxu2 }
 0x1f8   :  { %7703 = vmatmul.msk.bf16.vlgmr.msrb.gmra.mxu1 %vm2517_vm0, %v10185_v45  ;;  %v3253_v45 = vmax.f32 %v2973_v30, 0.0 }
 0x1f9   :  { %v3011_v21 = vpop.f32.mrf.mxu3 }
 0x1fa   :  { %v10296_v17 = vpack.c.bf16 %v3253_v45, %v3253_v45  ;;  %v3012_v23 = vadd.f32 %v3011_v21, %v2999_v14 }
 0x1fd   :  { %v3037_v22 = vpop.f32.mrf.mxu0 }
 0x1fe   :  { %v3024_v20 = vpop.f32.mrf.mxu1 }
 0x1ff   :  { %v3025_v26 = vadd.f32 %v3024_v20, %v3012_v23 }
 0x201   :  { %v3050_v27 = vpop.f32.mrf.mxu2  ;;  %v3038_v25 = vadd.f32 %v3037_v22, %v3025_v26  ;;  %v3013_v37 = vpop.f32.mrf.mxu3 }
 0x203   :  { %v3051_v29 = vadd.f32 %v3050_v27, %v3038_v25 }
 0x205   :  { %v3039_v31 = vpop.f32.mrf.mxu0 }
 0x206   :  { %v3026_v28 = vpop.f32.mrf.mxu1 }
 0x209   :  { %v3052_v32 = vpop.f32.mrf.mxu2 }
 0x20a   :  { %v3063_v33 = vpop.f32.mrf.mxu3 }
 0x20b   :  { %v3064_v5 = vadd.f32 %v3063_v33, %v3051_v29 }
 0x20d   :  { %v3254_v34 = vmax.f32 %v3064_v5, 0.0 }
 0x20f   :  { %v10304_v36 = vpack.c.bf16 %v3254_v34, %v3254_v34 }
 0x212   :  { %v3065_v38 = vpop.f32.mrf.mxu3 }
 0x215   :  { %v3076_v39 = vpop.f32.mrf.mxu1 }
 0x216   :  { %v3077_v48 = vadd.f32 %v3076_v39, %v547_v24 }
 0x21d   :  { %v3102_v40 = vpop.f32.mrf.mxu0  ;;  %v3078_v42 = vpop.f32.mrf.mxu1 }
 0x220   :  { %v3089_v19 = vpop.f32.mrf.mxu3 }
 0x221   :  { %v3115_v41 = vpop.f32.mrf.mxu2  ;;  %v3090_v55 = vadd.f32 %v3089_v19, %v3077_v48 }
 0x223   :  { %v3103_v53 = vadd.f32 %v3102_v40, %v3090_v55 }
 0x225   :  { %v3104_v43 = vpop.f32.mrf.mxu0  ;;  %v3116_v56 = vadd.f32 %v3115_v41, %v3103_v53 }
 0x228   :  { %v3091_v44 = vpop.f32.mrf.mxu3 }
 0x229   :  { %v3117_v46 = vpop.f32.mrf.mxu2 }
 0x22d   :  { %v3154_v47 = vpop.f32.mrf.mxu0 }
 0x235   :  { %v3156_v49 = vpop.f32.mrf.mxu0 }
 0x239   :  { %v3128_v60 = vpop.f32.mrf.mxu1 }
 0x23a   :  { %v3129_v58 = vadd.f32 %v3128_v60, %v3116_v56 }
 0x241   :  { %v3130_v59 = vpop.f32.mrf.mxu1  ;;  %v3141_v62 = vpop.f32.mrf.mxu3 }
 0x242   :  { %v3180_v63 = vpop.f32.mrf.mxu0  ;;  %v3142_v0 = vadd.f32 %v3141_v62, %v3129_v58  ;;  %v3167_v1 = vpop.f32.mrf.mxu2 }
 0x243   :  { %v3168_v11 = vadd.f32 %v3167_v1, %v548_v10 }
 0x244   :  { %v3155_v3 = vadd.f32 %v3154_v47, %v3142_v0 }
 0x245   :  { %v3181_v61 = vadd.f32 %v3180_v63, %v3168_v11 }
 0x246   :  { %v3255_v4 = vmax.f32 %v3155_v3, 0.0 }
 0x248   :  { %v10307_v6 = vpack.c.bf16 %v3255_v4, %v3255_v4 }
 0x249   :  { %v3143_v7 = vpop.f32.mrf.mxu3 }
 0x24a   :  { %v3182_v8 = vpop.f32.mrf.mxu0  ;;  %v3169_v9 = vpop.f32.mrf.mxu2 }
 0x265   :  { %v3193_v12 = vpop.f32.mrf.mxu1 }
 0x266   :  { %v3194_v51 = vadd.f32 %v3193_v12, %v3181_v61 }
 0x26d   :  { %v3195_v57 = vpop.f32.mrf.mxu1 }
 0x271   :  { %v3206_v35 = vpop.f32.mrf.mxu3 }
 0x272   :  { %v3207_v15 = vadd.f32 %v3206_v35, %v3194_v51 }
 0x273   :  { %v3232_v30 = vpop.f32.mrf.mxu0  ;;  %v3219_v14 = vpop.f32.mrf.mxu2 }
 0x274   :  { %v3220_v45 = vadd.f32 %v3219_v14, %v3207_v15 }
 0x275   :  { %v3245_v20 = vpop.f32.mrf.mxu1 }
 0x276   :  { %v3233_v16 = vadd.f32 %v3232_v30, %v3220_v45 }
 0x278   :  { %v3246_v21 = vadd.f32 %v3245_v20, %v3233_v16 }
 0x279   :  { %v3208_v22 = vpop.f32.mrf.mxu3 }
 0x27a   :  { %v3256_v26 = vmax.f32 %v3246_v21, 0.0 }
 0x27b   :  { %v3234_v18 = vpop.f32.mrf.mxu0  ;;  %v3221_v23 = vpop.f32.mrf.mxu2 }
 0x27c   :  { %v10310_v27 = vpack.c.bf16 %v3256_v26, %v3256_v26 }
 0x27d   :  { %v3247_v50 = vpop.f32.mrf.mxu1 }
 0x27e   :  { %10096 = dma.done.wait [#allocation7], 32768 }
 0x27f   :  { %10097 = vsyncadd [#allocation7], 4294934528  ;;  %v7818_v25 = vld [vmem:[#allocation2 + $0xe0] sm:$0xf]  ;;  %v9539_v28 = vld [vmem:[#allocation2 + $0xec] sm:$0xf0] }
 0x280   :  { %v7946_v29 = vld [vmem:[#allocation2 + $0x1e0] sm:$0xf]  ;;  %v7819_v37 = vor.u32 %v9539_v28, %v7818_v25  ;;  %v9571_v31 = vld [vmem:[#allocation2 + $0x1ec] sm:$0xf0] }
 0x281   :  { %v8074_v32 = vld [vmem:[#allocation2 + $0x2e0] sm:$0xf]  ;;  %v9603_v33 = vld [vmem:[#allocation2 + $0x2ec] sm:$0xf0]  ;;  %v7947_v5 = vor.u32 %v9571_v31, %v7946_v29 }
 0x282   :  { %v8075_v34 = vor.u32 %v9603_v33, %v8074_v32  ;;  %v8202_v38 = vld [vmem:[#allocation2 + $0x3e0] sm:$0xf]  ;;  %v9635_v39 = vld [vmem:[#allocation2 + $0x3ec] sm:$0xf0]  ;;  %4815 = vmatpush.bf16.msra.mxu3 %v7819_v37 }
 0x283   :  { %v7802_v40 = vld [vmem:[#allocation2 + $0xc0] sm:$0xf]  ;;  %v8203_v19 = vor.u32 %v9635_v39, %v8202_v38  ;;  %v9535_v41 = vld [vmem:[#allocation2 + $0xcc] sm:$0xf0]  ;;  %4828 = vmatpush.bf16.msra.mxu1 %v7947_v5 }
 0x284   :  { %v7930_v42 = vld [vmem:[#allocation2 + $0x1c0] sm:$0xf]  ;;  %v9567_v43 = vld [vmem:[#allocation2 + $0x1cc] sm:$0xf0]  ;;  %4841 = vmatpush.bf16.msra.mxu2 %v8075_v34  ;;  %v7803_v44 = vor.u32 %v9535_v41, %v7802_v40 }
 0x285   :  { %v7931_v46 = vor.u32 %v9567_v43, %v7930_v42  ;;  %v8058_v24 = vld [vmem:[#allocation2 + $0x2c0] sm:$0xf]  ;;  %v9599_v47 = vld [vmem:[#allocation2 + $0x2cc] sm:$0xf0]  ;;  %4854 = vmatpush.bf16.msra.mxu0 %v8203_v19 }
 0x286   :  { %v8186_v48 = vld [vmem:[#allocation2 + $0x3c0] sm:$0xf]  ;;  %v8059_v55 = vor.u32 %v9599_v47, %v8058_v24  ;;  %v9631_v60 = vld [vmem:[#allocation2 + $0x3cc] sm:$0xf0]  ;;  %4816 = vmatpush.bf16.msra.mxu3 %v7803_v44 }
 0x287   :  { %v7786_v49 = vld [vmem:[#allocation2 + $0xa0] sm:$0xf]  ;;  %v9531_v53 = vld [vmem:[#allocation2 + $0xac] sm:$0xf0]  ;;  %v8187_v56 = vor.u32 %v9631_v60, %v8186_v48  ;;  %4829 = vmatpush.bf16.msra.mxu1 %v7931_v46 }
 0x288   :  { %v7914_v58 = vld [vmem:[#allocation2 + $0x1a0] sm:$0xf]  ;;  %v9563_v59 = vld [vmem:[#allocation2 + $0x1ac] sm:$0xf0]  ;;  %v7787_v63 = vor.u32 %v9531_v53, %v7786_v49  ;;  %4842 = vmatpush.bf16.msra.mxu2 %v8059_v55 }
 0x289   :  { %v8042_v62 = vld [vmem:[#allocation2 + $0x2a0] sm:$0xf]  ;;  %v9595_v0 = vld [vmem:[#allocation2 + $0x2ac] sm:$0xf0]  ;;  %v7915_v4 = vor.u32 %v9563_v59, %v7914_v58  ;;  %4855 = vmatpush.bf16.msra.mxu0 %v8187_v56 }
 0x28a   :  { %v8170_v1 = vld [vmem:[#allocation2 + $0x3a0] sm:$0xf]  ;;  %v9627_v3 = vld [vmem:[#allocation2 + $0x3ac] sm:$0xf0]  ;;  %v8043_v7 = vor.u32 %v9595_v0, %v8042_v62  ;;  %4817 = vmatpush.bf16.msra.mxu3 %v7787_v63 }
 0x28b   :  { %v7770_v8 = vld [vmem:[#allocation2 + $0x80] sm:$0xf]  ;;  %v9527_v9 = vld [vmem:[#allocation2 + $0x8c] sm:$0xf0]  ;;  %v8171_v11 = vor.u32 %v9627_v3, %v8170_v1  ;;  %4830 = vmatpush.bf16.msra.mxu1 %v7915_v4 }
 0x28c   :  { %v7898_v10 = vld [vmem:[#allocation2 + $0x180] sm:$0xf]  ;;  %v9559_v12 = vld [vmem:[#allocation2 + $0x18c] sm:$0xf0]  ;;  %v7771_v35 = vor.u32 %v9527_v9, %v7770_v8  ;;  %4843 = vmatpush.bf16.msra.mxu2 %v8043_v7 }
 0x28d   :  { %v8026_v61 = vld [vmem:[#allocation2 + $0x280] sm:$0xf]  ;;  %v9591_v51 = vld [vmem:[#allocation2 + $0x28c] sm:$0xf0]  ;;  %v7899_v14 = vor.u32 %v9559_v12, %v7898_v10  ;;  %4856 = vmatpush.bf16.msra.mxu0 %v8171_v11 }
 0x28e   :  { %v8154_v57 = vld [vmem:[#allocation2 + $0x380] sm:$0xf]  ;;  %v9623_v30 = vld [vmem:[#allocation2 + $0x38c] sm:$0xf0]  ;;  %v8027_v15 = vor.u32 %v9591_v51, %v8026_v61  ;;  %4818 = vmatpush.bf16.msra.mxu3 %v7771_v35 }
 0x28f   :  { %v7754_v45 = vld [vmem:[#allocation2 + $0x60] sm:$0xf]  ;;  %v9523_v16 = vld [vmem:[#allocation2 + $0x6c] sm:$0xf0]  ;;  %v8155_v20 = vor.u32 %v9623_v30, %v8154_v57  ;;  %4831 = vmatpush.bf16.msra.mxu1 %v7899_v14 }
 0x290   :  { %v7882_v18 = vld [vmem:[#allocation2 + $0x160] sm:$0xf]  ;;  %v9555_v21 = vld [vmem:[#allocation2 + $0x16c] sm:$0xf0]  ;;  %v7755_v25 = vor.u32 %v9523_v16, %v7754_v45  ;;  %4844 = vmatpush.bf16.msra.mxu2 %v8027_v15 }
 0x291   :  { %v8010_v22 = vld [vmem:[#allocation2 + $0x260] sm:$0xf]  ;;  %v9587_v23 = vld [vmem:[#allocation2 + $0x26c] sm:$0xf0]  ;;  %v7883_v28 = vor.u32 %v9555_v21, %v7882_v18  ;;  %4857 = vmatpush.bf16.msra.mxu0 %v8155_v20 }
 0x292   :  { %v8138_v26 = vld [vmem:[#allocation2 + $0x360] sm:$0xf]  ;;  %v9619_v50 = vld [vmem:[#allocation2 + $0x36c] sm:$0xf0]  ;;  %v8011_v29 = vor.u32 %v9587_v23, %v8010_v22  ;;  %4819 = vmatpush.bf16.msra.mxu3 %v7755_v25 }
 0x293   :  { %v7738_v37 = vld [vmem:[#allocation2 + $0x40] sm:$0xf]  ;;  %v9519_v31 = vld [vmem:[#allocation2 + $0x4c] sm:$0xf0]  ;;  %v8139_v33 = vor.u32 %v9619_v50, %v8138_v26  ;;  %4832 = vmatpush.bf16.msra.mxu1 %v7883_v28 }
 0x294   :  { %v7866_v32 = vld [vmem:[#allocation2 + $0x140] sm:$0xf]  ;;  %v9551_v5 = vld [vmem:[#allocation2 + $0x14c] sm:$0xf0]  ;;  %v7739_v19 = vor.u32 %v9519_v31, %v7738_v37  ;;  %4845 = vmatpush.bf16.msra.mxu2 %v8011_v29 }
 0x295   :  { %v7994_v34 = vld [vmem:[#allocation2 + $0x240] sm:$0xf]  ;;  %v9583_v38 = vld [vmem:[#allocation2 + $0x24c] sm:$0xf0]  ;;  %v7867_v41 = vor.u32 %v9551_v5, %v7866_v32  ;;  %4858 = vmatpush.bf16.msra.mxu0 %v8139_v33 }
 0x296   :  { %v8122_v39 = vld [vmem:[#allocation2 + $0x340] sm:$0xf]  ;;  %v9615_v40 = vld [vmem:[#allocation2 + $0x34c] sm:$0xf0]  ;;  %v7995_v42 = vor.u32 %v9583_v38, %v7994_v34  ;;  %4820 = vmatpush.bf16.msra.mxu3 %v7739_v19 }
 0x297   :  { %v7722_v43 = vld [vmem:[#allocation2 + $0x20] sm:$0xf]  ;;  %v9515_v44 = vld [vmem:[#allocation2 + $0x2c] sm:$0xf0]  ;;  %v8123_v24 = vor.u32 %v9615_v40, %v8122_v39  ;;  %4833 = vmatpush.bf16.msra.mxu1 %v7867_v41 }
 0x298   :  { %v7850_v46 = vld [vmem:[#allocation2 + $0x120] sm:$0xf]  ;;  %v9547_v47 = vld [vmem:[#allocation2 + $0x12c] sm:$0xf0]  ;;  %v7723_v53 = vor.u32 %v9515_v44, %v7722_v43  ;;  %4846 = vmatpush.bf16.msra.mxu2 %v7995_v42 }
 0x299   :  { %v7978_v48 = vld [vmem:[#allocation2 + $0x220] sm:$0xf]  ;;  %v9579_v55 = vld [vmem:[#allocation2 + $0x22c] sm:$0xf0]  ;;  %v7851_v59 = vor.u32 %v9547_v47, %v7850_v46  ;;  %4859 = vmatpush.bf16.msra.mxu0 %v8123_v24 }
 0x29a   :  { %v8106_v60 = vld [vmem:[#allocation2 + $0x320] sm:$0xf]  ;;  %v9611_v49 = vld [vmem:[#allocation2 + $0x32c] sm:$0xf0]  ;;  %v7979_v62 = vor.u32 %v9579_v55, %v7978_v48  ;;  %4821 = vmatpush.bf16.msra.mxu3 %v7723_v53 }
 0x29b   :  { %v7706_v56 = vld [vmem:[#allocation2] sm:$0xf]  ;;  %v9511_v58 = vld [vmem:[#allocation2 + $0xc] sm:$0xf0]  ;;  %v8107_v3 = vor.u32 %v9611_v49, %v8106_v60  ;;  %4834 = vmatpush.bf16.msra.mxu1 %v7851_v59 }
 0x29c   :  { %v7834_v63 = vld [vmem:[#allocation2 + $0x100] sm:$0xf]  ;;  %v9543_v0 = vld [vmem:[#allocation2 + $0x10c] sm:$0xf0]  ;;  %v7707_v12 = vor.u32 %v9511_v58, %v7706_v56  ;;  %4847 = vmatpush.bf16.msra.mxu2 %v7979_v62 }
 0x29d   :  { %v7962_v1 = vld [vmem:[#allocation2 + $0x200] sm:$0xf]  ;;  %v9575_v4 = vld [vmem:[#allocation2 + $0x20c] sm:$0xf0]  ;;  %v7835_v30 = vor.u32 %v9543_v0, %v7834_v63  ;;  %4860 = vmatpush.bf16.msra.mxu0 %v8107_v3 }
 0x29e   :  { %v8090_v7 = vld [vmem:[#allocation2 + $0x300] sm:$0xf]  ;;  %v9607_v8 = vld [vmem:[#allocation2 + $0x30c] sm:$0xf0]  ;;  %v7963_v35 = vor.u32 %v9575_v4, %v7962_v1  ;;  %4822 = vmatpush.bf16.msra.mxu3 %v7707_v12 }
 0x29f   :  { %v8330_v9 = vld [vmem:[#allocation2 + $0x4e0] sm:$0xf]  ;;  %v9667_v10 = vld [vmem:[#allocation2 + $0x4ec] sm:$0xf0]  ;;  %v8091_v45 = vor.u32 %v9607_v8, %v8090_v7  ;;  %4835 = vmatpush.bf16.msra.mxu1 %v7835_v30 }
 0x2a0   :  { %v8458_v11 = vld [vmem:[#allocation2 + $0x5e0] sm:$0xf]  ;;  %v9699_v61 = vld [vmem:[#allocation2 + $0x5ec] sm:$0xf0]  ;;  %v8331_v16 = vor.u32 %v9667_v10, %v8330_v9  ;;  %4848 = vmatpush.bf16.msra.mxu2 %v7963_v35 }
 0x2a1   :  { %v8586_v51 = vld [vmem:[#allocation2 + $0x6e0] sm:$0xf]  ;;  %v9731_v57 = vld [vmem:[#allocation2 + $0x6ec] sm:$0xf0]  ;;  %v8459_v18 = vor.u32 %v9699_v61, %v8458_v11  ;;  %4861 = vmatpush.bf16.msra.mxu0 %v8091_v45  ;;  %4823 = vmatmul.bf16.vlgmr.msra.gmra.mxu3 %v10224_v52 }
 0x2a2   :  { %v8714_v14 = vld [vmem:[#allocation2 + $0x7e0] sm:$0xf]  ;;  %v9763_v15 = vld [vmem:[#allocation2 + $0x7ec] sm:$0xf0]  ;;  %v8587_v20 = vor.u32 %v9731_v57, %v8586_v51  ;;  %4867 = vmatpush.bf16.msrb.mxu3 %v8331_v16  ;;  %4836 = vmatmul.bf16.vlgmr.msra.gmra.mxu1 %v10241_v13 }
 0x2a3   :  { %v8314_v21 = vld [vmem:[#allocation2 + $0x4c0] sm:$0xf]  ;;  %v9663_v22 = vld [vmem:[#allocation2 + $0x4cc] sm:$0xf0]  ;;  %v8715_v26 = vor.u32 %v9763_v15, %v8714_v14  ;;  %4880 = vmatpush.bf16.msrb.mxu1 %v8459_v18  ;;  %4849 = vmatmul.bf16.vlgmr.msra.gmra.mxu2 %v10264_v54 }
 0x2a4   :  { %v8442_v23 = vld [vmem:[#allocation2 + $0x5c0] sm:$0xf]  ;;  %v9695_v50 = vld [vmem:[#allocation2 + $0x5cc] sm:$0xf0]  ;;  %v8315_v31 = vor.u32 %v9663_v22, %v8314_v21  ;;  %4893 = vmatpush.bf16.msrb.mxu2 %v8587_v20  ;;  %4862 = vmatmul.bf16.vlgmr.msra.gmra.mxu0 %v10273_v2 }
 0x2a5   :  { %v8570_v25 = vld [vmem:[#allocation2 + $0x6c0] sm:$0xf]  ;;  %v9727_v28 = vld [vmem:[#allocation2 + $0x6cc] sm:$0xf0]  ;;  %v8443_v32 = vor.u32 %v9695_v50, %v8442_v23  ;;  %4906 = vmatpush.bf16.msrb.mxu0 %v8715_v26 }
 0x2a6   :  { %v8698_v29 = vld [vmem:[#allocation2 + $0x7c0] sm:$0xf]  ;;  %v9759_v37 = vld [vmem:[#allocation2 + $0x7cc] sm:$0xf0]  ;;  %v8571_v33 = vor.u32 %v9727_v28, %v8570_v25  ;;  %4868 = vmatpush.bf16.msrb.mxu3 %v8315_v31 }
 0x2a7   :  { %v8298_v5 = vld [vmem:[#allocation2 + $0x4a0] sm:$0xf]  ;;  %v9659_v34 = vld [vmem:[#allocation2 + $0x4ac] sm:$0xf0]  ;;  %v8699_v39 = vor.u32 %v9759_v37, %v8698_v29  ;;  %4881 = vmatpush.bf16.msrb.mxu1 %v8443_v32 }
 0x2a8   :  { %v8426_v38 = vld [vmem:[#allocation2 + $0x5a0] sm:$0xf]  ;;  %v9691_v40 = vld [vmem:[#allocation2 + $0x5ac] sm:$0xf0]  ;;  %v8299_v44 = vor.u32 %v9659_v34, %v8298_v5  ;;  %4894 = vmatpush.bf16.msrb.mxu2 %v8571_v33 }
 0x2a9   :  { %v8554_v19 = vld [vmem:[#allocation2 + $0x6a0] sm:$0xf]  ;;  %v9723_v41 = vld [vmem:[#allocation2 + $0x6ac] sm:$0xf0]  ;;  %v8427_v46 = vor.u32 %v9691_v40, %v8426_v38  ;;  %4907 = vmatpush.bf16.msrb.mxu0 %v8699_v39 }
 0x2aa   :  { %v8682_v42 = vld [vmem:[#allocation2 + $0x7a0] sm:$0xf]  ;;  %v9755_v43 = vld [vmem:[#allocation2 + $0x7ac] sm:$0xf0]  ;;  %v8555_v24 = vor.u32 %v9723_v41, %v8554_v19  ;;  %4869 = vmatpush.bf16.msrb.mxu3 %v8299_v44 }
 0x2ab   :  { %v8282_v47 = vld [vmem:[#allocation2 + $0x480] sm:$0xf]  ;;  %v9655_v48 = vld [vmem:[#allocation2 + $0x48c] sm:$0xf0]  ;;  %v8683_v60 = vor.u32 %v9755_v43, %v8682_v42  ;;  %4882 = vmatpush.bf16.msrb.mxu1 %v8427_v46 }
 0x2ac   :  { %v8410_v55 = vld [vmem:[#allocation2 + $0x580] sm:$0xf]  ;;  %v9687_v49 = vld [vmem:[#allocation2 + $0x58c] sm:$0xf0]  ;;  %v8283_v62 = vor.u32 %v9655_v48, %v8282_v47  ;;  %4895 = vmatpush.bf16.msrb.mxu2 %v8555_v24  ;;  %v9537_v48 = vld [vmem:[#allocation2 + $0xe4] sm:$0xf] }
 0x2ad   :  { %v8538_v53 = vld [vmem:[#allocation2 + $0x680] sm:$0xf]  ;;  %v9719_v56 = vld [vmem:[#allocation2 + $0x68c] sm:$0xf0]  ;;  %v8411_v63 = vor.u32 %v9687_v49, %v8410_v55  ;;  %4908 = vmatpush.bf16.msrb.mxu0 %v8683_v60  ;;  %v7820_v55 = vld [vmem:[#allocation2 + $0xf0] sm:$0xf0] }
 0x2ae   :  { %v8666_v58 = vld [vmem:[#allocation2 + $0x780] sm:$0xf]  ;;  %v9751_v59 = vld [vmem:[#allocation2 + $0x78c] sm:$0xf0]  ;;  %v8539_v0 = vor.u32 %v9719_v56, %v8538_v53  ;;  %4870 = vmatpush.bf16.msrb.mxu3 %v8283_v62  ;;  %v9569_v60 = vld [vmem:[#allocation2 + $0x1e4] sm:$0xf] }
 0x2af   :  { %v8266_v1 = vld [vmem:[#allocation2 + $0x460] sm:$0xf]  ;;  %v9651_v3 = vld [vmem:[#allocation2 + $0x46c] sm:$0xf0]  ;;  %v8667_v7 = vor.u32 %v9751_v59, %v8666_v58  ;;  %4883 = vmatpush.bf16.msrb.mxu1 %v8411_v63  ;;  %v7948_v53 = vld [vmem:[#allocation2 + $0x1f0] sm:$0xf0] }
 0x2b0   :  { %v8394_v4 = vld [vmem:[#allocation2 + $0x560] sm:$0xf]  ;;  %v9683_v8 = vld [vmem:[#allocation2 + $0x56c] sm:$0xf0]  ;;  %v8267_v61 = vor.u32 %v9651_v3, %v8266_v1  ;;  %4896 = vmatpush.bf16.msrb.mxu2 %v8539_v0  ;;  %v9601_v56 = vld [vmem:[#allocation2 + $0x2e4] sm:$0xf]  ;;  %v7823_v3 = vor.u32 %v9537_v48, %v7820_v55 }
 0x2b1   :  { %v8522_v9 = vld [vmem:[#allocation2 + $0x660] sm:$0xf]  ;;  %v9715_v10 = vld [vmem:[#allocation2 + $0x66c] sm:$0xf0]  ;;  %v8395_v51 = vor.u32 %v9683_v8, %v8394_v4  ;;  %4909 = vmatpush.bf16.msrb.mxu0 %v8667_v7  ;;  %v8076_v58 = vld [vmem:[#allocation2 + $0x2f0] sm:$0xf0]  ;;  %v7951_v4 = vor.u32 %v9569_v60, %v7948_v53 }
 0x2b2   :  { %v8650_v11 = vld [vmem:[#allocation2 + $0x760] sm:$0xf]  ;;  %v9747_v12 = vld [vmem:[#allocation2 + $0x76c] sm:$0xf0]  ;;  %v8523_v57 = vor.u32 %v9715_v10, %v8522_v9  ;;  %4871 = vmatpush.bf16.msrb.mxu3 %v8267_v61  ;;  %v9633_v63 = vld [vmem:[#allocation2 + $0x3e4] sm:$0xf]  ;;  %v8079_v7 = vor.u32 %v9601_v56, %v8076_v58 }
 0x2b3   :  { %v8250_v30 = vld [vmem:[#allocation2 + $0x440] sm:$0xf]  ;;  %v9647_v35 = vld [vmem:[#allocation2 + $0x44c] sm:$0xf0]  ;;  %v8651_v15 = vor.u32 %v9747_v12, %v8650_v11  ;;  %4884 = vmatpush.bf16.msrb.mxu1 %v8395_v51  ;;  %v8204_v0 = vld [vmem:[#allocation2 + $0x3f0] sm:$0xf0] }
 0x2b4   :  { %v8378_v14 = vld [vmem:[#allocation2 + $0x540] sm:$0xf]  ;;  %v9679_v45 = vld [vmem:[#allocation2 + $0x54c] sm:$0xf0]  ;;  %v8251_v22 = vor.u32 %v9647_v35, %v8250_v30  ;;  %4897 = vmatpush.bf16.msrb.mxu2 %v8523_v57  ;;  %v9533_v8 = vld [vmem:[#allocation2 + $0xc4] sm:$0xf]  ;;  %v8207_v11 = vor.u32 %v9633_v63, %v8204_v0 }
 0x2b5   :  { %v8506_v16 = vld [vmem:[#allocation2 + $0x640] sm:$0xf]  ;;  %v9711_v18 = vld [vmem:[#allocation2 + $0x64c] sm:$0xf0]  ;;  %v8379_v23 = vor.u32 %v9679_v45, %v8378_v14  ;;  %4910 = vmatpush.bf16.msrb.mxu0 %v8651_v15  ;;  %v7804_v9 = vld [vmem:[#allocation2 + $0xd0] sm:$0xf0] }
 0x2b6   :  { %v8634_v20 = vld [vmem:[#allocation2 + $0x740] sm:$0xf]  ;;  %v9743_v21 = vld [vmem:[#allocation2 + $0x74c] sm:$0xf0]  ;;  %v8507_v26 = vor.u32 %v9711_v18, %v8506_v16  ;;  %4872 = vmatpush.bf16.msrb.mxu3 %v8251_v22  ;;  %v9565_v10 = vld [vmem:[#allocation2 + $0x1c4] sm:$0xf]  ;;  %v7807_v35 = vor.u32 %v9533_v8, %v7804_v9 }
 0x2b7   :  { %v8234_v50 = vld [vmem:[#allocation2 + $0x420] sm:$0xf]  ;;  %v9643_v25 = vld [vmem:[#allocation2 + $0x42c] sm:$0xf0]  ;;  %v8635_v29 = vor.u32 %v9743_v21, %v8634_v20  ;;  %4885 = vmatpush.bf16.msrb.mxu1 %v8379_v23  ;;  %v7932_v12 = vld [vmem:[#allocation2 + $0x1d0] sm:$0xf0] }
 0x2b8   :  { %v8362_v28 = vld [vmem:[#allocation2 + $0x520] sm:$0xf]  ;;  %v9675_v37 = vld [vmem:[#allocation2 + $0x52c] sm:$0xf0]  ;;  %v8235_v34 = vor.u32 %v9643_v25, %v8234_v50  ;;  %4898 = vmatpush.bf16.msrb.mxu2 %v8507_v26  ;;  %v9597_v61 = vld [vmem:[#allocation2 + $0x2c4] sm:$0xf]  ;;  %v7935_v14 = vor.u32 %v9565_v10, %v7932_v12 }
 0x2b9   :  { %v8490_v31 = vld [vmem:[#allocation2 + $0x620] sm:$0xf]  ;;  %v9707_v32 = vld [vmem:[#allocation2 + $0x62c] sm:$0xf0]  ;;  %v8363_v40 = vor.u32 %v9675_v37, %v8362_v28  ;;  %4911 = vmatpush.bf16.msrb.mxu0 %v8635_v29  ;;  %v8060_v51 = vld [vmem:[#allocation2 + $0x2d0] sm:$0xf0] }
 0x2ba   :  { %v8618_v33 = vld [vmem:[#allocation2 + $0x720] sm:$0xf]  ;;  %v9739_v5 = vld [vmem:[#allocation2 + $0x72c] sm:$0xf0]  ;;  %v8491_v19 = vor.u32 %v9707_v32, %v8490_v31  ;;  %4873 = vmatpush.bf16.msrb.mxu3 %v8235_v34  ;;  %v9629_v57 = vld [vmem:[#allocation2 + $0x3c4] sm:$0xf]  ;;  %v8063_v15 = vor.u32 %v9597_v61, %v8060_v51 }
 0x2bb   :  { %v8218_v38 = vld [vmem:[#allocation2 + $0x400] sm:$0xf]  ;;  %v9639_v39 = vld [vmem:[#allocation2 + $0x40c] sm:$0xf0]  ;;  %v8619_v44 = vor.u32 %v9739_v5, %v8618_v33  ;;  %4886 = vmatpush.bf16.msrb.mxu1 %v8363_v40  ;;  %v8188_v30 = vld [vmem:[#allocation2 + $0x3d0] sm:$0xf0] }
 0x2bc   :  { %v8346_v41 = vld [vmem:[#allocation2 + $0x500] sm:$0xf]  ;;  %v9671_v42 = vld [vmem:[#allocation2 + $0x50c] sm:$0xf0]  ;;  %v8219_v49 = vor.u32 %v9639_v39, %v8218_v38  ;;  %4899 = vmatpush.bf16.msrb.mxu2 %v8491_v19  ;;  %v9529_v45 = vld [vmem:[#allocation2 + $0xa4] sm:$0xf]  ;;  %v8191_v20 = vor.u32 %v9629_v57, %v8188_v30 }
 0x2bd   :  { %v8474_v43 = vld [vmem:[#allocation2 + $0x600] sm:$0xf]  ;;  %v9703_v46 = vld [vmem:[#allocation2 + $0x60c] sm:$0xf0]  ;;  %v8347_v59 = vor.u32 %v9671_v42, %v8346_v41  ;;  %4912 = vmatpush.bf16.msrb.mxu0 %v8619_v44  ;;  %v7788_v16 = vld [vmem:[#allocation2 + $0xb0] sm:$0xf0] }
 0x2be   :  { %v8602_v24 = vld [vmem:[#allocation2 + $0x700] sm:$0xf]  ;;  %v9735_v47 = vld [vmem:[#allocation2 + $0x70c] sm:$0xf0]  ;;  %v8475_v62 = vor.u32 %v9703_v46, %v8474_v43  ;;  %4874 = vmatpush.bf16.msrb.mxu3 %v8219_v49  ;;  %v9561_v18 = vld [vmem:[#allocation2 + $0x1a4] sm:$0xf]  ;;  %v7791_v25 = vor.u32 %v9529_v45, %v7788_v16 }
 0x2bf   :  { %v8603_v1 = vor.u32 %v9735_v47, %v8602_v24  ;;  %4887 = vmatpush.bf16.msrb.mxu1 %v8347_v59  ;;  %v7916_v21 = vld [vmem:[#allocation2 + $0x1b0] sm:$0xf0]  ;;  %v9593_v22 = vld [vmem:[#allocation2 + $0x2a4] sm:$0xf] }
 0x2c0   :  { %4900 = vmatpush.bf16.msrb.mxu2 %v8475_v62  ;;  %v8044_v23 = vld [vmem:[#allocation2 + $0x2b0] sm:$0xf0]  ;;  %v9625_v26 = vld [vmem:[#allocation2 + $0x3a4] sm:$0xf]  ;;  %v7919_v28 = vor.u32 %v9561_v18, %v7916_v21 }
 0x2c1   :  { %4913 = vmatpush.bf16.msrb.mxu0 %v8603_v1  ;;  %4875 = vmatmul.bf16.vlgmr.msrb.gmra.mxu3 %v10296_v17  ;;  %v8172_v50 = vld [vmem:[#allocation2 + $0x3b0] sm:$0xf0]  ;;  %v8047_v29 = vor.u32 %v9593_v22, %v8044_v23  ;;  %v9525_v37 = vld [vmem:[#allocation2 + $0x84] sm:$0xf] }
 0x2c2   :  { %4919 = vmatpush.bf16.msra.mxu3 %v7823_v3  ;;  %4888 = vmatmul.bf16.vlgmr.msrb.gmra.mxu1 %v10304_v36  ;;  %v7772_v31 = vld [vmem:[#allocation2 + $0x90] sm:$0xf0]  ;;  %v9557_v32 = vld [vmem:[#allocation2 + $0x184] sm:$0xf]  ;;  %v8175_v33 = vor.u32 %v9625_v26, %v8172_v50 }
 0x2c3   :  { %4932 = vmatpush.bf16.msra.mxu1 %v7951_v4  ;;  %4901 = vmatmul.bf16.vlgmr.msrb.gmra.mxu2 %v10307_v6  ;;  %v7900_v5 = vld [vmem:[#allocation2 + $0x190] sm:$0xf0]  ;;  %v9589_v34 = vld [vmem:[#allocation2 + $0x284] sm:$0xf]  ;;  %v7775_v19 = vor.u32 %v9525_v37, %v7772_v31 }
 0x2c4   :  { %4945 = vmatpush.bf16.msra.mxu2 %v8079_v7  ;;  %4914 = vmatmul.bf16.vlgmr.msrb.gmra.mxu0 %v10310_v27  ;;  %v8028_v38 = vld [vmem:[#allocation2 + $0x290] sm:$0xf0]  ;;  %v9621_v39 = vld [vmem:[#allocation2 + $0x384] sm:$0xf]  ;;  %v7903_v41 = vor.u32 %v9557_v32, %v7900_v5 }
 0x2c5   :  { %4958 = vmatpush.bf16.msra.mxu0 %v8207_v11  ;;  %v8156_v40 = vld [vmem:[#allocation2 + $0x390] sm:$0xf0]  ;;  %v8031_v42 = vor.u32 %v9589_v34, %v8028_v38  ;;  %v9521_v43 = vld [vmem:[#allocation2 + $0x64] sm:$0xf] }
 0x2c6   :  { %4920 = vmatpush.bf16.msra.mxu3 %v7807_v35  ;;  %v7756_v44 = vld [vmem:[#allocation2 + $0x70] sm:$0xf0]  ;;  %v9553_v46 = vld [vmem:[#allocation2 + $0x164] sm:$0xf]  ;;  %v8159_v24 = vor.u32 %v9621_v39, %v8156_v40 }
 0x2c7   :  { %4933 = vmatpush.bf16.msra.mxu1 %v7935_v14  ;;  %v7884_v47 = vld [vmem:[#allocation2 + $0x170] sm:$0xf0]  ;;  %v9585_v48 = vld [vmem:[#allocation2 + $0x264] sm:$0xf]  ;;  %v7759_v53 = vor.u32 %v9521_v43, %v7756_v44 }
 0x2c8   :  { %4946 = vmatpush.bf16.msra.mxu2 %v8063_v15  ;;  %v8012_v55 = vld [vmem:[#allocation2 + $0x270] sm:$0xf0]  ;;  %v9617_v60 = vld [vmem:[#allocation2 + $0x364] sm:$0xf]  ;;  %v7887_v56 = vor.u32 %v9553_v46, %v7884_v47 }
 0x2c9   :  { %4959 = vmatpush.bf16.msra.mxu0 %v8191_v20  ;;  %v8140_v49 = vld [vmem:[#allocation2 + $0x370] sm:$0xf0]  ;;  %v8015_v58 = vor.u32 %v9585_v48, %v8012_v55  ;;  %v9517_v59 = vld [vmem:[#allocation2 + $0x44] sm:$0xf] }
 0x2ca   :  { %4921 = vmatpush.bf16.msra.mxu3 %v7791_v25  ;;  %v7740_v62 = vld [vmem:[#allocation2 + $0x50] sm:$0xf0]  ;;  %v9549_v63 = vld [vmem:[#allocation2 + $0x144] sm:$0xf]  ;;  %v8143_v0 = vor.u32 %v9617_v60, %v8140_v49 }
 0x2cb   :  { %4934 = vmatpush.bf16.msra.mxu1 %v7919_v28  ;;  %v7868_v1 = vld [vmem:[#allocation2 + $0x150] sm:$0xf0]  ;;  %v9581_v3 = vld [vmem:[#allocation2 + $0x244] sm:$0xf]  ;;  %v7743_v9 = vor.u32 %v9517_v59, %v7740_v62 }
 0x2cc   :  { %4947 = vmatpush.bf16.msra.mxu2 %v8047_v29  ;;  %v7996_v4 = vld [vmem:[#allocation2 + $0x250] sm:$0xf0]  ;;  %v9613_v7 = vld [vmem:[#allocation2 + $0x344] sm:$0xf]  ;;  %v7871_v10 = vor.u32 %v9549_v63, %v7868_v1 }
 0x2cd   :  { %4960 = vmatpush.bf16.msra.mxu0 %v8175_v33  ;;  %v8124_v8 = vld [vmem:[#allocation2 + $0x350] sm:$0xf0]  ;;  %v7999_v11 = vor.u32 %v9581_v3, %v7996_v4  ;;  %v9513_v12 = vld [vmem:[#allocation2 + $0x24] sm:$0xf] }
 0x2ce   :  { %4922 = vmatpush.bf16.msra.mxu3 %v7775_v19  ;;  %v7724_v61 = vld [vmem:[#allocation2 + $0x30] sm:$0xf0]  ;;  %v9545_v51 = vld [vmem:[#allocation2 + $0x124] sm:$0xf]  ;;  %v8127_v57 = vor.u32 %v9613_v7, %v8124_v8 }
 0x2cf   :  { %4935 = vmatpush.bf16.msra.mxu1 %v7903_v41  ;;  %v7852_v30 = vld [vmem:[#allocation2 + $0x130] sm:$0xf0]  ;;  %v9577_v35 = vld [vmem:[#allocation2 + $0x224] sm:$0xf]  ;;  %v7727_v16 = vor.u32 %v9513_v12, %v7724_v61 }
 0x2d0   :  { %4948 = vmatpush.bf16.msra.mxu2 %v8031_v42  ;;  %v7980_v14 = vld [vmem:[#allocation2 + $0x230] sm:$0xf0]  ;;  %v9609_v15 = vld [vmem:[#allocation2 + $0x324] sm:$0xf]  ;;  %v7855_v21 = vor.u32 %v9545_v51, %v7852_v30 }
 0x2d1   :  { %4961 = vmatpush.bf16.msra.mxu0 %v8159_v24  ;;  %v8108_v45 = vld [vmem:[#allocation2 + $0x330] sm:$0xf0]  ;;  %v9509_v18 = vld [vmem:[#allocation2 + $0x4] sm:$0xf]  ;;  %v7983_v22 = vor.u32 %v9577_v35, %v7980_v14 }
 0x2d2   :  { %4923 = vmatpush.bf16.msra.mxu3 %v7759_v53  ;;  %v7708_v20 = vld [vmem:[#allocation2 + $0x10] sm:$0xf0]  ;;  %v9541_v23 = vld [vmem:[#allocation2 + $0x104] sm:$0xf]  ;;  %v8111_v25 = vor.u32 %v9609_v15, %v8108_v45 }
 0x2d3   :  { %4936 = vmatpush.bf16.msra.mxu1 %v7887_v56  ;;  %v7836_v26 = vld [vmem:[#allocation2 + $0x110] sm:$0xf0]  ;;  %v9573_v50 = vld [vmem:[#allocation2 + $0x204] sm:$0xf]  ;;  %v7711_v5 = vor.u32 %v9509_v18, %v7708_v20 }
 0x2d4   :  { %4949 = vmatpush.bf16.msra.mxu2 %v8015_v58  ;;  %v7964_v28 = vld [vmem:[#allocation2 + $0x210] sm:$0xf0]  ;;  %v9605_v29 = vld [vmem:[#allocation2 + $0x304] sm:$0xf]  ;;  %v7839_v40 = vor.u32 %v9541_v23, %v7836_v26 }
 0x2d5   :  { %4962 = vmatpush.bf16.msra.mxu0 %v8143_v0  ;;  %v8092_v37 = vld [vmem:[#allocation2 + $0x310] sm:$0xf0]  ;;  %v9665_v31 = vld [vmem:[#allocation2 + $0x4e4] sm:$0xf]  ;;  %v7967_v19 = vor.u32 %v9573_v50, %v7964_v28 }
 0x2d6   :  { %4924 = vmatpush.bf16.msra.mxu3 %v7743_v9  ;;  %v8332_v32 = vld [vmem:[#allocation2 + $0x4f0] sm:$0xf0]  ;;  %v9697_v33 = vld [vmem:[#allocation2 + $0x5e4] sm:$0xf]  ;;  %v8095_v43 = vor.u32 %v9605_v29, %v8092_v37 }
 0x2d7   :  { %4937 = vmatpush.bf16.msra.mxu1 %v7871_v10  ;;  %v8460_v34 = vld [vmem:[#allocation2 + $0x5f0] sm:$0xf0]  ;;  %v9729_v38 = vld [vmem:[#allocation2 + $0x6e4] sm:$0xf]  ;;  %v8335_v44 = vor.u32 %v9665_v31, %v8332_v32 }
 0x2d8   :  { %4950 = vmatpush.bf16.msra.mxu2 %v7999_v11  ;;  %v8588_v39 = vld [vmem:[#allocation2 + $0x6f0] sm:$0xf0]  ;;  %v9761_v41 = vld [vmem:[#allocation2 + $0x7e4] sm:$0xf]  ;;  %v8463_v46 = vor.u32 %v9697_v33, %v8460_v34 }
 0x2d9   :  { %4963 = vmatpush.bf16.msra.mxu0 %v8127_v57  ;;  %v8716_v42 = vld [vmem:[#allocation2 + $0x7f0] sm:$0xf0]  ;;  %v8591_v24 = vor.u32 %v9729_v38, %v8588_v39  ;;  %v9661_v47 = vld [vmem:[#allocation2 + $0x4c4] sm:$0xf] }
 0x2da   :  { %4925 = vmatpush.bf16.msra.mxu3 %v7727_v16  ;;  %v8316_v48 = vld [vmem:[#allocation2 + $0x4d0] sm:$0xf0]  ;;  %v9693_v55 = vld [vmem:[#allocation2 + $0x5c4] sm:$0xf]  ;;  %v8719_v60 = vor.u32 %v9761_v41, %v8716_v42 }
 0x2db   :  { %4938 = vmatpush.bf16.msra.mxu1 %v7855_v21  ;;  %v8444_v49 = vld [vmem:[#allocation2 + $0x5d0] sm:$0xf0]  ;;  %v9725_v53 = vld [vmem:[#allocation2 + $0x6c4] sm:$0xf]  ;;  %v8319_v62 = vor.u32 %v9661_v47, %v8316_v48 }
 0x2dc   :  { %4951 = vmatpush.bf16.msra.mxu2 %v7983_v22  ;;  %v8572_v56 = vld [vmem:[#allocation2 + $0x6d0] sm:$0xf0]  ;;  %v9757_v58 = vld [vmem:[#allocation2 + $0x7c4] sm:$0xf]  ;;  %v8447_v63 = vor.u32 %v9693_v55, %v8444_v49 }
 0x2dd   :  { %4964 = vmatpush.bf16.msra.mxu0 %v8111_v25  ;;  %v8700_v59 = vld [vmem:[#allocation2 + $0x7d0] sm:$0xf0]  ;;  %v8575_v0 = vor.u32 %v9725_v53, %v8572_v56  ;;  %v9657_v1 = vld [vmem:[#allocation2 + $0x4a4] sm:$0xf] }
 0x2de   :  { %4926 = vmatpush.bf16.msra.mxu3 %v7711_v5  ;;  %v8300_v3 = vld [vmem:[#allocation2 + $0x4b0] sm:$0xf0]  ;;  %v9689_v4 = vld [vmem:[#allocation2 + $0x5a4] sm:$0xf]  ;;  %v8703_v7 = vor.u32 %v9757_v58, %v8700_v59 }
 0x2df   :  { %4939 = vmatpush.bf16.msra.mxu1 %v7839_v40  ;;  %v8428_v8 = vld [vmem:[#allocation2 + $0x5b0] sm:$0xf0]  ;;  %v9721_v9 = vld [vmem:[#allocation2 + $0x6a4] sm:$0xf]  ;;  %v8303_v61 = vor.u32 %v9657_v1, %v8300_v3 }
 0x2e0   :  { %4952 = vmatpush.bf16.msra.mxu2 %v7967_v19  ;;  %v8556_v10 = vld [vmem:[#allocation2 + $0x6b0] sm:$0xf0]  ;;  %v9753_v11 = vld [vmem:[#allocation2 + $0x7a4] sm:$0xf]  ;;  %v8431_v51 = vor.u32 %v9689_v4, %v8428_v8 }
 0x2e1   :  { %4965 = vmatpush.bf16.msra.mxu0 %v8095_v43  ;;  %4927 = vmatmul.bf16.vlgmr.msra.gmra.mxu3 %v10224_v52  ;;  %v8684_v12 = vld [vmem:[#allocation2 + $0x7b0] sm:$0xf0]  ;;  %v8559_v57 = vor.u32 %v9721_v9, %v8556_v10  ;;  %v9653_v30 = vld [vmem:[#allocation2 + $0x484] sm:$0xf] }
 0x2e2   :  { %4971 = vmatpush.bf16.msrb.mxu3 %v8335_v44  ;;  %4940 = vmatmul.bf16.vlgmr.msra.gmra.mxu1 %v10241_v13  ;;  %v8284_v35 = vld [vmem:[#allocation2 + $0x490] sm:$0xf0]  ;;  %v9685_v14 = vld [vmem:[#allocation2 + $0x584] sm:$0xf]  ;;  %v8687_v15 = vor.u32 %v9753_v11, %v8684_v12 }
 0x2e3   :  { %4984 = vmatpush.bf16.msrb.mxu1 %v8463_v46  ;;  %4953 = vmatmul.bf16.vlgmr.msra.gmra.mxu2 %v10264_v54  ;;  %v8412_v45 = vld [vmem:[#allocation2 + $0x590] sm:$0xf0]  ;;  %v9717_v16 = vld [vmem:[#allocation2 + $0x684] sm:$0xf]  ;;  %v8287_v22 = vor.u32 %v9653_v30, %v8284_v35  ;;  %v7826_v35 = vld [vmem:[#allocation2 + $0xe8] sm:$0xf] }
 0x2e4   :  { %4997 = vmatpush.bf16.msrb.mxu2 %v8591_v24  ;;  %4966 = vmatmul.bf16.vlgmr.msra.gmra.mxu0 %v10273_v2  ;;  %v8540_v18 = vld [vmem:[#allocation2 + $0x690] sm:$0xf0]  ;;  %v9749_v20 = vld [vmem:[#allocation2 + $0x784] sm:$0xf]  ;;  %v8415_v23 = vor.u32 %v9685_v14, %v8412_v45  ;;  %v9540_v14 = vld [vmem:[#allocation2 + $0xf4] sm:$0xf0] }
 0x2e5   :  { %5010 = vmatpush.bf16.msrb.mxu0 %v8719_v60  ;;  %v8668_v21 = vld [vmem:[#allocation2 + $0x790] sm:$0xf0]  ;;  %v8543_v26 = vor.u32 %v9717_v16, %v8540_v18  ;;  %v9649_v50 = vld [vmem:[#allocation2 + $0x464] sm:$0xf]  ;;  %v9572_v16 = vld [vmem:[#allocation2 + $0x1f4] sm:$0xf0] }
 0x2e6   :  { %4972 = vmatpush.bf16.msrb.mxu3 %v8319_v62  ;;  %v8268_v25 = vld [vmem:[#allocation2 + $0x470] sm:$0xf0]  ;;  %v9681_v28 = vld [vmem:[#allocation2 + $0x564] sm:$0xf]  ;;  %v8671_v29 = vor.u32 %v9749_v20, %v8668_v21  ;;  %v8082_v18 = vld [vmem:[#allocation2 + $0x2e8] sm:$0xf] }
 0x2e7   :  { %4985 = vmatpush.bf16.msrb.mxu1 %v8447_v63  ;;  %v8396_v37 = vld [vmem:[#allocation2 + $0x570] sm:$0xf0]  ;;  %v9713_v31 = vld [vmem:[#allocation2 + $0x664] sm:$0xf]  ;;  %v8271_v34 = vor.u32 %v9649_v50, %v8268_v25  ;;  %v9604_v20 = vld [vmem:[#allocation2 + $0x2f4] sm:$0xf0]  ;;  %v7827_v25 = vor.u32 %v9540_v14, %v7826_v35 }
 0x2e8   :  { %4998 = vmatpush.bf16.msrb.mxu2 %v8575_v0  ;;  %v8524_v32 = vld [vmem:[#allocation2 + $0x670] sm:$0xf0]  ;;  %v9745_v33 = vld [vmem:[#allocation2 + $0x764] sm:$0xf]  ;;  %v8399_v38 = vor.u32 %v9681_v28, %v8396_v37  ;;  %v7810_v37 = vld [vmem:[#allocation2 + $0xc8] sm:$0xf] }
 0x2e9   :  { %5011 = vmatpush.bf16.msrb.mxu0 %v8703_v7  ;;  %v8652_v5 = vld [vmem:[#allocation2 + $0x770] sm:$0xf0]  ;;  %v8527_v39 = vor.u32 %v9713_v31, %v8524_v32  ;;  %v9645_v40 = vld [vmem:[#allocation2 + $0x444] sm:$0xf]  ;;  %v9536_v31 = vld [vmem:[#allocation2 + $0xd4] sm:$0xf0] }
 0x2ea   :  { %4973 = vmatpush.bf16.msrb.mxu3 %v8303_v61  ;;  %v8252_v19 = vld [vmem:[#allocation2 + $0x450] sm:$0xf0]  ;;  %v9677_v41 = vld [vmem:[#allocation2 + $0x544] sm:$0xf]  ;;  %v8655_v42 = vor.u32 %v9745_v33, %v8652_v5  ;;  %v7938_v32 = vld [vmem:[#allocation2 + $0x1c8] sm:$0xf] }
 0x2eb   :  { %4986 = vmatpush.bf16.msrb.mxu1 %v8431_v51  ;;  %v8380_v43 = vld [vmem:[#allocation2 + $0x550] sm:$0xf0]  ;;  %v9709_v44 = vld [vmem:[#allocation2 + $0x644] sm:$0xf]  ;;  %v8255_v48 = vor.u32 %v9645_v40, %v8252_v19  ;;  %v9568_v5 = vld [vmem:[#allocation2 + $0x1d4] sm:$0xf0]  ;;  %v7811_v19 = vor.u32 %v9536_v31, %v7810_v37 }
 0x2ec   :  { %4999 = vmatpush.bf16.msrb.mxu2 %v8559_v57  ;;  %v8508_v46 = vld [vmem:[#allocation2 + $0x650] sm:$0xf0]  ;;  %v9741_v24 = vld [vmem:[#allocation2 + $0x744] sm:$0xf]  ;;  %v8383_v55 = vor.u32 %v9677_v41, %v8380_v43  ;;  %v9632_v40 = vld [vmem:[#allocation2 + $0x3d4] sm:$0xf0]  ;;  %v7939_v41 = vor.u32 %v9568_v5, %v7938_v32 }
 0x2ed   :  { %5012 = vmatpush.bf16.msrb.mxu0 %v8687_v15  ;;  %v8636_v47 = vld [vmem:[#allocation2 + $0x750] sm:$0xf0]  ;;  %v8511_v60 = vor.u32 %v9709_v44, %v8508_v46  ;;  %v9641_v49 = vld [vmem:[#allocation2 + $0x424] sm:$0xf]  ;;  %v7954_v15 = vld [vmem:[#allocation2 + $0x1e8] sm:$0xf] }
 0x2ee   :  { %4974 = vmatpush.bf16.msrb.mxu3 %v8287_v22  ;;  %v8236_v53 = vld [vmem:[#allocation2 + $0x430] sm:$0xf0]  ;;  %v9673_v56 = vld [vmem:[#allocation2 + $0x524] sm:$0xf]  ;;  %v8639_v58 = vor.u32 %v9741_v24, %v8636_v47  ;;  %v7955_v28 = vor.u32 %v9572_v16, %v7954_v15  ;;  %v7794_v43 = vld [vmem:[#allocation2 + $0xa8] sm:$0xf] }
 0x2ef   :  { %4987 = vmatpush.bf16.msrb.mxu1 %v8415_v23  ;;  %v8364_v59 = vld [vmem:[#allocation2 + $0x530] sm:$0xf0]  ;;  %v9705_v62 = vld [vmem:[#allocation2 + $0x624] sm:$0xf]  ;;  %v8239_v3 = vor.u32 %v9641_v49, %v8236_v53  ;;  %v8210_v23 = vld [vmem:[#allocation2 + $0x3e8] sm:$0xf] }
 0x2f0   :  { %5000 = vmatpush.bf16.msrb.mxu2 %v8543_v26  ;;  %v8492_v63 = vld [vmem:[#allocation2 + $0x630] sm:$0xf0]  ;;  %v9737_v0 = vld [vmem:[#allocation2 + $0x724] sm:$0xf]  ;;  %v8367_v8 = vor.u32 %v9673_v56, %v8364_v59  ;;  %v9636_v26 = vld [vmem:[#allocation2 + $0x3f4] sm:$0xf0] }
 0x2f1   :  { %5013 = vmatpush.bf16.msrb.mxu0 %v8671_v29  ;;  %v8620_v1 = vld [vmem:[#allocation2 + $0x730] sm:$0xf0]  ;;  %v9637_v4 = vld [vmem:[#allocation2 + $0x404] sm:$0xf]  ;;  %v8495_v9 = vor.u32 %v9705_v62, %v8492_v63  ;;  %v8083_v29 = vor.u32 %v9604_v20, %v8082_v18  ;;  %v8211_v33 = vor.u32 %v9636_v26, %v8210_v23  ;;  %v9532_v44 = vld [vmem:[#allocation2 + $0xb4] sm:$0xf0] }
 0x2f2   :  { %4975 = vmatpush.bf16.msrb.mxu3 %v8271_v34  ;;  %v8220_v7 = vld [vmem:[#allocation2 + $0x410] sm:$0xf0]  ;;  %v9669_v10 = vld [vmem:[#allocation2 + $0x504] sm:$0xf]  ;;  %v8623_v61 = vor.u32 %v9737_v0, %v8620_v1  ;;  %v8066_v34 = vld [vmem:[#allocation2 + $0x2c8] sm:$0xf]  ;;  %v7795_v53 = vor.u32 %v9532_v44, %v7794_v43 }
 0x2f3   :  { %4988 = vmatpush.bf16.msrb.mxu1 %v8399_v38  ;;  %v8348_v11 = vld [vmem:[#allocation2 + $0x510] sm:$0xf0]  ;;  %v9701_v12 = vld [vmem:[#allocation2 + $0x604] sm:$0xf]  ;;  %v8223_v45 = vor.u32 %v9637_v4, %v8220_v7  ;;  %v9600_v38 = vld [vmem:[#allocation2 + $0x2d4] sm:$0xf0] }
 0x2f4   :  { %5001 = vmatpush.bf16.msrb.mxu2 %v8527_v39  ;;  %v8476_v51 = vld [vmem:[#allocation2 + $0x610] sm:$0xf0]  ;;  %v9733_v57 = vld [vmem:[#allocation2 + $0x704] sm:$0xf]  ;;  %v8351_v21 = vor.u32 %v9669_v10, %v8348_v11  ;;  %v8194_v39 = vld [vmem:[#allocation2 + $0x3c8] sm:$0xf] }
 0x2f5   :  { %5014 = vmatpush.bf16.msrb.mxu0 %v8655_v42  ;;  %v8604_v30 = vld [vmem:[#allocation2 + $0x710] sm:$0xf0]  ;;  %v8479_v22 = vor.u32 %v9701_v12, %v8476_v51  ;;  %v8067_v42 = vor.u32 %v9600_v38, %v8066_v34  ;;  %v7922_v46 = vld [vmem:[#allocation2 + $0x1a8] sm:$0xf]  ;;  %v8195_v24 = vor.u32 %v9632_v40, %v8194_v39  ;;  %v9564_v47 = vld [vmem:[#allocation2 + $0x1b4] sm:$0xf0] }
 0x2f6   :  { %4976 = vmatpush.bf16.msrb.mxu3 %v8255_v48  ;;  %v8607_v50 = vor.u32 %v9733_v57, %v8604_v30  ;;  %v8050_v48 = vld [vmem:[#allocation2 + $0x2a8] sm:$0xf]  ;;  %v9628_v49 = vld [vmem:[#allocation2 + $0x3b4] sm:$0xf0]  ;;  %v7923_v56 = vor.u32 %v9564_v47, %v7922_v46 }
 0x2f7   :  { %4989 = vmatpush.bf16.msrb.mxu1 %v8383_v55  ;;  %v9596_v55 = vld [vmem:[#allocation2 + $0x2b4] sm:$0xf0]  ;;  %v7778_v59 = vld [vmem:[#allocation2 + $0x88] sm:$0xf] }
 0x2f8   :  { %5002 = vmatpush.bf16.msrb.mxu2 %v8511_v60  ;;  %v8178_v60 = vld [vmem:[#allocation2 + $0x3a8] sm:$0xf]  ;;  %v9528_v62 = vld [vmem:[#allocation2 + $0x94] sm:$0xf0] }
 0x2f9   :  { %5015 = vmatpush.bf16.msrb.mxu0 %v8639_v58  ;;  %v8051_v58 = vor.u32 %v9596_v55, %v8050_v48  ;;  %v7906_v63 = vld [vmem:[#allocation2 + $0x188] sm:$0xf]  ;;  %v8179_v0 = vor.u32 %v9628_v49, %v8178_v60  ;;  %v9560_v1 = vld [vmem:[#allocation2 + $0x194] sm:$0xf0] }
 0x2fa   :  { %4977 = vmatpush.bf16.msrb.mxu3 %v8239_v3  ;;  %v8034_v3 = vld [vmem:[#allocation2 + $0x288] sm:$0xf]  ;;  %v9592_v4 = vld [vmem:[#allocation2 + $0x294] sm:$0xf0]  ;;  %v7907_v10 = vor.u32 %v9560_v1, %v7906_v63 }
 0x2fb   :  { %4990 = vmatpush.bf16.msrb.mxu1 %v8367_v8  ;;  %v8162_v7 = vld [vmem:[#allocation2 + $0x388] sm:$0xf]  ;;  %v9624_v8 = vld [vmem:[#allocation2 + $0x394] sm:$0xf0]  ;;  %v8035_v11 = vor.u32 %v9592_v4, %v8034_v3 }
 0x2fc   :  { %5003 = vmatpush.bf16.msrb.mxu2 %v8495_v9  ;;  %v7779_v9 = vor.u32 %v9528_v62, %v7778_v59  ;;  %v7762_v12 = vld [vmem:[#allocation2 + $0x68] sm:$0xf]  ;;  %v8163_v57 = vor.u32 %v9624_v8, %v8162_v7  ;;  %v9556_v30 = vld [vmem:[#allocation2 + $0x174] sm:$0xf0] }
 0x2fd   :  { %5016 = vmatpush.bf16.msrb.mxu0 %v8623_v61  ;;  %v9524_v61 = vld [vmem:[#allocation2 + $0x74] sm:$0xf0]  ;;  %v7890_v51 = vld [vmem:[#allocation2 + $0x168] sm:$0xf] }
 0x2fe   :  { %4978 = vmatpush.bf16.msrb.mxu3 %v8223_v45  ;;  %v8018_v35 = vld [vmem:[#allocation2 + $0x268] sm:$0xf]  ;;  %v9588_v14 = vld [vmem:[#allocation2 + $0x274] sm:$0xf0]  ;;  %v7763_v16 = vor.u32 %v9524_v61, %v7762_v12  ;;  %v7891_v18 = vor.u32 %v9556_v30, %v7890_v51 }
 0x2ff   :  { %4991 = vmatpush.bf16.msrb.mxu1 %v8351_v21  ;;  %v8146_v15 = vld [vmem:[#allocation2 + $0x368] sm:$0xf]  ;;  %v9620_v45 = vld [vmem:[#allocation2 + $0x374] sm:$0xf0]  ;;  %v8019_v20 = vor.u32 %v9588_v14, %v8018_v35 }
 0x300   :  { %5004 = vmatpush.bf16.msrb.mxu2 %v8479_v22  ;;  %v7746_v21 = vld [vmem:[#allocation2 + $0x48] sm:$0xf]  ;;  %v9520_v22 = vld [vmem:[#allocation2 + $0x54] sm:$0xf0]  ;;  %v8147_v26 = vor.u32 %v9620_v45, %v8146_v15 }
 0x301   :  { %5017 = vmatpush.bf16.msrb.mxu0 %v8607_v50  ;;  %4979 = vmatmul.bf16.vlgmr.msrb.gmra.mxu3 %v10296_v17  ;;  %v7874_v23 = vld [vmem:[#allocation2 + $0x148] sm:$0xf]  ;;  %v9552_v50 = vld [vmem:[#allocation2 + $0x154] sm:$0xf0]  ;;  %v7747_v31 = vor.u32 %v9520_v22, %v7746_v21 }
 0x302   :  { %5023 = vmatpush.bf16.msra.mxu3 %v7827_v25  ;;  %4992 = vmatmul.bf16.vlgmr.msrb.gmra.mxu1 %v10304_v36  ;;  %v8002_v25 = vld [vmem:[#allocation2 + $0x248] sm:$0xf]  ;;  %v9616_v37 = vld [vmem:[#allocation2 + $0x354] sm:$0xf0]  ;;  %v7875_v32 = vor.u32 %v9552_v50, %v7874_v23 }
 0x303   :  { %5036 = vmatpush.bf16.msra.mxu1 %v7955_v28  ;;  %5005 = vmatmul.bf16.vlgmr.msrb.gmra.mxu2 %v10307_v6  ;;  %v9584_v28 = vld [vmem:[#allocation2 + $0x254] sm:$0xf0]  ;;  %v7730_v5 = vld [vmem:[#allocation2 + $0x28] sm:$0xf] }
 0x304   :  { %5049 = vmatpush.bf16.msra.mxu2 %v8083_v29  ;;  %5018 = vmatmul.bf16.vlgmr.msrb.gmra.mxu0 %v10310_v27  ;;  %v8130_v29 = vld [vmem:[#allocation2 + $0x348] sm:$0xf]  ;;  %v9516_v34 = vld [vmem:[#allocation2 + $0x34] sm:$0xf0] }
 0x305   :  { %5062 = vmatpush.bf16.msra.mxu0 %v8211_v33  ;;  %v8003_v33 = vor.u32 %v9584_v28, %v8002_v25  ;;  %v7858_v38 = vld [vmem:[#allocation2 + $0x128] sm:$0xf]  ;;  %v8131_v39 = vor.u32 %v9616_v37, %v8130_v29  ;;  %v9548_v40 = vld [vmem:[#allocation2 + $0x134] sm:$0xf0]  ;;  %v7731_v44 = vor.u32 %v9516_v34, %v7730_v5 }
 0x306   :  { %5024 = vmatpush.bf16.msra.mxu3 %v7811_v19  ;;  %v7986_v19 = vld [vmem:[#allocation2 + $0x228] sm:$0xf]  ;;  %v9612_v43 = vld [vmem:[#allocation2 + $0x334] sm:$0xf0]  ;;  %v7859_v47 = vor.u32 %v9548_v40, %v7858_v38 }
 0x307   :  { %5037 = vmatpush.bf16.msra.mxu1 %v7939_v41  ;;  %v9580_v41 = vld [vmem:[#allocation2 + $0x234] sm:$0xf0]  ;;  %v7714_v46 = vld [vmem:[#allocation2 + $0x8] sm:$0xf] }
 0x308   :  { %5050 = vmatpush.bf16.msra.mxu2 %v8067_v42  ;;  %v8114_v42 = vld [vmem:[#allocation2 + $0x328] sm:$0xf]  ;;  %v7987_v48 = vor.u32 %v9580_v41, %v7986_v19  ;;  %v9544_v60 = vld [vmem:[#allocation2 + $0x114] sm:$0xf0] }
 0x309   :  { %5063 = vmatpush.bf16.msra.mxu0 %v8195_v24  ;;  %v9512_v24 = vld [vmem:[#allocation2 + $0x14] sm:$0xf0]  ;;  %v7842_v55 = vld [vmem:[#allocation2 + $0x108] sm:$0xf] }
 0x30a   :  { %5025 = vmatpush.bf16.msra.mxu3 %v7795_v53  ;;  %v7970_v49 = vld [vmem:[#allocation2 + $0x208] sm:$0xf]  ;;  %v8115_v53 = vor.u32 %v9612_v43, %v8114_v42  ;;  %v9608_v59 = vld [vmem:[#allocation2 + $0x314] sm:$0xf0]  ;;  %v7715_v1 = vor.u32 %v9512_v24, %v7714_v46  ;;  %v7843_v8 = vor.u32 %v9544_v60, %v7842_v55 }
 0x30b   :  { %5038 = vmatpush.bf16.msra.mxu1 %v7923_v56  ;;  %v9576_v56 = vld [vmem:[#allocation2 + $0x214] sm:$0xf0]  ;;  %v8338_v62 = vld [vmem:[#allocation2 + $0x4e8] sm:$0xf] }
 0x30c   :  { %5051 = vmatpush.bf16.msra.mxu2 %v8051_v58  ;;  %v8098_v58 = vld [vmem:[#allocation2 + $0x308] sm:$0xf]  ;;  %v9668_v63 = vld [vmem:[#allocation2 + $0x4f4] sm:$0xf0] }
 0x30d   :  { %5064 = vmatpush.bf16.msra.mxu0 %v8179_v0  ;;  %v8466_v0 = vld [vmem:[#allocation2 + $0x5e8] sm:$0xf]  ;;  %v9700_v3 = vld [vmem:[#allocation2 + $0x5f4] sm:$0xf0]  ;;  %v8099_v12 = vor.u32 %v9608_v59, %v8098_v58  ;;  %v8339_v61 = vor.u32 %v9668_v63, %v8338_v62 }
 0x30e   :  { %5026 = vmatpush.bf16.msra.mxu3 %v7779_v9  ;;  %v8594_v4 = vld [vmem:[#allocation2 + $0x6e8] sm:$0xf]  ;;  %v9732_v7 = vld [vmem:[#allocation2 + $0x6f4] sm:$0xf0]  ;;  %v7971_v9 = vor.u32 %v9576_v56, %v7970_v49  ;;  %v8467_v51 = vor.u32 %v9700_v3, %v8466_v0 }
 0x30f   :  { %5039 = vmatpush.bf16.msra.mxu1 %v7907_v10  ;;  %v8722_v10 = vld [vmem:[#allocation2 + $0x7e8] sm:$0xf]  ;;  %v9664_v35 = vld [vmem:[#allocation2 + $0x4d4] sm:$0xf0] }
 0x310   :  { %5052 = vmatpush.bf16.msra.mxu2 %v8035_v11  ;;  %v9764_v11 = vld [vmem:[#allocation2 + $0x7f4] sm:$0xf0]  ;;  %v8322_v30 = vld [vmem:[#allocation2 + $0x4c8] sm:$0xf] }
 0x311   :  { %5065 = vmatpush.bf16.msra.mxu0 %v8163_v57  ;;  %v8595_v57 = vor.u32 %v9732_v7, %v8594_v4  ;;  %v8450_v14 = vld [vmem:[#allocation2 + $0x5c8] sm:$0xf]  ;;  %v8723_v15 = vor.u32 %v9764_v11, %v8722_v10  ;;  %v9696_v45 = vld [vmem:[#allocation2 + $0x5d4] sm:$0xf0]  ;;  %v8323_v22 = vor.u32 %v9664_v35, %v8322_v30 }
 0x312   :  { %5027 = vmatpush.bf16.msra.mxu3 %v7763_v16  ;;  %v8578_v16 = vld [vmem:[#allocation2 + $0x6c8] sm:$0xf]  ;;  %v9760_v21 = vld [vmem:[#allocation2 + $0x7d4] sm:$0xf0]  ;;  %v8451_v23 = vor.u32 %v9696_v45, %v8450_v14 }
 0x313   :  { %5040 = vmatpush.bf16.msra.mxu1 %v7891_v18  ;;  %v9728_v18 = vld [vmem:[#allocation2 + $0x6d4] sm:$0xf0]  ;;  %v8306_v50 = vld [vmem:[#allocation2 + $0x4a8] sm:$0xf] }
 0x314   :  { %5053 = vmatpush.bf16.msra.mxu2 %v8019_v20  ;;  %v8706_v20 = vld [vmem:[#allocation2 + $0x7c8] sm:$0xf]  ;;  %v9660_v25 = vld [vmem:[#allocation2 + $0x4b4] sm:$0xf0] }
 0x315   :  { %5066 = vmatpush.bf16.msra.mxu0 %v8147_v26  ;;  %v8579_v26 = vor.u32 %v9728_v18, %v8578_v16  ;;  %v8434_v28 = vld [vmem:[#allocation2 + $0x5a8] sm:$0xf]  ;;  %v8707_v29 = vor.u32 %v9760_v21, %v8706_v20  ;;  %v9692_v37 = vld [vmem:[#allocation2 + $0x5b4] sm:$0xf0]  ;;  %v8307_v34 = vor.u32 %v9660_v25, %v8306_v50 }
 0x316   :  { %5028 = vmatpush.bf16.msra.mxu3 %v7747_v31  ;;  %v8562_v31 = vld [vmem:[#allocation2 + $0x6a8] sm:$0xf]  ;;  %v9756_v5 = vld [vmem:[#allocation2 + $0x7b4] sm:$0xf0]  ;;  %v8435_v38 = vor.u32 %v9692_v37, %v8434_v28 }
 0x317   :  { %5041 = vmatpush.bf16.msra.mxu1 %v7875_v32  ;;  %v9724_v32 = vld [vmem:[#allocation2 + $0x6b4] sm:$0xf0]  ;;  %v8290_v40 = vld [vmem:[#allocation2 + $0x488] sm:$0xf] }
 0x318   :  { %5054 = vmatpush.bf16.msra.mxu2 %v8003_v33  ;;  %v8690_v33 = vld [vmem:[#allocation2 + $0x7a8] sm:$0xf]  ;;  %v9656_v19 = vld [vmem:[#allocation2 + $0x494] sm:$0xf0] }
 0x319   :  { %5067 = vmatpush.bf16.msra.mxu0 %v8131_v39  ;;  %v8563_v39 = vor.u32 %v9724_v32, %v8562_v31  ;;  %v8418_v41 = vld [vmem:[#allocation2 + $0x588] sm:$0xf]  ;;  %v8691_v42 = vor.u32 %v9756_v5, %v8690_v33  ;;  %v9688_v43 = vld [vmem:[#allocation2 + $0x594] sm:$0xf0]  ;;  %v8291_v55 = vor.u32 %v9656_v19, %v8290_v40 }
 0x31a   :  { %5029 = vmatpush.bf16.msra.mxu3 %v7731_v44  ;;  %v8546_v44 = vld [vmem:[#allocation2 + $0x688] sm:$0xf]  ;;  %v9720_v46 = vld [vmem:[#allocation2 + $0x694] sm:$0xf0] }
 0x31b   :  { %5042 = vmatpush.bf16.msra.mxu1 %v7859_v47  ;;  %v8674_v24 = vld [vmem:[#allocation2 + $0x788] sm:$0xf]  ;;  %v9752_v47 = vld [vmem:[#allocation2 + $0x794] sm:$0xf0]  ;;  %v8547_v56 = vor.u32 %v9720_v46, %v8546_v44 }
 0x31c   :  { %5055 = vmatpush.bf16.msra.mxu2 %v7987_v48  ;;  %v10332_v48 = vld [vmem:[#allocation13 + $0x8] sm:$0xf]  ;;  %v8274_v60 = vld [vmem:[#allocation2 + $0x468] sm:$0xf]  ;;  %v9652_v58 = vld [vmem:[#allocation2 + $0x474] sm:$0xf0]  ;;  %v8675_v0 = vor.u32 %v9752_v47, %v8674_v24 }
 0x31d   :  { %5068 = vmatpush.bf16.msra.mxu0 %v8115_v53  ;;  %v8419_v53 = vor.u32 %v9688_v43, %v8418_v41  ;;  %v8402_v59 = vld [vmem:[#allocation2 + $0x568] sm:$0xf]  ;;  %v9684_v62 = vld [vmem:[#allocation2 + $0x574] sm:$0xf0]  ;;  %v3527_v4 = vperm.slane %v10332_v48, 0 }
 0x31e   :  { %5030 = vmatpush.bf16.msra.mxu3 %v7715_v1  ;;  %v8530_v1 = vld [vmem:[#allocation2 + $0x668] sm:$0xf]  ;;  %v9716_v3 = vld [vmem:[#allocation2 + $0x674] sm:$0xf0]  ;;  %v8403_v10 = vor.u32 %v9684_v62, %v8402_v59  ;;  %v9538_v59 = vld [vmem:[#allocation2 + $0xec] sm:$0xf] }
 0x31f   :  { %5043 = vmatpush.bf16.msra.mxu1 %v7843_v8  ;;  %v4837_v49 = vpop.f32.mrf.mxu1  ;;  %v8658_v7 = vld [vmem:[#allocation2 + $0x768] sm:$0xf]  ;;  %v9748_v8 = vld [vmem:[#allocation2 + $0x774] sm:$0xf0]  ;;  %v8531_v11 = vor.u32 %v9716_v3, %v8530_v1  ;;  %v7828_v62 = vld [vmem:[#allocation2 + $0xf8] sm:$0xf0] }
 0x320   :  { %5056 = vmatpush.bf16.msra.mxu2 %v7971_v9  ;;  %v8275_v9 = vor.u32 %v9652_v58, %v8274_v60  ;;  %v8659_v30 = vor.u32 %v9748_v8, %v8658_v7  ;;  %v9680_v35 = vld [vmem:[#allocation2 + $0x554] sm:$0xf0]  ;;  %v8514_v14 = vld [vmem:[#allocation2 + $0x648] sm:$0xf]  ;;  %v7956_v1 = vld [vmem:[#allocation2 + $0x1f8] sm:$0xf0] }
 0x321   :  { %5069 = vmatpush.bf16.msra.mxu0 %v8099_v12  ;;  %5031 = vmatmul.bf16.vlgmr.msra.gmra.mxu3 %v10224_v52  ;;  %v4863_v63 = vpop.f32.mrf.mxu0  ;;  %v8258_v12 = vld [vmem:[#allocation2 + $0x448] sm:$0xf]  ;;  %v9744_v20 = vld [vmem:[#allocation2 + $0x754] sm:$0xf0]  ;;  %v9602_v3 = vld [vmem:[#allocation2 + $0x2ec] sm:$0xf] }
 0x322   :  { %5075 = vmatpush.bf16.msrb.mxu3 %v8339_v61  ;;  %5044 = vmatmul.bf16.vlgmr.msra.gmra.mxu1 %v10241_v13  ;;  %v9648_v61 = vld [vmem:[#allocation2 + $0x454] sm:$0xf0]  ;;  %v8642_v18 = vld [vmem:[#allocation2 + $0x748] sm:$0xf] }
 0x323   :  { %5088 = vmatpush.bf16.msrb.mxu1 %v8467_v51  ;;  %5057 = vmatmul.bf16.vlgmr.msra.gmra.mxu2 %v10264_v54  ;;  %v8386_v51 = vld [vmem:[#allocation2 + $0x548] sm:$0xf]  ;;  %v8259_v21 = vor.u32 %v9648_v61, %v8258_v12  ;;  %v9644_v28 = vld [vmem:[#allocation2 + $0x434] sm:$0xf0]  ;;  %v8643_v31 = vor.u32 %v9744_v20, %v8642_v18  ;;  %v7831_v12 = vor.u32 %v9538_v59, %v7828_v62  ;;  %v9630_v18 = vld [vmem:[#allocation2 + $0x3cc] sm:$0xf] }
 0x324   :  { %5101 = vmatpush.bf16.msrb.mxu2 %v8595_v57  ;;  %5070 = vmatmul.bf16.vlgmr.msra.gmra.mxu0 %v10273_v2  ;;  %v4824_v57 = vpop.f32.mrf.mxu3  ;;  %v8242_v25 = vld [vmem:[#allocation2 + $0x428] sm:$0xf]  ;;  %v9676_v32 = vld [vmem:[#allocation2 + $0x534] sm:$0xf0]  ;;  %v8196_v20 = vld [vmem:[#allocation2 + $0x3d8] sm:$0xf0] }
 0x325   :  { %5114 = vmatpush.bf16.msrb.mxu0 %v8723_v15  ;;  %v9712_v15 = vld [vmem:[#allocation2 + $0x654] sm:$0xf0]  ;;  %v4825_v45 = vadd.f32 %v4824_v57, %v3527_v4  ;;  %v8498_v33 = vld [vmem:[#allocation2 + $0x628] sm:$0xf]  ;;  %v8243_v40 = vor.u32 %v9644_v28, %v8242_v25  ;;  %v8084_v4 = vld [vmem:[#allocation2 + $0x2f8] sm:$0xf0]  ;;  %v8199_v28 = vor.u32 %v9630_v18, %v8196_v20 }
 0x326   :  { %5076 = vmatpush.bf16.msrb.mxu3 %v8323_v22  ;;  %v4850_v16 = vpop.f32.mrf.mxu2  ;;  %v8515_v50 = vor.u32 %v9712_v15, %v8514_v14  ;;  %v9708_v5 = vld [vmem:[#allocation2 + $0x634] sm:$0xf0]  ;;  %v8226_v19 = vld [vmem:[#allocation2 + $0x408] sm:$0xf]  ;;  %v9534_v57 = vld [vmem:[#allocation2 + $0xcc] sm:$0xf] }
 0x327   :  { %5089 = vmatpush.bf16.msrb.mxu1 %v8451_v23  ;;  %v4838_v22 = vadd.f32 %v4837_v49, %v4825_v45  ;;  %v4839_v23 = vpop.f32.mrf.mxu1  ;;  %v9640_v41 = vld [vmem:[#allocation2 + $0x414] sm:$0xf0]  ;;  %v8499_v44 = vor.u32 %v9708_v5, %v8498_v33  ;;  %v8354_v46 = vld [vmem:[#allocation2 + $0x508] sm:$0xf]  ;;  %v7940_v15 = vld [vmem:[#allocation2 + $0x1d8] sm:$0xf0] }
 0x328   :  { %5102 = vmatpush.bf16.msrb.mxu2 %v8579_v26  ;;  %v8387_v26 = vor.u32 %v9680_v35, %v8386_v51  ;;  %v9672_v24 = vld [vmem:[#allocation2 + $0x514] sm:$0xf0]  ;;  %v8482_v47 = vld [vmem:[#allocation2 + $0x608] sm:$0xf]  ;;  %v8087_v51 = vor.u32 %v9602_v3, %v8084_v4  ;;  %v9566_v35 = vld [vmem:[#allocation2 + $0x1cc] sm:$0xf] }
 0x329   :  { %5115 = vmatpush.bf16.msrb.mxu0 %v8707_v29  ;;  %v8370_v29 = vld [vmem:[#allocation2 + $0x528] sm:$0xf]  ;;  %v4865_v37 = vpop.f32.mrf.mxu0  ;;  %v9704_v49 = vld [vmem:[#allocation2 + $0x614] sm:$0xf0]  ;;  %v8355_v7 = vor.u32 %v9672_v24, %v8354_v46  ;;  %v9598_v45 = vld [vmem:[#allocation2 + $0x2cc] sm:$0xf] }
 0x32a   :  { %5077 = vmatpush.bf16.msrb.mxu3 %v8307_v34  ;;  %v4851_v34 = vadd.f32 %v4850_v16, %v4838_v22  ;;  %v8371_v43 = vor.u32 %v9676_v32, %v8370_v29  ;;  %v8483_v8 = vor.u32 %v9704_v49, %v8482_v47  ;;  %v8068_v16 = vld [vmem:[#allocation2 + $0x2d8] sm:$0xf0]  ;;  %v7943_v22 = vor.u32 %v9566_v35, %v7940_v15  ;;  %v9562_v25 = vld [vmem:[#allocation2 + $0x1ac] sm:$0xf] }
 0x32b   :  { %5090 = vmatpush.bf16.msrb.mxu1 %v8435_v38  ;;  %v8626_v38 = vld [vmem:[#allocation2 + $0x728] sm:$0xf]  ;;  %v8071_v23 = vor.u32 %v9598_v45, %v8068_v16  ;;  %v7924_v29 = vld [vmem:[#allocation2 + $0x1b8] sm:$0xf0]  ;;  %v9594_v37 = vld [vmem:[#allocation2 + $0x2ac] sm:$0xf] }
 0x32c   :  { %5103 = vmatpush.bf16.msrb.mxu2 %v8563_v39  ;;  %v9740_v39 = vld [vmem:[#allocation2 + $0x734] sm:$0xf0]  ;;  %v9626_v32 = vld [vmem:[#allocation2 + $0x3ac] sm:$0xf]  ;;  %v8180_v33 = vld [vmem:[#allocation2 + $0x3b8] sm:$0xf0] }
 0x32d   :  { %5116 = vmatpush.bf16.msrb.mxu0 %v8691_v42  ;;  %v10335_v42 = vadd.f32 %v4863_v63, %v4851_v34  ;;  %v8627_v60 = vor.u32 %v9740_v39, %v8626_v38  ;;  %v8227_v63 = vor.u32 %v9640_v41, %v8226_v19  ;;  %v7927_v34 = vor.u32 %v9562_v25, %v7924_v29  ;;  %v9526_v39 = vld [vmem:[#allocation2 + $0x8c] sm:$0xf]  ;;  %v8036_v46 = vld [vmem:[#allocation2 + $0x298] sm:$0xf0] }
 0x32e   :  { %5078 = vmatpush.bf16.msrb.mxu3 %v8291_v55  ;;  %v4826_v55 = vpop.f32.mrf.mxu3  ;;  %v4852_v58 = vpop.f32.mrf.mxu2  ;;  %v9558_v19 = vld [vmem:[#allocation2 + $0x18c] sm:$0xf]  ;;  %v8183_v41 = vor.u32 %v9626_v32, %v8180_v33  ;;  %v8164_v47 = vld [vmem:[#allocation2 + $0x398] sm:$0xf0] }
 0x32f   :  { %5091 = vmatpush.bf16.msrb.mxu1 %v8419_v53  ;;  %v8610_v53 = vld [vmem:[#allocation2 + $0x708] sm:$0xf]  ;;  %v9622_v24 = vld [vmem:[#allocation2 + $0x38c] sm:$0xf]  ;;  %v7764_v58 = vld [vmem:[#allocation2 + $0x78] sm:$0xf0] }
 0x330   :  { %5104 = vmatpush.bf16.msrb.mxu2 %v8547_v56  ;;  %v9736_v56 = vld [vmem:[#allocation2 + $0x714] sm:$0xf0]  ;;  %v9554_v59 = vld [vmem:[#allocation2 + $0x16c] sm:$0xf]  ;;  %v8020_v3 = vld [vmem:[#allocation2 + $0x278] sm:$0xf0] }
 0x331   :  { %5117 = vmatpush.bf16.msrb.mxu0 %v8675_v0  ;;  %v9570_v0 = vld [vmem:[#allocation2 + $0x1ec] sm:$0xf]  ;;  %v7876_v35 = vld [vmem:[#allocation2 + $0x158] sm:$0xf0] }
 0x332   :  { %5079 = vmatpush.bf16.msrb.mxu3 %v8275_v9  ;;  %v9634_v9 = vld [vmem:[#allocation2 + $0x3ec] sm:$0xf]  ;;  %v7959_v61 = vor.u32 %v9570_v0, %v7956_v1  ;;  %v8167_v0 = vor.u32 %v9622_v24, %v8164_v47  ;;  %v8004_v15 = vld [vmem:[#allocation2 + $0x258] sm:$0xf0] }
 0x333   :  { %5092 = vmatpush.bf16.msrb.mxu1 %v8403_v10  ;;  %v8212_v10 = vld [vmem:[#allocation2 + $0x3f8] sm:$0xf0]  ;;  %v9586_v1 = vld [vmem:[#allocation2 + $0x26c] sm:$0xf] }
 0x334   :  { %5105 = vmatpush.bf16.msrb.mxu2 %v8531_v11  ;;  %v8611_v11 = vor.u32 %v9736_v56, %v8610_v53  ;;  %v8215_v14 = vor.u32 %v9634_v9, %v8212_v10  ;;  %v9522_v56 = vld [vmem:[#allocation2 + $0x6c] sm:$0xf]  ;;  %v8023_v10 = vor.u32 %v9586_v1, %v8020_v3  ;;  %v8132_v18 = vld [vmem:[#allocation2 + $0x358] sm:$0xf0] }
 0x335   :  { %5118 = vmatpush.bf16.msrb.mxu0 %v8659_v30  ;;  %v7812_v30 = vld [vmem:[#allocation2 + $0xd8] sm:$0xf0]  ;;  %v9618_v4 = vld [vmem:[#allocation2 + $0x36c] sm:$0xf] }
 0x336   :  { %5080 = vmatpush.bf16.msrb.mxu3 %v8259_v21  ;;  %v7815_v21 = vor.u32 %v9534_v57, %v7812_v30  ;;  %v9614_v16 = vld [vmem:[#allocation2 + $0x34c] sm:$0xf]  ;;  %v7732_v25 = vld [vmem:[#allocation2 + $0x38] sm:$0xf0] }
 0x337   :  { %5093 = vmatpush.bf16.msrb.mxu1 %v8387_v26  ;;  %v9530_v26 = vld [vmem:[#allocation2 + $0xac] sm:$0xf]  ;;  %v7988_v33 = vld [vmem:[#allocation2 + $0x238] sm:$0xf0] }
 0x338   :  { %5106 = vmatpush.bf16.msrb.mxu2 %v8515_v50  ;;  %v7796_v50 = vld [vmem:[#allocation2 + $0xb8] sm:$0xf0]  ;;  %v9578_v32 = vld [vmem:[#allocation2 + $0x22c] sm:$0xf] }
 0x339   :  { %5119 = vmatpush.bf16.msrb.mxu0 %v8643_v31  ;;  %v8052_v31 = vld [vmem:[#allocation2 + $0x2b8] sm:$0xf0]  ;;  %v7799_v5 = vor.u32 %v9530_v26, %v7796_v50  ;;  %v9514_v50 = vld [vmem:[#allocation2 + $0x2c] sm:$0xf] }
 0x33a   :  { %5081 = vmatpush.bf16.msrb.mxu3 %v8243_v40  ;;  %v8055_v38 = vor.u32 %v9594_v37, %v8052_v31  ;;  %v7780_v40 = vld [vmem:[#allocation2 + $0x98] sm:$0xf0]  ;;  %v9574_v24 = vld [vmem:[#allocation2 + $0x20c] sm:$0xf] }
 0x33b   :  { %5094 = vmatpush.bf16.msrb.mxu1 %v8371_v43  ;;  %v7908_v43 = vld [vmem:[#allocation2 + $0x198] sm:$0xf0]  ;;  %v7783_v55 = vor.u32 %v9526_v39, %v7780_v40  ;;  %v9510_v40 = vld [vmem:[#allocation2 + $0xc] sm:$0xf] }
 0x33c   :  { %5107 = vmatpush.bf16.msrb.mxu2 %v8499_v44  ;;  %v9590_v44 = vld [vmem:[#allocation2 + $0x28c] sm:$0xf]  ;;  %v7911_v49 = vor.u32 %v9558_v19, %v7908_v43  ;;  %v7860_v31 = vld [vmem:[#allocation2 + $0x138] sm:$0xf0] }
 0x33d   :  { %5120 = vmatpush.bf16.msrb.mxu0 %v8627_v60  ;;  %v8039_v53 = vor.u32 %v9590_v44, %v8036_v46  ;;  %v7716_v19 = vld [vmem:[#allocation2 + $0x18] sm:$0xf0]  ;;  %v7991_v44 = vor.u32 %v9578_v32, %v7988_v33  ;;  %v9754_v32 = vld [vmem:[#allocation2 + $0x7ac] sm:$0xf] }
 0x33e   :  { %5082 = vmatpush.bf16.msrb.mxu3 %v8227_v63  ;;  %v7892_v63 = vld [vmem:[#allocation2 + $0x178] sm:$0xf0]  ;;  %v7719_v1 = vor.u32 %v9510_v40, %v7716_v19 }
 0x33f   :  { %5095 = vmatpush.bf16.msrb.mxu1 %v8355_v7  ;;  %v4889_v60 = vpop.f32.mrf.mxu1  ;;  %v8148_v7 = vld [vmem:[#allocation2 + $0x378] sm:$0xf0]  ;;  %v7895_v9 = vor.u32 %v9554_v59, %v7892_v63  ;;  %v9666_v59 = vld [vmem:[#allocation2 + $0x4ec] sm:$0xf] }
 0x340   :  { %5108 = vmatpush.bf16.msrb.mxu2 %v8483_v8  ;;  %v7767_v8 = vor.u32 %v9522_v56, %v7764_v58  ;;  %v8151_v57 = vor.u32 %v9618_v4, %v8148_v7  ;;  %v7844_v46 = vld [vmem:[#allocation2 + $0x118] sm:$0xf0]  ;;  %v9730_v4 = vld [vmem:[#allocation2 + $0x6ec] sm:$0xf] }
 0x341   :  { %5121 = vmatpush.bf16.msrb.mxu0 %v8611_v11  ;;  %5083 = vmatmul.bf16.vlgmr.msrb.gmra.mxu3 %v10296_v17  ;;  %v4915_v62 = vpop.f32.mrf.mxu0  ;;  %v7972_v47 = vld [vmem:[#allocation2 + $0x218] sm:$0xf0] }
 0x342   :  { %5127 = vmatpush.bf16.msra.mxu3 %v7831_v12  ;;  %5096 = vmatmul.bf16.vlgmr.msrb.gmra.mxu1 %v10304_v36  ;;  %v9518_v12 = vld [vmem:[#allocation2 + $0x4c] sm:$0xf]  ;;  %v8100_v56 = vld [vmem:[#allocation2 + $0x318] sm:$0xf0] }
 0x343   :  { %5140 = vmatpush.bf16.msra.mxu1 %v7959_v61  ;;  %5109 = vmatmul.bf16.vlgmr.msrb.gmra.mxu2 %v10307_v6  ;;  %v7748_v61 = vld [vmem:[#allocation2 + $0x58] sm:$0xf0] }
 0x344   :  { %5153 = vmatpush.bf16.msra.mxu2 %v8087_v51  ;;  %5122 = vmatmul.bf16.vlgmr.msrb.gmra.mxu0 %v10310_v27  ;;  %v4876_v11 = vpop.f32.mrf.mxu3  ;;  %v9550_v51 = vld [vmem:[#allocation2 + $0x14c] sm:$0xf]  ;;  %v7751_v20 = vor.u32 %v9518_v12, %v7748_v61  ;;  %v8468_v3 = vld [vmem:[#allocation2 + $0x5f8] sm:$0xf0] }
 0x345   :  { %5166 = vmatpush.bf16.msra.mxu0 %v8215_v14  ;;  %v4877_v30 = vadd.f32 %v4876_v11, %v10335_v42  ;;  %v9582_v14 = vld [vmem:[#allocation2 + $0x24c] sm:$0xf]  ;;  %v8135_v42 = vor.u32 %v9614_v16, %v8132_v18  ;;  %v8596_v7 = vld [vmem:[#allocation2 + $0x6f8] sm:$0xf0] }
 0x346   :  { %5128 = vmatpush.bf16.msra.mxu3 %v7815_v21  ;;  %v4902_v45 = vpop.f32.mrf.mxu2  ;;  %v8007_v26 = vor.u32 %v9582_v14, %v8004_v15  ;;  %v8724_v11 = vld [vmem:[#allocation2 + $0x7f8] sm:$0xf0]  ;;  %v9694_v14 = vld [vmem:[#allocation2 + $0x5cc] sm:$0xf] }
 0x347   :  { %5141 = vmatpush.bf16.msra.mxu1 %v7943_v22  ;;  %v4890_v21 = vadd.f32 %v4889_v60, %v4877_v30  ;;  %v4891_v22 = vpop.f32.mrf.mxu1  ;;  %v9662_v30 = vld [vmem:[#allocation2 + $0x4cc] sm:$0xf]  ;;  %v8580_v18 = vld [vmem:[#allocation2 + $0x6d8] sm:$0xf0] }
 0x348   :  { %5154 = vmatpush.bf16.msra.mxu2 %v8071_v23  ;;  %v7879_v23 = vor.u32 %v9550_v51, %v7876_v35  ;;  %v8324_v35 = vld [vmem:[#allocation2 + $0x4d8] sm:$0xf0]  ;;  %v9726_v16 = vld [vmem:[#allocation2 + $0x6cc] sm:$0xf] }
 0x349   :  { %5167 = vmatpush.bf16.msra.mxu0 %v8199_v28  ;;  %v9546_v28 = vld [vmem:[#allocation2 + $0x12c] sm:$0xf]  ;;  %v4917_v29 = vpop.f32.mrf.mxu0  ;;  %v4903_v37 = vadd.f32 %v4902_v45, %v4890_v21  ;;  %v8452_v45 = vld [vmem:[#allocation2 + $0x5d8] sm:$0xf0]  ;;  %v8327_v22 = vor.u32 %v9662_v30, %v8324_v35 }
 0x34a   :  { %5129 = vmatpush.bf16.msra.mxu3 %v7799_v5  ;;  %v9610_v5 = vld [vmem:[#allocation2 + $0x32c] sm:$0xf]  ;;  %v7863_v43 = vor.u32 %v9546_v28, %v7860_v31  ;;  %v8708_v21 = vld [vmem:[#allocation2 + $0x7d8] sm:$0xf0] }
 0x34b   :  { %5142 = vmatpush.bf16.msra.mxu1 %v7927_v34  ;;  %v8116_v34 = vld [vmem:[#allocation2 + $0x338] sm:$0xf0]  ;;  %v4916_v39 = vadd.f32 %v4915_v62, %v4903_v37  ;;  %v9698_v62 = vld [vmem:[#allocation2 + $0x5ec] sm:$0xf] }
 0x34c   :  { %5155 = vmatpush.bf16.msra.mxu2 %v8055_v38  ;;  %v7735_v38 = vor.u32 %v9514_v50, %v7732_v25  ;;  %v8119_v60 = vor.u32 %v9610_v5, %v8116_v34  ;;  %v8471_v51 = vor.u32 %v9698_v62, %v8468_v3  ;;  %v9658_v50 = vld [vmem:[#allocation2 + $0x4ac] sm:$0xf]  ;;  %v8308_v25 = vld [vmem:[#allocation2 + $0x4b8] sm:$0xf0]  ;;  %v3528_v62 = vperm.slane %v10332_v48, 1 }
 0x34d   :  { %5168 = vmatpush.bf16.msra.mxu0 %v8183_v41  ;;  %v9542_v41 = vld [vmem:[#allocation2 + $0x10c] sm:$0xf]  ;;  %v8564_v31 = vld [vmem:[#allocation2 + $0x6b8] sm:$0xf0]  ;;  %v8311_v5 = vor.u32 %v9658_v50, %v8308_v25 }
 0x34e   :  { %5130 = vmatpush.bf16.msra.mxu3 %v7783_v55  ;;  %v4878_v55 = vpop.f32.mrf.mxu3  ;;  %v4904_v58 = vpop.f32.mrf.mxu2  ;;  %v9690_v28 = vld [vmem:[#allocation2 + $0x5ac] sm:$0xf]  ;;  %v8692_v33 = vld [vmem:[#allocation2 + $0x7b8] sm:$0xf0] }
 0x34f   :  { %5143 = vmatpush.bf16.msra.mxu1 %v7911_v49  ;;  %v5231_v49 = vmax.f32 %v4916_v39, 0.0  ;;  %v9722_v37 = vld [vmem:[#allocation2 + $0x6ac] sm:$0xf]  ;;  %v8292_v40 = vld [vmem:[#allocation2 + $0x498] sm:$0xf0]  ;;  %v8695_v19 = vor.u32 %v9754_v32, %v8692_v33 }
 0x350   :  { %5156 = vmatpush.bf16.msra.mxu2 %v8039_v53  ;;  %v9606_v53 = vld [vmem:[#allocation2 + $0x30c] sm:$0xf]  ;;  %v8660_v3 = vld [vmem:[#allocation2 + $0x778] sm:$0xf0] }
 0x351   :  { %5169 = vmatpush.bf16.msra.mxu0 %v8167_v0  ;;  %v8340_v0 = vld [vmem:[#allocation2 + $0x4f8] sm:$0xf0]  ;;  %v10342_v63 = vpack.c.bf16 %v5231_v49, %v5231_v49  ;;  %v8103_v12 = vor.u32 %v9606_v53, %v8100_v56  ;;  %v9654_v39 = vld [vmem:[#allocation2 + $0x48c] sm:$0xf] }
 0x352   :  { %5131 = vmatpush.bf16.msra.mxu3 %v7767_v8  ;;  %v7847_v8 = vor.u32 %v9542_v41, %v7844_v46  ;;  %v8343_v61 = vor.u32 %v9666_v59, %v8340_v0  ;;  %v8420_v41 = vld [vmem:[#allocation2 + $0x598] sm:$0xf0]  ;;  %v9750_v46 = vld [vmem:[#allocation2 + $0x78c] sm:$0xf] }
 0x353   :  { %5144 = vmatpush.bf16.msra.mxu1 %v7895_v9  ;;  %v7975_v9 = vor.u32 %v9574_v24, %v7972_v47  ;;  %v9650_v24 = vld [vmem:[#allocation2 + $0x46c] sm:$0xf]  ;;  %v8404_v53 = vld [vmem:[#allocation2 + $0x578] sm:$0xf0] }
 0x354   :  { %5157 = vmatpush.bf16.msra.mxu2 %v8023_v10  ;;  %v9762_v10 = vld [vmem:[#allocation2 + $0x7ec] sm:$0xf]  ;;  %v8532_v0 = vld [vmem:[#allocation2 + $0x678] sm:$0xf0] }
 0x355   :  { %5170 = vmatpush.bf16.msra.mxu0 %v8151_v57  ;;  %v8599_v57 = vor.u32 %v9730_v4, %v8596_v7  ;;  %v8727_v15 = vor.u32 %v9762_v10, %v8724_v11  ;;  %v9682_v49 = vld [vmem:[#allocation2 + $0x56c] sm:$0xf]  ;;  %v8260_v10 = vld [vmem:[#allocation2 + $0x458] sm:$0xf0] }
 0x356   :  { %5132 = vmatpush.bf16.msra.mxu3 %v7751_v20  ;;  %v9758_v20 = vld [vmem:[#allocation2 + $0x7cc] sm:$0xf]  ;;  %v8407_v7 = vor.u32 %v9682_v49, %v8404_v53  ;;  %v8516_v30 = vld [vmem:[#allocation2 + $0x658] sm:$0xf0] }
 0x357   :  { %5145 = vmatpush.bf16.msra.mxu1 %v7879_v23  ;;  %v8455_v23 = vor.u32 %v9694_v14, %v8452_v45  ;;  %v8711_v29 = vor.u32 %v9758_v20, %v8708_v21  ;;  %v9714_v59 = vld [vmem:[#allocation2 + $0x66c] sm:$0xf]  ;;  %v8644_v45 = vld [vmem:[#allocation2 + $0x758] sm:$0xf0] }
 0x358   :  { %5158 = vmatpush.bf16.msra.mxu2 %v8007_v26  ;;  %v8583_v26 = vor.u32 %v9726_v16, %v8580_v18  ;;  %v9678_v11 = vld [vmem:[#allocation2 + $0x54c] sm:$0xf]  ;;  %v8628_v33 = vld [vmem:[#allocation2 + $0x738] sm:$0xf0] }
 0x359   :  { %5171 = vmatpush.bf16.msra.mxu0 %v8135_v42  ;;  %v8436_v42 = vld [vmem:[#allocation2 + $0x5b8] sm:$0xf0]  ;;  %v9674_v50 = vld [vmem:[#allocation2 + $0x52c] sm:$0xf] }
 0x35a   :  { %5133 = vmatpush.bf16.msra.mxu3 %v7735_v38  ;;  %v8439_v34 = vor.u32 %v9690_v28, %v8436_v42  ;;  %v8567_v38 = vor.u32 %v9722_v37, %v8564_v31  ;;  %v9706_v42 = vld [vmem:[#allocation2 + $0x62c] sm:$0xf]  ;;  %v8500_v37 = vld [vmem:[#allocation2 + $0x638] sm:$0xf0] }
 0x35b   :  { %5146 = vmatpush.bf16.msra.mxu1 %v7863_v43  ;;  %v9718_v43 = vld [vmem:[#allocation2 + $0x68c] sm:$0xf] }
 0x35c   :  { %5159 = vmatpush.bf16.msra.mxu2 %v7991_v44  ;;  %v8548_v44 = vld [vmem:[#allocation2 + $0x698] sm:$0xf0]  ;;  %v9738_v32 = vld [vmem:[#allocation2 + $0x72c] sm:$0xf] }
 0x35d   :  { %5172 = vmatpush.bf16.msra.mxu0 %v8119_v60  ;;  %v8551_v55 = vor.u32 %v9718_v43, %v8548_v44  ;;  %v8276_v60 = vld [vmem:[#allocation2 + $0x478] sm:$0xf0]  ;;  %v8631_v43 = vor.u32 %v9738_v32, %v8628_v33 }
 0x35e   :  { %5134 = vmatpush.bf16.msra.mxu3 %v7719_v1  ;;  %v9746_v1 = vld [vmem:[#allocation2 + $0x76c] sm:$0xf]  ;;  %v8279_v4 = vor.u32 %v9650_v24, %v8276_v60  ;;  %v8356_v44 = vld [vmem:[#allocation2 + $0x518] sm:$0xf0] }
 0x35f   :  { %5147 = vmatpush.bf16.msra.mxu1 %v7847_v8  ;;  %v4941_v47 = vpop.f32.mrf.mxu1  ;;  %v8535_v8 = vor.u32 %v9714_v59, %v8532_v0  ;;  %v9734_v24 = vld [vmem:[#allocation2 + $0x70c] sm:$0xf] }
 0x360   :  { %5160 = vmatpush.bf16.msra.mxu2 %v7975_v9  ;;  %v9646_v9 = vld [vmem:[#allocation2 + $0x44c] sm:$0xf] }
 0x361   :  { %5173 = vmatpush.bf16.msra.mxu0 %v8103_v12  ;;  %5135 = vmatmul.bf16.vlgmr.msra.gmra.mxu3 %v10224_v52  ;;  %v9686_v52 = vld [vmem:[#allocation2 + $0x58c] sm:$0xf]  ;;  %v4967_v56 = vpop.f32.mrf.mxu0  ;;  %v8263_v16 = vor.u32 %v9646_v9, %v8260_v10 }
 0x362   :  { %5179 = vmatpush.bf16.msrb.mxu3 %v8343_v61  ;;  %5148 = vmatmul.bf16.vlgmr.msra.gmra.mxu1 %v10241_v13  ;;  %v8295_v13 = vor.u32 %v9654_v39, %v8292_v40  ;;  %v8663_v61 = vor.u32 %v9746_v1, %v8660_v3  ;;  %v8503_v39 = vor.u32 %v9706_v42, %v8500_v37  ;;  %v9638_v40 = vld [vmem:[#allocation2 + $0x40c] sm:$0xf] }
 0x363   :  { %5192 = vmatpush.bf16.msrb.mxu1 %v8471_v51  ;;  %5161 = vmatmul.bf16.vlgmr.msra.gmra.mxu2 %v10264_v54  ;;  %v8676_v54 = vld [vmem:[#allocation2 + $0x798] sm:$0xf0] }
 0x364   :  { %5205 = vmatpush.bf16.msrb.mxu2 %v8599_v57  ;;  %5174 = vmatmul.bf16.vlgmr.msra.gmra.mxu0 %v10273_v2  ;;  %v8423_v2 = vor.u32 %v9686_v52, %v8420_v41  ;;  %v8679_v58 = vor.u32 %v9750_v46, %v8676_v54  ;;  %v4928_v12 = vpop.f32.mrf.mxu3  ;;  %v8388_v51 = vld [vmem:[#allocation2 + $0x558] sm:$0xf0]  ;;  %v9710_v57 = vld [vmem:[#allocation2 + $0x64c] sm:$0xf] }
 0x365   :  { %5218 = vmatpush.bf16.msrb.mxu0 %v8727_v15  ;;  %v4929_v35 = vadd.f32 %v4928_v12, %v3528_v62  ;;  %v9742_v15 = vld [vmem:[#allocation2 + $0x74c] sm:$0xf]  ;;  %v8391_v21 = vor.u32 %v9678_v11, %v8388_v51  ;;  %v8228_v52 = vld [vmem:[#allocation2 + $0x418] sm:$0xf0] }
 0x366   :  { %5180 = vmatpush.bf16.msrb.mxu3 %v8327_v22  ;;  %v4954_v14 = vpop.f32.mrf.mxu2  ;;  %v8519_v22 = vor.u32 %v9710_v57, %v8516_v30  ;;  %v8647_v28 = vor.u32 %v9742_v15, %v8644_v45  ;;  %v9702_v46 = vld [vmem:[#allocation2 + $0x60c] sm:$0xf]  ;;  %v8484_v54 = vld [vmem:[#allocation2 + $0x618] sm:$0xf0] }
 0x367   :  { %5193 = vmatpush.bf16.msrb.mxu1 %v8455_v23  ;;  %v4942_v18 = vadd.f32 %v4941_v47, %v4929_v35  ;;  %v4943_v20 = vpop.f32.mrf.mxu1  ;;  %v9642_v23 = vld [vmem:[#allocation2 + $0x42c] sm:$0xf]  ;;  %v8612_v47 = vld [vmem:[#allocation2 + $0x718] sm:$0xf0]  ;;  %v8487_v60 = vor.u32 %v9702_v46, %v8484_v54 }
 0x368   :  { %5206 = vmatpush.bf16.msrb.mxu2 %v8583_v26  ;;  %v8244_v26 = vld [vmem:[#allocation2 + $0x438] sm:$0xf0]  ;;  %v8615_v49 = vor.u32 %v9734_v24, %v8612_v47 }
 0x369   :  { %5219 = vmatpush.bf16.msrb.mxu0 %v8711_v29  ;;  %v4969_v25 = vpop.f32.mrf.mxu0  ;;  %v8372_v29 = vld [vmem:[#allocation2 + $0x538] sm:$0xf0]  ;;  %v4955_v31 = vadd.f32 %v4954_v14, %v4942_v18 }
 0x36a   :  { %5181 = vmatpush.bf16.msrb.mxu3 %v8311_v5  ;;  %v8247_v5 = vor.u32 %v9642_v23, %v8244_v26 }
 0x36b   :  { %5194 = vmatpush.bf16.msrb.mxu1 %v8439_v34  ;;  %v4968_v34 = vadd.f32 %v4967_v56, %v4955_v31 }
 0x36c   :  { %5207 = vmatpush.bf16.msrb.mxu2 %v8567_v38  ;;  %v8375_v38 = vor.u32 %v9674_v50, %v8372_v29  ;;  %v4930_v41 = vpop.f32.mrf.mxu3 }
 0x36d   :  { %5220 = vmatpush.bf16.msrb.mxu0 %v8695_v19  ;;  %v9670_v19 = vld [vmem:[#allocation2 + $0x50c] sm:$0xf] }
 0x36e   :  { %5182 = vmatpush.bf16.msrb.mxu3 %v8295_v13  ;;  %v4956_v13 = vpop.f32.mrf.mxu2 }
 0x36f   :  { %5195 = vmatpush.bf16.msrb.mxu1 %v8423_v2  ;;  %v8231_v2 = vor.u32 %v9638_v40, %v8228_v52 }
 0x370   :  { %5208 = vmatpush.bf16.msrb.mxu2 %v8551_v55  ;;  %v8359_v55 = vor.u32 %v9670_v19, %v8356_v44  ;;  %v3530_v19 = vperm.slane %v10332_v48, 3 }
 0x371   :  { %5221 = vmatpush.bf16.msrb.mxu0 %v8679_v58 }
 0x372   :  { %5183 = vmatpush.bf16.msrb.mxu3 %v8279_v4 }
 0x373   :  { %5196 = vmatpush.bf16.msrb.mxu1 %v8407_v7 }
 0x374   :  { %5209 = vmatpush.bf16.msrb.mxu2 %v8535_v8 }
 0x375   :  { %5222 = vmatpush.bf16.msrb.mxu0 %v8663_v61 }
 0x376   :  { %5184 = vmatpush.bf16.msrb.mxu3 %v8263_v16 }
 0x377   :  { %5197 = vmatpush.bf16.msrb.mxu1 %v8391_v21 }
 0x378   :  { %5210 = vmatpush.bf16.msrb.mxu2 %v8519_v22 }
 0x379   :  { %5223 = vmatpush.bf16.msrb.mxu0 %v8647_v28 }
 0x37a   :  { %5185 = vmatpush.bf16.msrb.mxu3 %v8247_v5 }
 0x37b   :  { %5198 = vmatpush.bf16.msrb.mxu1 %v8375_v38 }
 0x37c   :  { %5211 = vmatpush.bf16.msrb.mxu2 %v8503_v39 }
 0x37d   :  { %5224 = vmatpush.bf16.msrb.mxu0 %v8631_v43 }
 0x37e   :  { %5186 = vmatpush.bf16.msrb.mxu3 %v8231_v2 }
 0x37f   :  { %5199 = vmatpush.bf16.msrb.mxu1 %v8359_v55  ;;  %v4993_v53 = vpop.f32.mrf.mxu1 }
 0x380   :  { %5212 = vmatpush.bf16.msrb.mxu2 %v8487_v60 }
 0x381   :  { %5225 = vmatpush.bf16.msrb.mxu0 %v8615_v49  ;;  %5187 = vmatmul.bf16.vlgmr.msrb.gmra.mxu3 %v10296_v17  ;;  %v5019_v56 = vpop.f32.mrf.mxu0 }
 0x382   :  { %5200 = vmatmul.bf16.vlgmr.msrb.gmra.mxu1 %v10304_v36 }
 0x383   :  { %5213 = vmatmul.bf16.vlgmr.msrb.gmra.mxu2 %v10307_v6  ;;  %v3529_v6 = vperm.slane %v10332_v48, 2 }
 0x384   :  { %5226 = vmatmul.bf16.vlgmr.msrb.gmra.mxu0 %v10310_v27  ;;  %v4980_v58 = vpop.f32.mrf.mxu3 }
 0x385   :  { %v4981_v59 = vadd.f32 %v4980_v58, %v4968_v34 }
 0x386   :  { %v5006_v0 = vpop.f32.mrf.mxu2 }
 0x387   :  { %v4994_v62 = vadd.f32 %v4993_v53, %v4981_v59  ;;  %v4995_v1 = vpop.f32.mrf.mxu1 }
 0x389   :  { %v5021_v3 = vpop.f32.mrf.mxu0  ;;  %v5007_v4 = vadd.f32 %v5006_v0, %v4994_v62 }
 0x38b   :  { %v5020_v7 = vadd.f32 %v5019_v56, %v5007_v4 }
 0x38c   :  { %v4982_v8 = vpop.f32.mrf.mxu3 }
 0x38d   :  { %v5232_v9 = vmax.f32 %v5020_v7, 0.0 }
 0x38e   :  { %v5008_v10 = vpop.f32.mrf.mxu2 }
 0x38f   :  { %v10353_v17 = vpack.c.bf16 %v5232_v9, %v5232_v9 }
 0x39f   :  { %v5045_v36 = vpop.f32.mrf.mxu1 }
 0x3a1   :  { %v5071_v11 = vpop.f32.mrf.mxu0 }
 0x3a4   :  { %v5032_v27 = vpop.f32.mrf.mxu3 }
 0x3a5   :  { %v5033_v12 = vadd.f32 %v5032_v27, %v3529_v6 }
 0x3a6   :  { %v5058_v61 = vpop.f32.mrf.mxu2 }
 0x3a7   :  { %v5046_v51 = vadd.f32 %v5045_v36, %v5033_v12  ;;  %v5047_v57 = vpop.f32.mrf.mxu1 }
 0x3a9   :  { %v5073_v30 = vpop.f32.mrf.mxu0  ;;  %v5059_v35 = vadd.f32 %v5058_v61, %v5046_v51 }
 0x3ab   :  { %v5072_v14 = vadd.f32 %v5071_v11, %v5059_v35 }
 0x3ac   :  { %v5034_v15 = vpop.f32.mrf.mxu3 }
 0x3ae   :  { %v5060_v45 = vpop.f32.mrf.mxu2 }
 0x3bf   :  { %v5097_v16 = vpop.f32.mrf.mxu1 }
 0x3c1   :  { %v5123_v18 = vpop.f32.mrf.mxu0 }
 0x3c4   :  { %v5084_v20 = vpop.f32.mrf.mxu3 }
 0x3c5   :  { %v5085_v21 = vadd.f32 %v5084_v20, %v5072_v14 }
 0x3c6   :  { %v5110_v22 = vpop.f32.mrf.mxu2 }
 0x3c7   :  { %v5098_v23 = vadd.f32 %v5097_v16, %v5085_v21  ;;  %v5099_v26 = vpop.f32.mrf.mxu1 }
 0x3c9   :  { %v5125_v50 = vpop.f32.mrf.mxu0  ;;  %v5111_v25 = vadd.f32 %v5110_v22, %v5098_v23 }
 0x3cb   :  { %v5124_v28 = vadd.f32 %v5123_v18, %v5111_v25 }
 0x3cc   :  { %v5086_v29 = vpop.f32.mrf.mxu3 }
 0x3cd   :  { %v5233_v42 = vmax.f32 %v5124_v28, 0.0 }
 0x3ce   :  { %v5112_v37 = vpop.f32.mrf.mxu2 }
 0x3cf   :  { %v10356_v31 = vpack.c.bf16 %v5233_v42, %v5233_v42 }
 0x3df   :  { %v5149_v32 = vpop.f32.mrf.mxu1 }
 0x3e1   :  { %v5175_v33 = vpop.f32.mrf.mxu0 }
 0x3e4   :  { %v5136_v5 = vpop.f32.mrf.mxu3 }
 0x3e5   :  { %v5137_v41 = vadd.f32 %v5136_v5, %v3530_v19 }
 0x3e6   :  { %v5162_v34 = vpop.f32.mrf.mxu2 }
 0x3e7   :  { %v5151_v38 = vpop.f32.mrf.mxu1  ;;  %v5150_v43 = vadd.f32 %v5149_v32, %v5137_v41 }
 0x3e9   :  { %v5177_v39 = vpop.f32.mrf.mxu0  ;;  %v5163_v44 = vadd.f32 %v5162_v34, %v5150_v43 }
 0x3eb   :  { %v5176_v13 = vadd.f32 %v5175_v33, %v5163_v44 }
 0x3ec   :  { %v5138_v40 = vpop.f32.mrf.mxu3 }
 0x3ee   :  { %v5164_v52 = vpop.f32.mrf.mxu2 }
 0x3ff   :  { %v5201_v46 = vpop.f32.mrf.mxu1 }
 0x401   :  { %v5227_v54 = vpop.f32.mrf.mxu0 }
 0x404   :  { %v5188_v24 = vpop.f32.mrf.mxu3 }
 0x405   :  { %v5189_v47 = vadd.f32 %v5188_v24, %v5176_v13 }
 0x406   :  { %v5214_v2 = vpop.f32.mrf.mxu2 }
 0x407   :  { %v5202_v55 = vadd.f32 %v5201_v46, %v5189_v47  ;;  %v5203_v60 = vpop.f32.mrf.mxu1 }
 0x409   :  { %v5229_v49 = vpop.f32.mrf.mxu0  ;;  %v5215_v53 = vadd.f32 %v5214_v2, %v5202_v55 }
 0x40b   :  { %v5228_v56 = vadd.f32 %v5227_v54, %v5215_v53 }
 0x40c   :  { %v5190_v58 = vpop.f32.mrf.mxu3 }
 0x40d   :  { %v5234_v59 = vmax.f32 %v5228_v56, 0.0 }
 0x40e   :  { %v5216_v0 = vpop.f32.mrf.mxu2 }
 0x40f   :  { %v10359_v62 = vpack.c.bf16 %v5234_v59, %v5234_v59 }
 0x410   :  { %10098 = dma.done.wait [#allocation7 + $0x1], 8192 }
 0x411   :  { %10099 = vsyncadd [#allocation7 + $0x1], 4294959104  ;;  %v8786_v48 = vld [vmem:[#allocation3 + $0x70] sm:$0xf]  ;;  %v9780_v1 = vld [vmem:[#allocation3 + $0x74] sm:$0xf0] }
 0x412   :  { %v8850_v3 = vld [vmem:[#allocation3 + $0xf0] sm:$0xf]  ;;  %v8787_v4 = vor.u32 %v9780_v1, %v8786_v48  ;;  %v9796_v7 = vld [vmem:[#allocation3 + $0xf4] sm:$0xf0]  ;;  %v8778_v27 = vld [vmem:[#allocation3 + $0x60] sm:$0xf] }
 0x413   :  { %v8914_v8 = vld [vmem:[#allocation3 + $0x170] sm:$0xf]  ;;  %v9812_v9 = vld [vmem:[#allocation3 + $0x174] sm:$0xf0]  ;;  %v8851_v10 = vor.u32 %v9796_v7, %v8850_v3  ;;  %v9778_v61 = vld [vmem:[#allocation3 + $0x64] sm:$0xf0] }
 0x414   :  { %v8915_v36 = vor.u32 %v9812_v9, %v8914_v8  ;;  %v8978_v11 = vld [vmem:[#allocation3 + $0x1f0] sm:$0xf]  ;;  %v9828_v6 = vld [vmem:[#allocation3 + $0x1f4] sm:$0xf0]  ;;  %5633 = vmatpush.bf16.msra.mxu3 %v8787_v4  ;;  %v8842_v51 = vld [vmem:[#allocation3 + $0xe0] sm:$0xf]  ;;  %v8779_v30 = vor.u32 %v9778_v61, %v8778_v27 }
 0x415   :  { %v8979_v12 = vor.u32 %v9828_v6, %v8978_v11  ;;  %v9794_v57 = vld [vmem:[#allocation3 + $0xe4] sm:$0xf0]  ;;  %5646 = vmatpush.bf16.msra.mxu1 %v8851_v10  ;;  %v8906_v14 = vld [vmem:[#allocation3 + $0x160] sm:$0xf]  ;;  %v8770_v20 = vld [vmem:[#allocation3 + $0x50] sm:$0xf] }
 0x416   :  { %5659 = vmatpush.bf16.msra.mxu2 %v8915_v36  ;;  %v8843_v35 = vor.u32 %v9794_v57, %v8842_v51  ;;  %v9810_v15 = vld [vmem:[#allocation3 + $0x164] sm:$0xf0]  ;;  %v8970_v45 = vld [vmem:[#allocation3 + $0x1e0] sm:$0xf]  ;;  %v9776_v21 = vld [vmem:[#allocation3 + $0x54] sm:$0xf0] }
 0x417   :  { %5672 = vmatpush.bf16.msra.mxu0 %v8979_v12  ;;  %v8907_v16 = vor.u32 %v9810_v15, %v8906_v14  ;;  %v9826_v18 = vld [vmem:[#allocation3 + $0x1e4] sm:$0xf0]  ;;  %v8834_v23 = vld [vmem:[#allocation3 + $0xd0] sm:$0xf]  ;;  %v9792_v26 = vld [vmem:[#allocation3 + $0xd4] sm:$0xf0]  ;;  %v8771_v25 = vor.u32 %v9776_v21, %v8770_v20 }
 0x418   :  { %v8971_v22 = vor.u32 %v9826_v18, %v8970_v45  ;;  %v8898_v50 = vld [vmem:[#allocation3 + $0x150] sm:$0xf]  ;;  %5634 = vmatpush.bf16.msra.mxu3 %v8779_v30  ;;  %v9808_v28 = vld [vmem:[#allocation3 + $0x154] sm:$0xf0]  ;;  %v8835_v37 = vor.u32 %v9792_v26, %v8834_v23  ;;  %v8762_v33 = vld [vmem:[#allocation3 + $0x40] sm:$0xf] }
 0x419   :  { %v8962_v29 = vld [vmem:[#allocation3 + $0x1d0] sm:$0xf]  ;;  %v9824_v42 = vld [vmem:[#allocation3 + $0x1d4] sm:$0xf0]  ;;  %5647 = vmatpush.bf16.msra.mxu1 %v8843_v35  ;;  %v8899_v32 = vor.u32 %v9808_v28, %v8898_v50  ;;  %v9774_v5 = vld [vmem:[#allocation3 + $0x44] sm:$0xf0] }
 0x41a   :  { %5660 = vmatpush.bf16.msra.mxu2 %v8907_v16  ;;  %v8826_v34 = vld [vmem:[#allocation3 + $0xc0] sm:$0xf]  ;;  %v8963_v38 = vor.u32 %v9824_v42, %v8962_v29  ;;  %v9790_v39 = vld [vmem:[#allocation3 + $0xc4] sm:$0xf0]  ;;  %v8763_v43 = vor.u32 %v9774_v5, %v8762_v33  ;;  %v8754_v54 = vld [vmem:[#allocation3 + $0x30] sm:$0xf] }
 0x41b   :  { %5673 = vmatpush.bf16.msra.mxu0 %v8971_v22  ;;  %v8890_v40 = vld [vmem:[#allocation3 + $0x140] sm:$0xf]  ;;  %v9806_v52 = vld [vmem:[#allocation3 + $0x144] sm:$0xf0]  ;;  %v8827_v44 = vor.u32 %v9790_v39, %v8826_v34  ;;  %v9772_v13 = vld [vmem:[#allocation3 + $0x34] sm:$0xf0] }
 0x41c   :  { %v8954_v19 = vld [vmem:[#allocation3 + $0x1c0] sm:$0xf]  ;;  %v9822_v41 = vld [vmem:[#allocation3 + $0x1c4] sm:$0xf0]  ;;  %5635 = vmatpush.bf16.msra.mxu3 %v8771_v25  ;;  %v8891_v46 = vor.u32 %v9806_v52, %v8890_v40  ;;  %v8818_v24 = vld [vmem:[#allocation3 + $0xb0] sm:$0xf]  ;;  %v8755_v56 = vor.u32 %v9772_v13, %v8754_v54 }
 0x41d   :  { %5648 = vmatpush.bf16.msra.mxu1 %v8835_v37  ;;  %v8955_v47 = vor.u32 %v9822_v41, %v8954_v19  ;;  %v9788_v2 = vld [vmem:[#allocation3 + $0xb4] sm:$0xf0]  ;;  %v8882_v55 = vld [vmem:[#allocation3 + $0x130] sm:$0xf]  ;;  %v8746_v0 = vld [vmem:[#allocation3 + $0x20] sm:$0xf] }
 0x41e   :  { %5661 = vmatpush.bf16.msra.mxu2 %v8899_v32  ;;  %v9804_v60 = vld [vmem:[#allocation3 + $0x134] sm:$0xf0]  ;;  %v8946_v49 = vld [vmem:[#allocation3 + $0x1b0] sm:$0xf]  ;;  %v8819_v58 = vor.u32 %v9788_v2, %v8818_v24  ;;  %v9770_v48 = vld [vmem:[#allocation3 + $0x24] sm:$0xf0] }
 0x41f   :  { %5674 = vmatpush.bf16.msra.mxu0 %v8963_v38  ;;  %v9820_v53 = vld [vmem:[#allocation3 + $0x1b4] sm:$0xf0]  ;;  %v8883_v59 = vor.u32 %v9804_v60, %v8882_v55  ;;  %v8810_v1 = vld [vmem:[#allocation3 + $0xa0] sm:$0xf]  ;;  %v9786_v4 = vld [vmem:[#allocation3 + $0xa4] sm:$0xf0]  ;;  %v8747_v36 = vor.u32 %v9770_v48, %v8746_v0 }
 0x420   :  { %5636 = vmatpush.bf16.msra.mxu3 %v8763_v43  ;;  %v8947_v3 = vor.u32 %v9820_v53, %v8946_v49  ;;  %v8874_v7 = vld [vmem:[#allocation3 + $0x120] sm:$0xf]  ;;  %v9802_v8 = vld [vmem:[#allocation3 + $0x124] sm:$0xf0]  ;;  %v8811_v11 = vor.u32 %v9786_v4, %v8810_v1  ;;  %v8738_v27 = vld [vmem:[#allocation3 + $0x10] sm:$0xf] }
 0x421   :  { %5649 = vmatpush.bf16.msra.mxu1 %v8827_v44  ;;  %v8938_v9 = vld [vmem:[#allocation3 + $0x1a0] sm:$0xf]  ;;  %v9818_v10 = vld [vmem:[#allocation3 + $0x1a4] sm:$0xf0]  ;;  %v8875_v6 = vor.u32 %v9802_v8, %v8874_v7  ;;  %v9768_v12 = vld [vmem:[#allocation3 + $0x14] sm:$0xf0] }
 0x422   :  { %5662 = vmatpush.bf16.msra.mxu2 %v8891_v46  ;;  %v8802_v61 = vld [vmem:[#allocation3 + $0x90] sm:$0xf]  ;;  %v8939_v51 = vor.u32 %v9818_v10, %v8938_v9  ;;  %v9784_v57 = vld [vmem:[#allocation3 + $0x94] sm:$0xf0]  ;;  %v8739_v45 = vor.u32 %v9768_v12, %v8738_v27  ;;  %v8730_v16 = vld [vmem:[#allocation3] sm:$0xf] }
 0x423   :  { %5675 = vmatpush.bf16.msra.mxu0 %v8955_v47  ;;  %v8866_v30 = vld [vmem:[#allocation3 + $0x110] sm:$0xf]  ;;  %v9800_v35 = vld [vmem:[#allocation3 + $0x114] sm:$0xf0]  ;;  %v9766_v18 = vld [vmem:[#allocation3 + $0x4] sm:$0xf0]  ;;  %v8803_v20 = vor.u32 %v9784_v57, %v8802_v61 }
 0x424   :  { %5637 = vmatpush.bf16.msra.mxu3 %v8755_v56  ;;  %v8930_v14 = vld [vmem:[#allocation3 + $0x190] sm:$0xf]  ;;  %v9816_v15 = vld [vmem:[#allocation3 + $0x194] sm:$0xf0]  ;;  %v8867_v21 = vor.u32 %v9800_v35, %v8866_v30  ;;  %v8794_v22 = vld [vmem:[#allocation3 + $0x80] sm:$0xf]  ;;  %v8731_v33 = vor.u32 %v9766_v18, %v8730_v16 }
 0x425   :  { %5650 = vmatpush.bf16.msra.mxu1 %v8819_v58  ;;  %v9782_v23 = vld [vmem:[#allocation3 + $0x84] sm:$0xf0]  ;;  %v8858_v26 = vld [vmem:[#allocation3 + $0x100] sm:$0xf]  ;;  %v8931_v50 = vor.u32 %v9816_v15, %v8930_v14  ;;  %v9779_v42 = vld [vmem:[#allocation3 + $0x74] sm:$0xf] }
 0x426   :  { %5663 = vmatpush.bf16.msra.mxu2 %v8883_v59  ;;  %v9798_v25 = vld [vmem:[#allocation3 + $0x104] sm:$0xf0]  ;;  %v8922_v28 = vld [vmem:[#allocation3 + $0x180] sm:$0xf]  ;;  %v8788_v37 = vld [vmem:[#allocation3 + $0x78] sm:$0xf0]  ;;  %v8795_v39 = vor.u32 %v9782_v23, %v8794_v22 }
 0x427   :  { %5676 = vmatpush.bf16.msra.mxu0 %v8947_v3  ;;  %v9814_v29 = vld [vmem:[#allocation3 + $0x184] sm:$0xf0]  ;;  %v9795_v32 = vld [vmem:[#allocation3 + $0xf4] sm:$0xf]  ;;  %v8852_v5 = vld [vmem:[#allocation3 + $0xf8] sm:$0xf0]  ;;  %v8859_v40 = vor.u32 %v9798_v25, %v8858_v26  ;;  %v8791_v43 = vor.u32 %v9779_v42, %v8788_v37 }
 0x428   :  { %5638 = vmatpush.bf16.msra.mxu3 %v8747_v36  ;;  %v9811_v34 = vld [vmem:[#allocation3 + $0x174] sm:$0xf]  ;;  %v8916_v38 = vld [vmem:[#allocation3 + $0x178] sm:$0xf0]  ;;  %v8923_v41 = vor.u32 %v9814_v29, %v8922_v28  ;;  %v8855_v44 = vor.u32 %v9795_v32, %v8852_v5  ;;  %v9777_v54 = vld [vmem:[#allocation3 + $0x64] sm:$0xf] }
 0x429   :  { %5651 = vmatpush.bf16.msra.mxu1 %v8811_v11  ;;  %v9827_v52 = vld [vmem:[#allocation3 + $0x1f4] sm:$0xf]  ;;  %v8980_v19 = vld [vmem:[#allocation3 + $0x1f8] sm:$0xf0]  ;;  %v8919_v46 = vor.u32 %v9811_v34, %v8916_v38  ;;  %v8780_v13 = vld [vmem:[#allocation3 + $0x68] sm:$0xf0] }
 0x42a   :  { %5664 = vmatpush.bf16.msra.mxu2 %v8875_v6  ;;  %v9793_v24 = vld [vmem:[#allocation3 + $0xe4] sm:$0xf]  ;;  %v8983_v47 = vor.u32 %v9827_v52, %v8980_v19  ;;  %v8844_v2 = vld [vmem:[#allocation3 + $0xe8] sm:$0xf0]  ;;  %v8783_v56 = vor.u32 %v9777_v54, %v8780_v13  ;;  %v9775_v0 = vld [vmem:[#allocation3 + $0x54] sm:$0xf] }
 0x42b   :  { %5677 = vmatpush.bf16.msra.mxu0 %v8939_v51  ;;  %v9809_v55 = vld [vmem:[#allocation3 + $0x164] sm:$0xf]  ;;  %v8908_v60 = vld [vmem:[#allocation3 + $0x168] sm:$0xf0]  ;;  %v8847_v58 = vor.u32 %v9793_v24, %v8844_v2  ;;  %v8772_v48 = vld [vmem:[#allocation3 + $0x58] sm:$0xf0] }
 0x42c   :  { %5639 = vmatpush.bf16.msra.mxu3 %v8739_v45  ;;  %v9825_v49 = vld [vmem:[#allocation3 + $0x1e4] sm:$0xf]  ;;  %v8972_v53 = vld [vmem:[#allocation3 + $0x1e8] sm:$0xf0]  ;;  %v8911_v59 = vor.u32 %v9809_v55, %v8908_v60  ;;  %v9791_v1 = vld [vmem:[#allocation3 + $0xd4] sm:$0xf]  ;;  %v8775_v36 = vor.u32 %v9775_v0, %v8772_v48 }
 0x42d   :  { %5652 = vmatpush.bf16.msra.mxu1 %v8803_v20  ;;  %v8975_v3 = vor.u32 %v9825_v49, %v8972_v53  ;;  %v8836_v4 = vld [vmem:[#allocation3 + $0xd8] sm:$0xf0]  ;;  %v9807_v7 = vld [vmem:[#allocation3 + $0x154] sm:$0xf]  ;;  %v9773_v27 = vld [vmem:[#allocation3 + $0x44] sm:$0xf] }
 0x42e   :  { %5665 = vmatpush.bf16.msra.mxu2 %v8867_v21  ;;  %v8900_v8 = vld [vmem:[#allocation3 + $0x158] sm:$0xf0]  ;;  %v9823_v9 = vld [vmem:[#allocation3 + $0x1d4] sm:$0xf]  ;;  %v8839_v11 = vor.u32 %v9791_v1, %v8836_v4  ;;  %v8764_v12 = vld [vmem:[#allocation3 + $0x48] sm:$0xf0] }
 0x42f   :  { %5678 = vmatpush.bf16.msra.mxu0 %v8931_v50  ;;  %v8964_v10 = vld [vmem:[#allocation3 + $0x1d8] sm:$0xf0]  ;;  %v8903_v6 = vor.u32 %v9807_v7, %v8900_v8  ;;  %v9789_v61 = vld [vmem:[#allocation3 + $0xc4] sm:$0xf]  ;;  %v8828_v57 = vld [vmem:[#allocation3 + $0xc8] sm:$0xf0]  ;;  %v8767_v45 = vor.u32 %v9773_v27, %v8764_v12 }
 0x430   :  { %5640 = vmatpush.bf16.msra.mxu3 %v8731_v33  ;;  %v8967_v51 = vor.u32 %v9823_v9, %v8964_v10  ;;  %v9805_v30 = vld [vmem:[#allocation3 + $0x144] sm:$0xf]  ;;  %v8892_v35 = vld [vmem:[#allocation3 + $0x148] sm:$0xf0]  ;;  %v8831_v16 = vor.u32 %v9789_v61, %v8828_v57  ;;  %v9771_v20 = vld [vmem:[#allocation3 + $0x34] sm:$0xf] }
 0x431   :  { %5653 = vmatpush.bf16.msra.mxu1 %v8795_v39  ;;  %v9821_v14 = vld [vmem:[#allocation3 + $0x1c4] sm:$0xf]  ;;  %v8956_v15 = vld [vmem:[#allocation3 + $0x1c8] sm:$0xf0]  ;;  %v8895_v18 = vor.u32 %v9805_v30, %v8892_v35  ;;  %v8756_v21 = vld [vmem:[#allocation3 + $0x38] sm:$0xf0] }
 0x432   :  { %5666 = vmatpush.bf16.msra.mxu2 %v8859_v40  ;;  %v9787_v22 = vld [vmem:[#allocation3 + $0xb4] sm:$0xf]  ;;  %v8959_v23 = vor.u32 %v9821_v14, %v8956_v15  ;;  %v8820_v26 = vld [vmem:[#allocation3 + $0xb8] sm:$0xf0]  ;;  %v8759_v42 = vor.u32 %v9771_v20, %v8756_v21  ;;  %v9769_v33 = vld [vmem:[#allocation3 + $0x24] sm:$0xf] }
 0x433   :  { %5679 = vmatpush.bf16.msra.mxu0 %v8923_v41  ;;  %5641 = vmatmul.bf16.vlgmr.msra.gmra.mxu3 %v10342_v63  ;;  %v9803_v50 = vld [vmem:[#allocation3 + $0x134] sm:$0xf]  ;;  %v8884_v25 = vld [vmem:[#allocation3 + $0x138] sm:$0xf0]  ;;  %v8823_v37 = vor.u32 %v9787_v22, %v8820_v26  ;;  %v8748_v5 = vld [vmem:[#allocation3 + $0x28] sm:$0xf0] }
 0x434   :  { %5685 = vmatpush.bf16.msrb.mxu3 %v8791_v43  ;;  %5654 = vmatmul.bf16.vlgmr.msra.gmra.mxu1 %v10353_v17  ;;  %v9819_v28 = vld [vmem:[#allocation3 + $0x1b4] sm:$0xf]  ;;  %v8948_v29 = vld [vmem:[#allocation3 + $0x1b8] sm:$0xf0]  ;;  %v8887_v32 = vor.u32 %v9803_v50, %v8884_v25  ;;  %v9785_v34 = vld [vmem:[#allocation3 + $0xa4] sm:$0xf]  ;;  %v8751_v43 = vor.u32 %v9769_v33, %v8748_v5 }
 0x435   :  { %5698 = vmatpush.bf16.msrb.mxu1 %v8855_v44  ;;  %5667 = vmatmul.bf16.vlgmr.msra.gmra.mxu2 %v10356_v31  ;;  %v8951_v38 = vor.u32 %v9819_v28, %v8948_v29  ;;  %v8812_v39 = vld [vmem:[#allocation3 + $0xa8] sm:$0xf0]  ;;  %v9801_v40 = vld [vmem:[#allocation3 + $0x124] sm:$0xf]  ;;  %v9767_v54 = vld [vmem:[#allocation3 + $0x14] sm:$0xf] }
 0x436   :  { %5711 = vmatpush.bf16.msrb.mxu2 %v8919_v46  ;;  %5680 = vmatmul.bf16.vlgmr.msra.gmra.mxu0 %v10359_v62  ;;  %v8876_v52 = vld [vmem:[#allocation3 + $0x128] sm:$0xf0]  ;;  %v9817_v19 = vld [vmem:[#allocation3 + $0x1a4] sm:$0xf]  ;;  %v8815_v44 = vor.u32 %v9785_v34, %v8812_v39  ;;  %v8740_v13 = vld [vmem:[#allocation3 + $0x18] sm:$0xf0] }
 0x437   :  { %5724 = vmatpush.bf16.msrb.mxu0 %v8983_v47  ;;  %v8940_v41 = vld [vmem:[#allocation3 + $0x1a8] sm:$0xf0]  ;;  %v8879_v46 = vor.u32 %v9801_v40, %v8876_v52  ;;  %v9783_v24 = vld [vmem:[#allocation3 + $0x94] sm:$0xf]  ;;  %v8804_v2 = vld [vmem:[#allocation3 + $0x98] sm:$0xf0] }
 0x438   :  { %5686 = vmatpush.bf16.msrb.mxu3 %v8783_v56  ;;  %v8943_v47 = vor.u32 %v9817_v19, %v8940_v41  ;;  %v9799_v55 = vld [vmem:[#allocation3 + $0x114] sm:$0xf]  ;;  %v8868_v60 = vld [vmem:[#allocation3 + $0x118] sm:$0xf0]  ;;  %v8743_v56 = vor.u32 %v9767_v54, %v8740_v13  ;;  %v9765_v0 = vld [vmem:[#allocation3 + $0x4] sm:$0xf] }
 0x439   :  { %5699 = vmatpush.bf16.msrb.mxu1 %v8847_v58  ;;  %v9815_v49 = vld [vmem:[#allocation3 + $0x194] sm:$0xf]  ;;  %v8932_v53 = vld [vmem:[#allocation3 + $0x198] sm:$0xf0]  ;;  %v8807_v58 = vor.u32 %v9783_v24, %v8804_v2  ;;  %v8732_v48 = vld [vmem:[#allocation3 + $0x8] sm:$0xf0] }
 0x43a   :  { %5712 = vmatpush.bf16.msrb.mxu2 %v8911_v59  ;;  %v8871_v59 = vor.u32 %v9799_v55, %v8868_v60  ;;  %v9781_v1 = vld [vmem:[#allocation3 + $0x84] sm:$0xf]  ;;  %v8796_v4 = vld [vmem:[#allocation3 + $0x88] sm:$0xf0] }
 0x43b   :  { %5725 = vmatpush.bf16.msrb.mxu0 %v8975_v3  ;;  %v8935_v3 = vor.u32 %v9815_v49, %v8932_v53  ;;  %v9797_v7 = vld [vmem:[#allocation3 + $0x104] sm:$0xf]  ;;  %v8860_v8 = vld [vmem:[#allocation3 + $0x108] sm:$0xf0] }
 0x43c   :  { %5687 = vmatpush.bf16.msrb.mxu3 %v8775_v36  ;;  %v9813_v9 = vld [vmem:[#allocation3 + $0x184] sm:$0xf]  ;;  %v8924_v10 = vld [vmem:[#allocation3 + $0x188] sm:$0xf0]  ;;  %v8735_v36 = vor.u32 %v9765_v0, %v8732_v48 }
 0x43d   :  { %5700 = vmatpush.bf16.msrb.mxu1 %v8839_v11  ;;  %v8799_v11 = vor.u32 %v9781_v1, %v8796_v4  ;;  %v8927_v27 = vor.u32 %v9813_v9, %v8924_v10  ;;  %v5307_v12 = vld [vmem:[#allocation13 + $0xc] sm:$0x3] }
 0x43e   :  { %5713 = vmatpush.bf16.msrb.mxu2 %v8903_v6  ;;  %v8863_v6 = vor.u32 %v9797_v7, %v8860_v8  ;;  %v5309_v57 = vperm.slane %v5307_v12, 0  ;;  %v5310_v26 = vperm.slane %v5307_v12, 1 }
 0x43f   :  { %5726 = vmatpush.bf16.msrb.mxu0 %v8967_v51 }
 0x440   :  { %5688 = vmatpush.bf16.msrb.mxu3 %v8767_v45 }
 0x441   :  { %5701 = vmatpush.bf16.msrb.mxu1 %v8831_v16 }
 0x442   :  { %5714 = vmatpush.bf16.msrb.mxu2 %v8895_v18 }
 0x443   :  { %5727 = vmatpush.bf16.msrb.mxu0 %v8959_v23 }
 0x444   :  { %5689 = vmatpush.bf16.msrb.mxu3 %v8759_v42 }
 0x445   :  { %5702 = vmatpush.bf16.msrb.mxu1 %v8823_v37 }
 0x446   :  { %5715 = vmatpush.bf16.msrb.mxu2 %v8887_v32 }
 0x447   :  { %5728 = vmatpush.bf16.msrb.mxu0 %v8951_v38 }
 0x448   :  { %5690 = vmatpush.bf16.msrb.mxu3 %v8751_v43 }
 0x449   :  { %5703 = vmatpush.bf16.msrb.mxu1 %v8815_v44 }
 0x44a   :  { %5716 = vmatpush.bf16.msrb.mxu2 %v8879_v46 }
 0x44b   :  { %5729 = vmatpush.bf16.msrb.mxu0 %v8943_v47 }
 0x44c   :  { %5691 = vmatpush.bf16.msrb.mxu3 %v8743_v56 }
 0x44d   :  { %5704 = vmatpush.bf16.msrb.mxu1 %v8807_v58 }
 0x44e   :  { %5717 = vmatpush.bf16.msrb.mxu2 %v8871_v59 }
 0x44f   :  { %5730 = vmatpush.bf16.msrb.mxu0 %v8935_v3 }
 0x450   :  { %5692 = vmatpush.bf16.msrb.mxu3 %v8735_v36 }
 0x451   :  { %5705 = vmatpush.bf16.msrb.mxu1 %v8799_v11 }
 0x452   :  { %5718 = vmatpush.bf16.msrb.mxu2 %v8863_v6 }
 0x453   :  { %5731 = vmatpush.bf16.msrb.mxu0 %v8927_v27  ;;  %5693 = vmatmul.bf16.vlgmr.msrb.gmra.mxu3 %v10342_v63 }
 0x454   :  { %5706 = vmatmul.bf16.vlgmr.msrb.gmra.mxu1 %v10353_v17 }
 0x455   :  { %5719 = vmatmul.bf16.vlgmr.msrb.gmra.mxu2 %v10356_v31 }
 0x456   :  { %5732 = vmatmul.bf16.vlgmr.msrb.gmra.mxu0 %v10359_v62 }
 0x4b1   :  { %v5655_v61 = vpop.f32.mrf.mxu1 }
 0x4b3   :  { %v5681_v51 = vpop.f32.mrf.mxu0 }
 0x4b6   :  { %v5642_v30 = vpop.f32.mrf.mxu3 }
 0x4b7   :  { %v5643_v35 = vadd.f32 %v5642_v30, %v5309_v57 }
 0x4b8   :  { %v5668_v14 = vpop.f32.mrf.mxu2 }
 0x4b9   :  { %v5656_v15 = vadd.f32 %v5655_v61, %v5643_v35  ;;  %v5657_v45 = vpop.f32.mrf.mxu1 }
 0x4bb   :  { %v5683_v16 = vpop.f32.mrf.mxu0  ;;  %v5669_v18 = vadd.f32 %v5668_v14, %v5656_v15 }
 0x4bd   :  { %v5682_v20 = vadd.f32 %v5681_v51, %v5669_v18 }
 0x4be   :  { %v5644_v21 = vpop.f32.mrf.mxu3 }
 0x4bf   :  { %v5737_v63 = vmax.f32 %v5682_v20, 0.0 }
 0x4c0   :  { %v5670_v22 = vpop.f32.mrf.mxu2 }
 0x4c1   :  { %v5739_v17 = vpack.c.bf16 %v5737_v63, %v5737_v63 }
 0x4d1   :  { %v5707_v23 = vpop.f32.mrf.mxu1 }
 0x4d3   :  { %v5733_v31 = vpop.f32.mrf.mxu0 }
 0x4d6   :  { %v5694_v62 = vpop.f32.mrf.mxu3 }
 0x4d7   :  { %v5695_v50 = vadd.f32 %v5694_v62, %v5310_v26 }
 0x4d8   :  { %v5720_v25 = vpop.f32.mrf.mxu2 }
 0x4d9   :  { %v5708_v28 = vadd.f32 %v5707_v23, %v5695_v50  ;;  %v5709_v29 = vpop.f32.mrf.mxu1 }
 0x4db   :  { %v5735_v42 = vpop.f32.mrf.mxu0  ;;  %v5721_v37 = vadd.f32 %v5720_v25, %v5708_v28 }
 0x4dd   :  { %v5734_v32 = vadd.f32 %v5733_v31, %v5721_v37 }
 0x4de   :  { %v5696_v33 = vpop.f32.mrf.mxu3 }
 0x4df   :  { %v5738_v5 = vmax.f32 %v5734_v32, 0.0 }
 0x4e0   :  { %v5722_v34 = vpop.f32.mrf.mxu2 }
 0x4e1   :  { %v5740_v38 = vpack.c.bf16 %v5738_v5, %v5738_v5 }
 0x4e2   :  { %10100 = dma.done.wait [#allocation7 + $0x2], 2048 }
 0x4e3   :  { %10101 = vsyncadd [#allocation7 + $0x2], 4294965248  ;;  %v9836_v39 = vld [vmem:[#allocation4 + $0x38] sm:$0xff]  ;;  %v9835_v52 = vld [vmem:[#allocation4 + $0x30] sm:$0xff] }
 0x4e4   :  { %v9844_v40 = vld [vmem:[#allocation4 + $0x78] sm:$0xff]  ;;  %5877 = vmatpush.bf16.msra.mxu3 %v9836_v39  ;;  %v9843_v19 = vld [vmem:[#allocation4 + $0x70] sm:$0xff]  ;;  %v9834_v41 = vld [vmem:[#allocation4 + $0x28] sm:$0xff] }
 0x4e5   :  { %5890 = vmatpush.bf16.msra.mxu1 %v9844_v40  ;;  %v9842_v43 = vld [vmem:[#allocation4 + $0x68] sm:$0xff]  ;;  %v9833_v44 = vld [vmem:[#allocation4 + $0x20] sm:$0xff]  ;;  %v9832_v54 = vld [vmem:[#allocation4 + $0x18] sm:$0xff] }
 0x4e6   :  { %v9841_v46 = vld [vmem:[#allocation4 + $0x60] sm:$0xff]  ;;  %v9840_v13 = vld [vmem:[#allocation4 + $0x58] sm:$0xff]  ;;  %v9831_v24 = vld [vmem:[#allocation4 + $0x10] sm:$0xff] }
 0x4e7   :  { %v9839_v47 = vld [vmem:[#allocation4 + $0x50] sm:$0xff]  ;;  %v9830_v2 = vld [vmem:[#allocation4 + $0x8] sm:$0xff]  ;;  %v9829_v60 = vld [vmem:[#allocation4] sm:$0xff] }
 0x4e8   :  { %5878 = vmatpush.bf16.msra.mxu3 %v9835_v52  ;;  %v9838_v55 = vld [vmem:[#allocation4 + $0x48] sm:$0xff]  ;;  %v9837_v49 = vld [vmem:[#allocation4 + $0x40] sm:$0xff] }
 0x4e9   :  { %5891 = vmatpush.bf16.msra.mxu1 %v9843_v19  ;;  %v9873_v56 = vld [vmem:[#allocation13 + $0xe] ss:$0 sm:$0xff] }
 0x4ec   :  { %5879 = vmatpush.bf16.msra.mxu3 %v9834_v41 }
 0x4ed   :  { %5892 = vmatpush.bf16.msra.mxu1 %v9842_v43 }
 0x4f0   :  { %5880 = vmatpush.bf16.msra.mxu3 %v9833_v44 }
 0x4f1   :  { %5893 = vmatpush.bf16.msra.mxu1 %v9841_v46 }
 0x4f4   :  { %5881 = vmatpush.bf16.msra.mxu3 %v9832_v54 }
 0x4f5   :  { %5894 = vmatpush.bf16.msra.mxu1 %v9840_v13 }
 0x4f8   :  { %5882 = vmatpush.bf16.msra.mxu3 %v9831_v24 }
 0x4f9   :  { %5895 = vmatpush.bf16.msra.mxu1 %v9839_v47 }
 0x4fc   :  { %5883 = vmatpush.bf16.msra.mxu3 %v9830_v2 }
 0x4fd   :  { %5896 = vmatpush.bf16.msra.mxu1 %v9838_v55 }
 0x500   :  { %5884 = vmatpush.bf16.msra.mxu3 %v9829_v60 }
 0x501   :  { %5897 = vmatpush.bf16.msra.mxu1 %v9837_v49 }
 0x503   :  { %5885 = vmatmul.bf16.vlgmr.msra.gmra.mxu3 %v5739_v17 }
 0x504   :  { %5898 = vmatmul.bf16.vlgmr.msra.gmra.mxu1 %v5740_v38 }
 0x581   :  { %v5899_v53 = vpop.f32.mrf.mxu1 }
 0x586   :  { %v5886_v58 = vpop.f32.mrf.mxu3 }
 0x587   :  { %v5887_v59 = vadd.f32 %v9873_v56, %v5886_v58 }
 0x589   :  { %v5901_v0 = vpop.f32.mrf.mxu1  ;;  %v5900_v48 = vadd.f32 %v5899_v53, %v5887_v59 }
 0x58b   :  { %v5903_v1 = vmax.f32 %v5900_v48, 0.0 }
 0x58d   :  { %v5904_v3 = vpack.c.bf16 %v5903_v1, %v5903_v1 }
 0x58e   :  { %v5888_v4 = vpop.f32.mrf.mxu3 }
 0x58f   :  { %10102 = dma.done.wait [#allocation7 + $0x3], 1024 }
 0x590   :  { %10103 = vsyncadd [#allocation7 + $0x3], 4294966272  ;;  %v9852_v7 = vld [vmem:[#allocation5 + $0x38] sm:$0xff]  ;;  %v9851_v8 = vld [vmem:[#allocation5 + $0x30] sm:$0xff] }
 0x591   :  { %5977 = vmatpush.bf16.msra.mxu2 %v9852_v7  ;;  %v9850_v9 = vld [vmem:[#allocation5 + $0x28] sm:$0xff]  ;;  %v9849_v10 = vld [vmem:[#allocation5 + $0x20] sm:$0xff]  ;;  %v9848_v36 = vld [vmem:[#allocation5 + $0x18] sm:$0xff] }
 0x592   :  { %v9847_v11 = vld [vmem:[#allocation5 + $0x10] sm:$0xff]  ;;  %v9846_v6 = vld [vmem:[#allocation5 + $0x8] sm:$0xff]  ;;  %v9845_v27 = vld [vmem:[#allocation5] sm:$0xff] }
 0x593   :  { %v9874_v12 = vld [vmem:[#allocation13 + $0xf] ss:$0 sm:$0xff] }
 0x595   :  { %5978 = vmatpush.bf16.msra.mxu2 %v9851_v8 }
 0x599   :  { %5979 = vmatpush.bf16.msra.mxu2 %v9850_v9 }
 0x59d   :  { %5980 = vmatpush.bf16.msra.mxu2 %v9849_v10 }
 0x5a1   :  { %5981 = vmatpush.bf16.msra.mxu2 %v9848_v36 }
 0x5a5   :  { %5982 = vmatpush.bf16.msra.mxu2 %v9847_v11 }
 0x5a9   :  { %5983 = vmatpush.bf16.msra.mxu2 %v9846_v6 }
 0x5ad   :  { %5984 = vmatpush.bf16.msra.mxu2 %v9845_v27 }
 0x5b0   :  { %5985 = vmatmul.bf16.vlgmr.msra.gmra.mxu2 %v5904_v3 }
 0x633   :  { %v5986_v61 = vpop.f32.mrf.mxu2 }
 0x634   :  { %v5987_v51 = vadd.f32 %v9874_v12, %v5986_v61 }
 0x636   :  { %v5990_v57 = vmax.f32 %v5987_v51, 0.0 }
 0x638   :  { %v5991_v30 = vpack.c.bf16 %v5990_v57, %v5990_v57 }
 0x63b   :  { %v5988_v35 = vpop.f32.mrf.mxu2 }
 0x63c   :  { %10104 = dma.done.wait [#allocation7 + $0x4], 1024 }
 0x63d   :  { %10105 = vsyncadd [#allocation7 + $0x4], 4294966272  ;;  %v9860_v14 = vld [vmem:[#allocation6 + $0x38] sm:$0xff]  ;;  %v9859_v15 = vld [vmem:[#allocation6 + $0x30] sm:$0xff]  ;;  %s10118_s5 = smov [#allocation14]   ;;  %s6083_s20 = sshll.u32 %s10380_s8, 4  ;;  %s6084_s20 = int_to_ptr.hbm [resolvable:$true] %s6083_s20 }
 0x63e   :  { %6062 = vmatpush.bf16.msra.mxu0 %v9860_v14  ;;  %v9858_v45 = vld [vmem:[#allocation6 + $0x28] sm:$0xff]  ;;  %v9857_v16 = vld [vmem:[#allocation6 + $0x20] sm:$0xff]  ;;  %v9856_v18 = vld [vmem:[#allocation6 + $0x18] sm:$0xff]  ;;  %s6081_s6 = sshll.u32 %s10118_s5, 4  ;;  %s6082_s6 = int_to_ptr.vmem [resolvable:$true] %s6081_s6 }
 0x63f   :  { %v9855_v20 = vld [vmem:[#allocation6 + $0x10] sm:$0xff]  ;;  %v9854_v21 = vld [vmem:[#allocation6 + $0x8] sm:$0xff]  ;;  %v9853_v63 = vld [vmem:[#allocation6] sm:$0xff] }
 0x640   :  { %v9875_v22 = vld [vmem:[#allocation13 + $0x10] ss:$0 sm:$0xff] }
 0x642   :  { %6063 = vmatpush.bf16.msra.mxu0 %v9859_v15 }
 0x646   :  { %6064 = vmatpush.bf16.msra.mxu0 %v9858_v45 }
 0x64a   :  { %6065 = vmatpush.bf16.msra.mxu0 %v9857_v16 }
 0x64e   :  { %6066 = vmatpush.bf16.msra.mxu0 %v9856_v18 }
 0x652   :  { %6067 = vmatpush.bf16.msra.mxu0 %v9855_v20 }
 0x656   :  { %6068 = vmatpush.bf16.msra.mxu0 %v9854_v21 }
 0x65a   :  { %6069 = vmatpush.bf16.msra.mxu0 %v9853_v63 }
 0x65d   :  { %6070 = vmatmul.bf16.vlgmr.msra.gmra.mxu0 %v5991_v30 }
 0x6da   :  { %v6071_v17 = vpop.f32.mrf.mxu0 }
 0x6db   :  { %v6072_v23 = vadd.f32 %v9875_v22, %v6071_v17 }
 0x6dd   :  { %6075 = vst [vmem:[#allocation14] sm:$0xff] %v6072_v23 }
 0x6de   :  { %6086 = dma.vmem_to_hbm [thread:$0]  %s6082_s6, 128, %s6084_s20, [#allocation10]  }
 0x6e2   :  { %v6073_v31 = vpop.f32.mrf.mxu0 }
 0x6e3   :  { %10106 = dma.done.wait [#allocation10], 128  }
 0x6e4   :  { %10107 = vsyncadd [#allocation10], 4294967168 }
 0x6e5   :  { %6091 = vsyncpa [#allocation9], 1 }
 0x6e6   :  { %6092 = vsyncpa [#allocation12], 1 }
 0x6e7   :  { %6093 = vsyncpa [#allocation10], 1 }
 0x6e8   :  { %6094 = vsyncmov [#allocation7] }
 0x6eb   :  { %s6095_s0 = vpop.sfrf %6094 }
 0x6ec   :  { %p9112_p0 = scmp.ne.s32.totalorder %s6095_s0, 0 }
 0x6ee   :  { %6099 = shalt.err (%p9112_p0)  }
 0x6ef   :  { %6101 = vsyncmov [#allocation7 + $0x1] }
 0x6f2   :  { %s6102_s7 = vpop.sfrf %6101 }
 0x6f3   :  { %p9113_p1 = scmp.ne.s32.totalorder %s6102_s7, 0 }
 0x6f5   :  { %6106 = shalt.err (%p9113_p1)  }
 0x6f6   :  { %6108 = vsyncmov [#allocation7 + $0x2] }
 0x6f9   :  { %s6109_s8 = vpop.sfrf %6108 }
 0x6fa   :  { %p9114_p2 = scmp.ne.s32.totalorder %s6109_s8, 0 }
 0x6fc   :  { %6113 = shalt.err (%p9114_p2)  }
 0x6fd   :  { %6115 = vsyncmov [#allocation7 + $0x3] }
 0x700   :  { %s6116_s21 = vpop.sfrf %6115 }
 0x701   :  { %p9115_p3 = scmp.ne.s32.totalorder %s6116_s21, 0 }
 0x703   :  { %6120 = shalt.err (%p9115_p3)  }
 0x704   :  { %6122 = vsyncmov [#allocation7 + $0x4] }
 0x707   :  { %s6123_s22 = vpop.sfrf %6122 }
 0x708   :  { %p9116_p4 = scmp.ne.s32.totalorder %s6123_s22, 0 }
 0x70a   :  { %6127 = shalt.err (%p9116_p4)  }

</bundles_post_ra>
